<compile_context>
chip_gen: v5e
topology: v5e:2x2
jax: 0.10.0
libtpu: 0.0.40
codegen_flags: <defaults>
</compile_context>

<pallas_src>
import jax
import jax.numpy as jnp
from jax import lax
from jax.experimental import pallas as pl
from jax.experimental.pallas import tpu as pltpu


def _round_up(x, m):
    return (x + m - 1) // m * m


# ----------------------------------------------------------------------------
# Pallas kernel
# ----------------------------------------------------------------------------
def _make_seq_model_kernel(num_layers: int, T: int, Bp: int, Hp: int,
                           t_chunk: int, unroll):
    """Kernel body for fixed (static) layer count / seq len / padded dims."""
    H3 = 3 * Hp

    def kernel(*refs):
        # refs: [x, (w_i, w_h, b_gi, b_hn) * L, w_out, b_out, out, seq, gi]
        x_ref = refs[0]                                   # (T, Bp, Ip)
        layer_refs = refs[1:1 + 4 * num_layers]
        w_out_ref = refs[1 + 4 * num_layers]              # (Hp, Op)
        b_out_ref = refs[2 + 4 * num_layers]              # (1, Op)
        out_ref = refs[3 + 4 * num_layers]                # (Bp, Op)
        seq_ref = refs[4 + 4 * num_layers]                # (T, Bp, Hp)
        gi_ref = refs[5 + 4 * num_layers]                 # (T, Bp, 3*Hp)

        h_last = jnp.zeros((Bp, Hp), jnp.float32)

        for layer in range(num_layers):
            w_i_ref = layer_refs[4 * layer]               # (in_lp, 3*Hp)
            w_h_ref = layer_refs[4 * layer + 1]           # (Hp, 3*Hp)
            b_gi_ref = layer_refs[4 * layer + 2]          # (1, 3*Hp)
            b_hn_ref = layer_refs[4 * layer + 3]          # (1, Hp)

            in_ref = x_ref if layer == 0 else seq_ref
            in_dim = in_ref.shape[-1]

            # ---- hoisted fused input projection, streamed in T-chunks ------
            b_gi = b_gi_ref[...]                          # (1, 3*Hp)
            t0 = 0
            while t0 < T:
                tc = min(t_chunk, T - t0)                 # static Python ints
                inp = in_ref[pl.ds(t0, tc)]               # (tc, Bp, in_dim)
                gi = jnp.dot(inp.reshape(tc * Bp, in_dim), w_i_ref[...],
                             preferred_element_type=jnp.float32) + b_gi
                gi_ref[pl.ds(t0, tc)] = gi.reshape(tc, Bp, H3)
                t0 += tc

            write_seq = layer < num_layers - 1            # last layer: h only
            b_hn = b_hn_ref[...]                          # hoisted (1, Hp)

            # ---- sequential recurrence over time ----------------------------
            def step(t, h, w_h_ref=w_h_ref, b_hn=b_hn, write_seq=write_seq):
                # one fused (Bp,Hp)@(Hp,3*Hp) matmul per step
                gh = jnp.dot(h, w_h_ref[...],
                             preferred_element_type=jnp.float32)
                gi_t = gi_ref[t]                          # (Bp, 3*Hp)
                # lane-aligned static slices (Hp multiple of 128 -> free)
                r = jax.nn.sigmoid(gi_t[:, :Hp] + gh[:, :Hp])
                z = jax.nn.sigmoid(gi_t[:, Hp:2 * Hp] + gh[:, Hp:2 * Hp])
                n = jnp.tanh(gi_t[:, 2 * Hp:] + r * (gh[:, 2 * Hp:] + b_hn))
                h_new = n + z * (h - n)                   # == (1-z)*n + z*h
                if write_seq:
                    seq_ref[t] = h_new                    # feeds next layer
                return h_new

            h_last = lax.fori_loop(0, T, step,
                                   jnp.zeros((Bp, Hp), jnp.float32),
                                   unroll=unroll)

        # mlp(output_state[:, -1, :]) == mlp(final hidden of last layer)
        out_ref[...] = (
            jnp.dot(h_last, w_out_ref[...], preferred_element_type=jnp.float32)
            + b_out_ref[...]).astype(out_ref.dtype)

    return kernel


# ----------------------------------------------------------------------------
# Wrapper: layout / padding / bias-folding glue, then a single pallas_call.
# ----------------------------------------------------------------------------
def seq_model_forward(x, layer_params, w_out, b_out):
    """x: (B, T, I) float32; returns (B, out_size) float32."""
    B, T, I = x.shape
    H = layer_params[0][1].shape[1]          # w_hh: (3H, H)
    O = w_out.shape[0]
    num_layers = len(layer_params)

    Bp = _round_up(B, 8)                     # f32 sublane multiple
    Hp = _round_up(max(H, 128), 128)         # lane multiple
    Op = _round_up(max(O, 128), 128)
    Ip = _round_up(max(I, 128), 128)         # lane-dense layer-0 K tile

    # x: (B, T, I) -> time-major, batch/feature-padded (T, Bp, Ip)
    x_tm = jnp.transpose(x, (1, 0, 2)).astype(jnp.float32)
    x_tm = jnp.pad(x_tm, ((0, 0), (0, Bp - B), (0, Ip - I)))

    args = [x_tm]
    for layer, (w_ih, w_hh, b_ih, b_hh) in enumerate(layer_params):
        w_ih = jnp.asarray(w_ih, jnp.float32)    # (3H, in_l)  [r|z|n]
        w_hh = jnp.asarray(w_hh, jnp.float32)    # (3H, H)
        b_ih = jnp.asarray(b_ih, jnp.float32)    # (3H,)
        b_hh = jnp.asarray(b_hh, jnp.float32)    # (3H,)
        in_l = w_ih.shape[1]
        in_lp = Ip if layer == 0 else Hp         # padded input feature dim

        # fused per-gate-padded weights: (in_lp, 3*Hp) and (Hp, 3*Hp)
        w_i_g, w_h_g = [], []
        for g in range(3):
            wi = w_ih[g * H:(g + 1) * H, :].T    # (in_l, H)
            wh = w_hh[g * H:(g + 1) * H, :].T    # (H, H)
            w_i_g.append(jnp.pad(wi, ((0, in_lp - in_l), (0, Hp - H))))
            w_h_g.append(jnp.pad(wh, ((0, Hp - H), (0, Hp - H))))
        w_i_fused = jnp.concatenate(w_i_g, axis=1)        # (in_lp, 3*Hp)
        w_h_fused = jnp.concatenate(w_h_g, axis=1)        # (Hp, 3*Hp)

        # fold b_ih fully and b_hh (r, z parts) into the hoisted projection;
        # only b_hn stays inside the loop (it gets multiplied by r).
        b_r = jnp.pad(b_ih[:H] + b_hh[:H], (0, Hp - H))
        b_z = jnp.pad(b_ih[H:2 * H] + b_hh[H:2 * H], (0, Hp - H))
        b_n = jnp.pad(b_ih[2 * H:], (0, Hp - H))
        b_gi = jnp.concatenate([b_r, b_z, b_n]).reshape(1, 3 * Hp)
        b_hn = jnp.pad(b_hh[2 * H:], (0, Hp - H)).reshape(1, Hp)

        args += [w_i_fused, w_h_fused, b_gi, b_hn]

    w_out_p = jnp.pad(jnp.asarray(w_out, jnp.float32).T,
                      ((0, Hp - H), (0, Op - O)))                # (Hp, Op)
    b_out_p = jnp.pad(jnp.asarray(b_out, jnp.float32),
                      (0, Op - O)).reshape(1, Op)
    args += [w_out_p, b_out_p]

    # projection streamed in T-chunks of roughly 256 rows of (Bp, .)
    t_chunk = int(min(T, max(1, 256 // Bp)))

    # Explicit VMEM budget: no grid -> no double-buffering; inputs + output +
    # scratch + fixed margin, capped a bit below physical VMEM.
    scratch_bytes = T * Bp * Hp * 4 + T * Bp * 3 * Hp * 4
    vmem_needed = (sum(int(a.size) * 4 for a in args)
                   + Bp * Op * 4 + scratch_bytes)
    try:
        vmem_cap = int(pltpu.get_tpu_info().vmem_capacity_bytes)
    except Exception:                                   # pragma: no cover
        vmem_cap = 64 * 1024 * 1024
    vmem_limit = int(min(max(vmem_cap - 8 * (1 << 20), 16 * (1 << 20)),
                         max(vmem_needed + 8 * (1 << 20), 16 * (1 << 20))))

    unroll = True if T <= 8 else 2
    kernel = _make_seq_model_kernel(num_layers, T, Bp, Hp, t_chunk, unroll)

    out_padded = pl.pallas_call(
        kernel,
        out_shape=jax.ShapeDtypeStruct((Bp, Op), jnp.float32),
        # No grid -> single invocation, whole arrays resident in VMEM.
        in_specs=[pl.BlockSpec(memory_space=pltpu.MemorySpace.VMEM)
                  for _ in args],
        out_specs=pl.BlockSpec(memory_space=pltpu.MemorySpace.VMEM),
        scratch_shapes=[
            pltpu.VMEM((T, Bp, Hp), jnp.float32),       # prev-layer outputs
            pltpu.VMEM((T, Bp, 3 * Hp), jnp.float32),   # fused hoisted gi
        ],
        compiler_params=pltpu.CompilerParams(vmem_limit_bytes=vmem_limit),
    )(*args)

    return out_padded[:B, :O]


# ----------------------------------------------------------------------------
# Pure-JAX reference (mirrors torch.nn.GRU(batch_first=True) + nn.Linear)
# ----------------------------------------------------------------------------
def seq_model_ref(x, layer_params, w_out, b_out):
    B, T, _ = x.shape
    h_seq = x
    for (w_ih, w_hh, b_ih, b_hh) in layer_params:
        H = w_hh.shape[1]
        h = jnp.zeros((B, H), jnp.float32)
        outs = []
        for t in range(T):
            x_t = h_seq[:, t, :]
            gi = x_t @ w_ih.T + b_ih
            gh = h @ w_hh.T + b_hh
            r = jax.nn.sigmoid(gi[:, :H] + gh[:, :H])
            z = jax.nn.sigmoid(gi[:, H:2 * H] + gh[:, H:2 * H])
            n = jnp.tanh(gi[:, 2 * H:] + r * gh[:, 2 * H:])
            h = (1.0 - z) * n + z * h
            outs.append(h)
        h_seq = jnp.stack(outs, axis=1)
    return h_seq[:, -1, :] @ w_out.T + b_out


# ----------------------------------------------------------------------------
# Deterministic PyTorch-shaped parameter construction
# ----------------------------------------------------------------------------
def init_params(key, input_size, hidden_size, out_size, num_layers):
    k_gru = 1.0 / jnp.sqrt(hidden_size)
    layers = []
    for l in range(num_layers):
        in_l = input_size if l == 0 else hidden_size
        key, k1, k2, k3, k4 = jax.random.split(key, 5)
        layers.append((
            jax.random.uniform(k1, (3 * hidden_size, in_l), jnp.float32,
                               -k_gru, k_gru),
            jax.random.uniform(k2, (3 * hidden_size, hidden_size), jnp.float32,
                               -k_gru, k_gru),
            jax.random.uniform(k3, (3 * hidden_size,), jnp.float32,
                               -k_gru, k_gru),
            jax.random.uniform(k4, (3 * hidden_size,), jnp.float32,
                               -k_gru, k_gru),
        ))
    k_lin = 1.0 / jnp.sqrt(hidden_size)
    key, k5, k6 = jax.random.split(key, 3)
    w_out = jax.random.uniform(k5, (out_size, hidden_size), jnp.float32,
                               -k_lin, k_lin)
    b_out = jax.random.uniform(k6, (out_size,), jnp.float32, -k_lin, k_lin)
    return layers, w_out, b_out


if __name__ == "__main__":
    # Small shapes consistent with SeqModel(input_size, hidden, out, layers).
    B, T = 2, 8
    INPUT_SIZE, HIDDEN, OUT, LAYERS = 16, 32, 8, 2

    key = jax.random.PRNGKey(0)
    key, kx = jax.random.split(key)
    x = jax.random.normal(kx, (B, T, INPUT_SIZE), jnp.float32)

    layer_params, w_out, b_out = init_params(key, INPUT_SIZE, HIDDEN, OUT,
                                             LAYERS)

    y = seq_model_forward(x, layer_params, w_out, b_out)
    y = jax.block_until_ready(y)

    y_ref = seq_model_ref(x, layer_params, w_out, b_out)
    assert y.shape == (B, OUT)
    assert jnp.allclose(y, y_ref, atol=1e-4, rtol=1e-4), (
        f"mismatch: max abs diff {jnp.max(jnp.abs(y - y_ref))}")

    print("KERNEL_OK")
</pallas_src>

<mosaic_0001>
module attributes {stable_mosaic.version = 11 : i64} {
  func.func @kernel(%arg0: memref<8x8x128xf32, #tpu.memory_space<vmem>>, %arg1: memref<128x384xf32, #tpu.memory_space<vmem>>, %arg2: memref<128x384xf32, #tpu.memory_space<vmem>>, %arg3: memref<1x384xf32, #tpu.memory_space<vmem>>, %arg4: memref<1x128xf32, #tpu.memory_space<vmem>>, %arg5: memref<128x384xf32, #tpu.memory_space<vmem>>, %arg6: memref<128x384xf32, #tpu.memory_space<vmem>>, %arg7: memref<1x384xf32, #tpu.memory_space<vmem>>, %arg8: memref<1x128xf32, #tpu.memory_space<vmem>>, %arg9: memref<128x128xf32, #tpu.memory_space<vmem>>, %arg10: memref<1x128xf32, #tpu.memory_space<vmem>>, %arg11: memref<8x128xf32, #tpu.memory_space<vmem>>, %arg12: memref<8x8x128xf32, #tpu.memory_space<vmem>>, %arg13: memref<8x8x384xf32, #tpu.memory_space<vmem>>) attributes {dimension_semantics = [], scalar_prefetch = 0 : i64, scratch_operands = 2 : i64, tpu.core_type = #tpu.core_type<tc>} {
    %c0 = arith.constant 0 : index
    %c0_0 = arith.constant 0 : index
    %0 = vector.load %arg3[%c0, %c0_0] : memref<1x384xf32, #tpu.memory_space<vmem>>, vector<1x384xf32>
    %c0_1 = arith.constant 0 : index
    %c0_2 = arith.constant 0 : index
    %c0_3 = arith.constant 0 : index
    %1 = vector.load %arg0[%c0_1, %c0_2, %c0_3] : memref<8x8x128xf32, #tpu.memory_space<vmem>>, vector<8x8x128xf32>
    %2 = vector.shape_cast %1 : vector<8x8x128xf32> to vector<64x128xf32>
    %c0_4 = arith.constant 0 : index
    %c0_5 = arith.constant 0 : index
    %3 = vector.load %arg1[%c0_4, %c0_5] : memref<128x384xf32, #tpu.memory_space<vmem>>, vector<128x384xf32>
    %cst = arith.constant dense<0.000000e+00> : vector<64x384xf32>
    %4 = tpu.matmul %2, %3, %cst {dimension_numbers = #tpu.dot_dimension_numbers<[1], [0], [0], [1], [0, 0, 1, 1], [], []>} : vector<64x128xf32>, vector<128x384xf32>, vector<64x384xf32> -> vector<64x384xf32>
    %5 = vector.broadcast %0 : vector<1x384xf32> to vector<64x384xf32>
    %6 = arith.addf %4, %5 : vector<64x384xf32>
    %7 = vector.shape_cast %6 : vector<64x384xf32> to vector<8x8x384xf32>
    %c0_6 = arith.constant 0 : index
    %c0_7 = arith.constant 0 : index
    %c0_8 = arith.constant 0 : index
    %8 = vector.load %arg13[%c0_6, %c0_7, %c0_8] : memref<8x8x384xf32, #tpu.memory_space<vmem>>, vector<8x8x384xf32>
    tpu.vector_store %arg13[%c0_6, %c0_7, %c0_8], %7 {strides = array<i32>} : memref<8x8x384xf32, #tpu.memory_space<vmem>>, vector<8x8x384xf32>,
    %c0_9 = arith.constant 0 : index
    %c0_10 = arith.constant 0 : index
    %9 = vector.load %arg4[%c0_9, %c0_10] : memref<1x128xf32, #tpu.memory_space<vmem>>, vector<1x128xf32>
    %cst_11 = arith.constant 0.000000e+00 : f32
    %10 = vector.broadcast %cst_11 : f32 to vector<8x128xf32>
    %c0_i32 = arith.constant 0 : i32
    %c0_12 = arith.constant 0 : index
    %c0_13 = arith.constant 0 : index
    %11 = vector.load %arg2[%c0_12, %c0_13] : memref<128x384xf32, #tpu.memory_space<vmem>>, vector<128x384xf32>
    %cst_14 = arith.constant dense<0.000000e+00> : vector<8x384xf32>
    %12 = tpu.matmul %10, %11, %cst_14 {dimension_numbers = #tpu.dot_dimension_numbers<[1], [0], [0], [1], [0, 0, 1, 1], [], []>} : vector<8x128xf32>, vector<128x384xf32>, vector<8x384xf32> -> vector<8x384xf32>
    %13 = arith.index_cast %c0_i32 : i32 to index
    %c0_15 = arith.constant 0 : index
    %c0_16 = arith.constant 0 : index
    %14 = vector.load %arg13[%13, %c0_15, %c0_16] : memref<8x8x384xf32, #tpu.memory_space<vmem>>, vector<1x8x384xf32>
    %15 = vector.shape_cast %14 : vector<1x8x384xf32> to vector<8x384xf32>
    %16 = vector.extract_strided_slice %15 {offsets = [0, 0], sizes = [8, 128], strides = [1, 1]} : vector<8x384xf32> to vector<8x128xf32>
    %17 = vector.extract_strided_slice %12 {offsets = [0, 0], sizes = [8, 128], strides = [1, 1]} : vector<8x384xf32> to vector<8x128xf32>
    %18 = arith.addf %16, %17 : vector<8x128xf32>
    %19 = arith.negf %18 : vector<8x128xf32>
    %20 = math.exp %19 : vector<8x128xf32>
    %cst_17 = arith.constant 1.000000e+00 : f32
    %21 = vector.broadcast %cst_17 : f32 to vector<8x128xf32>
    %22 = arith.addf %21, %20 : vector<8x128xf32>
    %23 = arith.divf %21, %22 : vector<8x128xf32>
    %24 = vector.extract_strided_slice %15 {offsets = [0, 128], sizes = [8, 128], strides = [1, 1]} : vector<8x384xf32> to vector<8x128xf32>
    %25 = vector.extract_strided_slice %12 {offsets = [0, 128], sizes = [8, 128], strides = [1, 1]} : vector<8x384xf32> to vector<8x128xf32>
    %26 = arith.addf %24, %25 : vector<8x128xf32>
    %27 = arith.negf %26 : vector<8x128xf32>
    %28 = math.exp %27 : vector<8x128xf32>
    %cst_18 = arith.constant 1.000000e+00 : f32
    %29 = vector.broadcast %cst_18 : f32 to vector<8x128xf32>
    %30 = arith.addf %29, %28 : vector<8x128xf32>
    %31 = arith.divf %29, %30 : vector<8x128xf32>
    %32 = vector.extract_strided_slice %15 {offsets = [0, 256], sizes = [8, 128], strides = [1, 1]} : vector<8x384xf32> to vector<8x128xf32>
    %33 = vector.extract_strided_slice %12 {offsets = [0, 256], sizes = [8, 128], strides = [1, 1]} : vector<8x384xf32> to vector<8x128xf32>
    %34 = vector.broadcast %9 : vector<1x128xf32> to vector<8x128xf32>
    %35 = arith.addf %33, %34 : vector<8x128xf32>
    %36 = arith.mulf %23, %35 : vector<8x128xf32>
    %37 = arith.addf %32, %36 : vector<8x128xf32>
    %38 = math.tanh %37 : vector<8x128xf32>
    %39 = arith.subf %10, %38 : vector<8x128xf32>
    %40 = arith.mulf %31, %39 : vector<8x128xf32>
    %41 = arith.addf %38, %40 : vector<8x128xf32>
    %42 = arith.index_cast %c0_i32 : i32 to index
    %c0_19 = arith.constant 0 : index
    %c0_20 = arith.constant 0 : index
    %43 = vector.load %arg12[%42, %c0_19, %c0_20] : memref<8x8x128xf32, #tpu.memory_space<vmem>>, vector<1x8x128xf32>
    %44 = vector.shape_cast %43 : vector<1x8x128xf32> to vector<8x128xf32>
    %45 = vector.shape_cast %41 : vector<8x128xf32> to vector<1x8x128xf32>
    tpu.vector_store %arg12[%42, %c0_19, %c0_20], %45 {strides = array<i32>} : memref<8x8x128xf32, #tpu.memory_space<vmem>>, vector<1x8x128xf32>,
    %c1_i32 = arith.constant 1 : i32
    %c0_21 = arith.constant 0 : index
    %c0_22 = arith.constant 0 : index
    %46 = vector.load %arg2[%c0_21, %c0_22] : memref<128x384xf32, #tpu.memory_space<vmem>>, vector<128x384xf32>
    %cst_23 = arith.constant dense<0.000000e+00> : vector<8x384xf32>
    %47 = tpu.matmul %41, %46, %cst_23 {dimension_numbers = #tpu.dot_dimension_numbers<[1], [0], [0], [1], [0, 0, 1, 1], [], []>} : vector<8x128xf32>, vector<128x384xf32>, vector<8x384xf32> -> vector<8x384xf32>
    %48 = arith.index_cast %c1_i32 : i32 to index
    %c0_24 = arith.constant 0 : index
    %c0_25 = arith.constant 0 : index
    %49 = vector.load %arg13[%48, %c0_24, %c0_25] : memref<8x8x384xf32, #tpu.memory_space<vmem>>, vector<1x8x384xf32>
    %50 = vector.shape_cast %49 : vector<1x8x384xf32> to vector<8x384xf32>
    %51 = vector.extract_strided_slice %50 {offsets = [0, 0], sizes = [8, 128], strides = [1, 1]} : vector<8x384xf32> to vector<8x128xf32>
    %52 = vector.extract_strided_slice %47 {offsets = [0, 0], sizes = [8, 128], strides = [1, 1]} : vector<8x384xf32> to vector<8x128xf32>
    %53 = arith.addf %51, %52 : vector<8x128xf32>
    %54 = arith.negf %53 : vector<8x128xf32>
    %55 = math.exp %54 : vector<8x128xf32>
    %cst_26 = arith.constant 1.000000e+00 : f32
    %56 = vector.broadcast %cst_26 : f32 to vector<8x128xf32>
    %57 = arith.addf %56, %55 : vector<8x128xf32>
    %58 = arith.divf %56, %57 : vector<8x128xf32>
    %59 = vector.extract_strided_slice %50 {offsets = [0, 128], sizes = [8, 128], strides = [1, 1]} : vector<8x384xf32> to vector<8x128xf32>
    %60 = vector.extract_strided_slice %47 {offsets = [0, 128], sizes = [8, 128], strides = [1, 1]} : vector<8x384xf32> to vector<8x128xf32>
    %61 = arith.addf %59, %60 : vector<8x128xf32>
    %62 = arith.negf %61 : vector<8x128xf32>
    %63 = math.exp %62 : vector<8x128xf32>
    %cst_27 = arith.constant 1.000000e+00 : f32
    %64 = vector.broadcast %cst_27 : f32 to vector<8x128xf32>
    %65 = arith.addf %64, %63 : vector<8x128xf32>
    %66 = arith.divf %64, %65 : vector<8x128xf32>
    %67 = vector.extract_strided_slice %50 {offsets = [0, 256], sizes = [8, 128], strides = [1, 1]} : vector<8x384xf32> to vector<8x128xf32>
    %68 = vector.extract_strided_slice %47 {offsets = [0, 256], sizes = [8, 128], strides = [1, 1]} : vector<8x384xf32> to vector<8x128xf32>
    %69 = vector.broadcast %9 : vector<1x128xf32> to vector<8x128xf32>
    %70 = arith.addf %68, %69 : vector<8x128xf32>
    %71 = arith.mulf %58, %70 : vector<8x128xf32>
    %72 = arith.addf %67, %71 : vector<8x128xf32>
    %73 = math.tanh %72 : vector<8x128xf32>
    %74 = arith.subf %41, %73 : vector<8x128xf32>
    %75 = arith.mulf %66, %74 : vector<8x128xf32>
    %76 = arith.addf %73, %75 : vector<8x128xf32>
    %77 = arith.index_cast %c1_i32 : i32 to index
    %c0_28 = arith.constant 0 : index
    %c0_29 = arith.constant 0 : index
    %78 = vector.load %arg12[%77, %c0_28, %c0_29] : memref<8x8x128xf32, #tpu.memory_space<vmem>>, vector<1x8x128xf32>
    %79 = vector.shape_cast %78 : vector<1x8x128xf32> to vector<8x128xf32>
    %80 = vector.shape_cast %76 : vector<8x128xf32> to vector<1x8x128xf32>
    tpu.vector_store %arg12[%77, %c0_28, %c0_29], %80 {strides = array<i32>} : memref<8x8x128xf32, #tpu.memory_space<vmem>>, vector<1x8x128xf32>,
    %c2_i32 = arith.constant 2 : i32
    %c0_30 = arith.constant 0 : index
    %c0_31 = arith.constant 0 : index
    %81 = vector.load %arg2[%c0_30, %c0_31] : memref<128x384xf32, #tpu.memory_space<vmem>>, vector<128x384xf32>
    %cst_32 = arith.constant dense<0.000000e+00> : vector<8x384xf32>
    %82 = tpu.matmul %76, %81, %cst_32 {dimension_numbers = #tpu.dot_dimension_numbers<[1], [0], [0], [1], [0, 0, 1, 1], [], []>} : vector<8x128xf32>, vector<128x384xf32>, vector<8x384xf32> -> vector<8x384xf32>
    %83 = arith.index_cast %c2_i32 : i32 to index
    %c0_33 = arith.constant 0 : index
    %c0_34 = arith.constant 0 : index
    %84 = vector.load %arg13[%83, %c0_33, %c0_34] : memref<8x8x384xf32, #tpu.memory_space<vmem>>, vector<1x8x384xf32>
    %85 = vector.shape_cast %84 : vector<1x8x384xf32> to vector<8x384xf32>
    %86 = vector.extract_strided_slice %85 {offsets = [0, 0], sizes = [8, 128], strides = [1, 1]} : vector<8x384xf32> to vector<8x128xf32>
    %87 = vector.extract_strided_slice %82 {offsets = [0, 0], sizes = [8, 128], strides = [1, 1]} : vector<8x384xf32> to vector<8x128xf32>
    %88 = arith.addf %86, %87 : vector<8x128xf32>
    %89 = arith.negf %88 : vector<8x128xf32>
    %90 = math.exp %89 : vector<8x128xf32>
    %cst_35 = arith.constant 1.000000e+00 : f32
    %91 = vector.broadcast %cst_35 : f32 to vector<8x128xf32>
    %92 = arith.addf %91, %90 : vector<8x128xf32>
    %93 = arith.divf %91, %92 : vector<8x128xf32>
    %94 = vector.extract_strided_slice %85 {offsets = [0, 128], sizes = [8, 128], strides = [1, 1]} : vector<8x384xf32> to vector<8x128xf32>
    %95 = vector.extract_strided_slice %82 {offsets = [0, 128], sizes = [8, 128], strides = [1, 1]} : vector<8x384xf32> to vector<8x128xf32>
    %96 = arith.addf %94, %95 : vector<8x128xf32>
    %97 = arith.negf %96 : vector<8x128xf32>
    %98 = math.exp %97 : vector<8x128xf32>
    %cst_36 = arith.constant 1.000000e+00 : f32
    %99 = vector.broadcast %cst_36 : f32 to vector<8x128xf32>
    %100 = arith.addf %99, %98 : vector<8x128xf32>
    %101 = arith.divf %99, %100 : vector<8x128xf32>
    %102 = vector.extract_strided_slice %85 {offsets = [0, 256], sizes = [8, 128], strides = [1, 1]} : vector<8x384xf32> to vector<8x128xf32>
    %103 = vector.extract_strided_slice %82 {offsets = [0, 256], sizes = [8, 128], strides = [1, 1]} : vector<8x384xf32> to vector<8x128xf32>
    %104 = vector.broadcast %9 : vector<1x128xf32> to vector<8x128xf32>
    %105 = arith.addf %103, %104 : vector<8x128xf32>
    %106 = arith.mulf %93, %105 : vector<8x128xf32>
    %107 = arith.addf %102, %106 : vector<8x128xf32>
    %108 = math.tanh %107 : vector<8x128xf32>
    %109 = arith.subf %76, %108 : vector<8x128xf32>
    %110 = arith.mulf %101, %109 : vector<8x128xf32>
    %111 = arith.addf %108, %110 : vector<8x128xf32>
    %112 = arith.index_cast %c2_i32 : i32 to index
    %c0_37 = arith.constant 0 : index
    %c0_38 = arith.constant 0 : index
    %113 = vector.load %arg12[%112, %c0_37, %c0_38] : memref<8x8x128xf32, #tpu.memory_space<vmem>>, vector<1x8x128xf32>
    %114 = vector.shape_cast %113 : vector<1x8x128xf32> to vector<8x128xf32>
    %115 = vector.shape_cast %111 : vector<8x128xf32> to vector<1x8x128xf32>
    tpu.vector_store %arg12[%112, %c0_37, %c0_38], %115 {strides = array<i32>} : memref<8x8x128xf32, #tpu.memory_space<vmem>>, vector<1x8x128xf32>,
    %c3_i32 = arith.constant 3 : i32
    %c0_39 = arith.constant 0 : index
    %c0_40 = arith.constant 0 : index
    %116 = vector.load %arg2[%c0_39, %c0_40] : memref<128x384xf32, #tpu.memory_space<vmem>>, vector<128x384xf32>
    %cst_41 = arith.constant dense<0.000000e+00> : vector<8x384xf32>
    %117 = tpu.matmul %111, %116, %cst_41 {dimension_numbers = #tpu.dot_dimension_numbers<[1], [0], [0], [1], [0, 0, 1, 1], [], []>} : vector<8x128xf32>, vector<128x384xf32>, vector<8x384xf32> -> vector<8x384xf32>
    %118 = arith.index_cast %c3_i32 : i32 to index
    %c0_42 = arith.constant 0 : index
    %c0_43 = arith.constant 0 : index
    %119 = vector.load %arg13[%118, %c0_42, %c0_43] : memref<8x8x384xf32, #tpu.memory_space<vmem>>, vector<1x8x384xf32>
    %120 = vector.shape_cast %119 : vector<1x8x384xf32> to vector<8x384xf32>
    %121 = vector.extract_strided_slice %120 {offsets = [0, 0], sizes = [8, 128], strides = [1, 1]} : vector<8x384xf32> to vector<8x128xf32>
    %122 = vector.extract_strided_slice %117 {offsets = [0, 0], sizes = [8, 128], strides = [1, 1]} : vector<8x384xf32> to vector<8x128xf32>
    %123 = arith.addf %121, %122 : vector<8x128xf32>
    %124 = arith.negf %123 : vector<8x128xf32>
    %125 = math.exp %124 : vector<8x128xf32>
    %cst_44 = arith.constant 1.000000e+00 : f32
    %126 = vector.broadcast %cst_44 : f32 to vector<8x128xf32>
    %127 = arith.addf %126, %125 : vector<8x128xf32>
    %128 = arith.divf %126, %127 : vector<8x128xf32>
    %129 = vector.extract_strided_slice %120 {offsets = [0, 128], sizes = [8, 128], strides = [1, 1]} : vector<8x384xf32> to vector<8x128xf32>
    %130 = vector.extract_strided_slice %117 {offsets = [0, 128], sizes = [8, 128], strides = [1, 1]} : vector<8x384xf32> to vector<8x128xf32>
    %131 = arith.addf %129, %130 : vector<8x128xf32>
    %132 = arith.negf %131 : vector<8x128xf32>
    %133 = math.exp %132 : vector<8x128xf32>
    %cst_45 = arith.constant 1.000000e+00 : f32
    %134 = vector.broadcast %cst_45 : f32 to vector<8x128xf32>
    %135 = arith.addf %134, %133 : vector<8x128xf32>
    %136 = arith.divf %134, %135 : vector<8x128xf32>
    %137 = vector.extract_strided_slice %120 {offsets = [0, 256], sizes = [8, 128], strides = [1, 1]} : vector<8x384xf32> to vector<8x128xf32>
    %138 = vector.extract_strided_slice %117 {offsets = [0, 256], sizes = [8, 128], strides = [1, 1]} : vector<8x384xf32> to vector<8x128xf32>
    %139 = vector.broadcast %9 : vector<1x128xf32> to vector<8x128xf32>
    %140 = arith.addf %138, %139 : vector<8x128xf32>
    %141 = arith.mulf %128, %140 : vector<8x128xf32>
    %142 = arith.addf %137, %141 : vector<8x128xf32>
    %143 = math.tanh %142 : vector<8x128xf32>
    %144 = arith.subf %111, %143 : vector<8x128xf32>
    %145 = arith.mulf %136, %144 : vector<8x128xf32>
    %146 = arith.addf %143, %145 : vector<8x128xf32>
    %147 = arith.index_cast %c3_i32 : i32 to index
    %c0_46 = arith.constant 0 : index
    %c0_47 = arith.constant 0 : index
    %148 = vector.load %arg12[%147, %c0_46, %c0_47] : memref<8x8x128xf32, #tpu.memory_space<vmem>>, vector<1x8x128xf32>
    %149 = vector.shape_cast %148 : vector<1x8x128xf32> to vector<8x128xf32>
    %150 = vector.shape_cast %146 : vector<8x128xf32> to vector<1x8x128xf32>
    tpu.vector_store %arg12[%147, %c0_46, %c0_47], %150 {strides = array<i32>} : memref<8x8x128xf32, #tpu.memory_space<vmem>>, vector<1x8x128xf32>,
    %c4_i32 = arith.constant 4 : i32
    %c0_48 = arith.constant 0 : index
    %c0_49 = arith.constant 0 : index
    %151 = vector.load %arg2[%c0_48, %c0_49] : memref<128x384xf32, #tpu.memory_space<vmem>>, vector<128x384xf32>
    %cst_50 = arith.constant dense<0.000000e+00> : vector<8x384xf32>
    %152 = tpu.matmul %146, %151, %cst_50 {dimension_numbers = #tpu.dot_dimension_numbers<[1], [0], [0], [1], [0, 0, 1, 1], [], []>} : vector<8x128xf32>, vector<128x384xf32>, vector<8x384xf32> -> vector<8x384xf32>
    %153 = arith.index_cast %c4_i32 : i32 to index
    %c0_51 = arith.constant 0 : index
    %c0_52 = arith.constant 0 : index
    %154 = vector.load %arg13[%153, %c0_51, %c0_52] : memref<8x8x384xf32, #tpu.memory_space<vmem>>, vector<1x8x384xf32>
    %155 = vector.shape_cast %154 : vector<1x8x384xf32> to vector<8x384xf32>
    %156 = vector.extract_strided_slice %155 {offsets = [0, 0], sizes = [8, 128], strides = [1, 1]} : vector<8x384xf32> to vector<8x128xf32>
    %157 = vector.extract_strided_slice %152 {offsets = [0, 0], sizes = [8, 128], strides = [1, 1]} : vector<8x384xf32> to vector<8x128xf32>
    %158 = arith.addf %156, %157 : vector<8x128xf32>
    %159 = arith.negf %158 : vector<8x128xf32>
    %160 = math.exp %159 : vector<8x128xf32>
    %cst_53 = arith.constant 1.000000e+00 : f32
    %161 = vector.broadcast %cst_53 : f32 to vector<8x128xf32>
    %162 = arith.addf %161, %160 : vector<8x128xf32>
    %163 = arith.divf %161, %162 : vector<8x128xf32>
    %164 = vector.extract_strided_slice %155 {offsets = [0, 128], sizes = [8, 128], strides = [1, 1]} : vector<8x384xf32> to vector<8x128xf32>
    %165 = vector.extract_strided_slice %152 {offsets = [0, 128], sizes = [8, 128], strides = [1, 1]} : vector<8x384xf32> to vector<8x128xf32>
    %166 = arith.addf %164, %165 : vector<8x128xf32>
    %167 = arith.negf %166 : vector<8x128xf32>
    %168 = math.exp %167 : vector<8x128xf32>
    %cst_54 = arith.constant 1.000000e+00 : f32
    %169 = vector.broadcast %cst_54 : f32 to vector<8x128xf32>
    %170 = arith.addf %169, %168 : vector<8x128xf32>
    %171 = arith.divf %169, %170 : vector<8x128xf32>
    %172 = vector.extract_strided_slice %155 {offsets = [0, 256], sizes = [8, 128], strides = [1, 1]} : vector<8x384xf32> to vector<8x128xf32>
    %173 = vector.extract_strided_slice %152 {offsets = [0, 256], sizes = [8, 128], strides = [1, 1]} : vector<8x384xf32> to vector<8x128xf32>
    %174 = vector.broadcast %9 : vector<1x128xf32> to vector<8x128xf32>
    %175 = arith.addf %173, %174 : vector<8x128xf32>
    %176 = arith.mulf %163, %175 : vector<8x128xf32>
    %177 = arith.addf %172, %176 : vector<8x128xf32>
    %178 = math.tanh %177 : vector<8x128xf32>
    %179 = arith.subf %146, %178 : vector<8x128xf32>
    %180 = arith.mulf %171, %179 : vector<8x128xf32>
    %181 = arith.addf %178, %180 : vector<8x128xf32>
    %182 = arith.index_cast %c4_i32 : i32 to index
    %c0_55 = arith.constant 0 : index
    %c0_56 = arith.constant 0 : index
    %183 = vector.load %arg12[%182, %c0_55, %c0_56] : memref<8x8x128xf32, #tpu.memory_space<vmem>>, vector<1x8x128xf32>
    %184 = vector.shape_cast %183 : vector<1x8x128xf32> to vector<8x128xf32>
    %185 = vector.shape_cast %181 : vector<8x128xf32> to vector<1x8x128xf32>
    tpu.vector_store %arg12[%182, %c0_55, %c0_56], %185 {strides = array<i32>} : memref<8x8x128xf32, #tpu.memory_space<vmem>>, vector<1x8x128xf32>,
    %c5_i32 = arith.constant 5 : i32
    %c0_57 = arith.constant 0 : index
    %c0_58 = arith.constant 0 : index
    %186 = vector.load %arg2[%c0_57, %c0_58] : memref<128x384xf32, #tpu.memory_space<vmem>>, vector<128x384xf32>
    %cst_59 = arith.constant dense<0.000000e+00> : vector<8x384xf32>
    %187 = tpu.matmul %181, %186, %cst_59 {dimension_numbers = #tpu.dot_dimension_numbers<[1], [0], [0], [1], [0, 0, 1, 1], [], []>} : vector<8x128xf32>, vector<128x384xf32>, vector<8x384xf32> -> vector<8x384xf32>
    %188 = arith.index_cast %c5_i32 : i32 to index
    %c0_60 = arith.constant 0 : index
    %c0_61 = arith.constant 0 : index
    %189 = vector.load %arg13[%188, %c0_60, %c0_61] : memref<8x8x384xf32, #tpu.memory_space<vmem>>, vector<1x8x384xf32>
    %190 = vector.shape_cast %189 : vector<1x8x384xf32> to vector<8x384xf32>
    %191 = vector.extract_strided_slice %190 {offsets = [0, 0], sizes = [8, 128], strides = [1, 1]} : vector<8x384xf32> to vector<8x128xf32>
    %192 = vector.extract_strided_slice %187 {offsets = [0, 0], sizes = [8, 128], strides = [1, 1]} : vector<8x384xf32> to vector<8x128xf32>
    %193 = arith.addf %191, %192 : vector<8x128xf32>
    %194 = arith.negf %193 : vector<8x128xf32>
    %195 = math.exp %194 : vector<8x128xf32>
    %cst_62 = arith.constant 1.000000e+00 : f32
    %196 = vector.broadcast %cst_62 : f32 to vector<8x128xf32>
    %197 = arith.addf %196, %195 : vector<8x128xf32>
    %198 = arith.divf %196, %197 : vector<8x128xf32>
    %199 = vector.extract_strided_slice %190 {offsets = [0, 128], sizes = [8, 128], strides = [1, 1]} : vector<8x384xf32> to vector<8x128xf32>
    %200 = vector.extract_strided_slice %187 {offsets = [0, 128], sizes = [8, 128], strides = [1, 1]} : vector<8x384xf32> to vector<8x128xf32>
    %201 = arith.addf %199, %200 : vector<8x128xf32>
    %202 = arith.negf %201 : vector<8x128xf32>
    %203 = math.exp %202 : vector<8x128xf32>
    %cst_63 = arith.constant 1.000000e+00 : f32
    %204 = vector.broadcast %cst_63 : f32 to vector<8x128xf32>
    %205 = arith.addf %204, %203 : vector<8x128xf32>
    %206 = arith.divf %204, %205 : vector<8x128xf32>
    %207 = vector.extract_strided_slice %190 {offsets = [0, 256], sizes = [8, 128], strides = [1, 1]} : vector<8x384xf32> to vector<8x128xf32>
    %208 = vector.extract_strided_slice %187 {offsets = [0, 256], sizes = [8, 128], strides = [1, 1]} : vector<8x384xf32> to vector<8x128xf32>
    %209 = vector.broadcast %9 : vector<1x128xf32> to vector<8x128xf32>
    %210 = arith.addf %208, %209 : vector<8x128xf32>
    %211 = arith.mulf %198, %210 : vector<8x128xf32>
    %212 = arith.addf %207, %211 : vector<8x128xf32>
    %213 = math.tanh %212 : vector<8x128xf32>
    %214 = arith.subf %181, %213 : vector<8x128xf32>
    %215 = arith.mulf %206, %214 : vector<8x128xf32>
    %216 = arith.addf %213, %215 : vector<8x128xf32>
    %217 = arith.index_cast %c5_i32 : i32 to index
    %c0_64 = arith.constant 0 : index
    %c0_65 = arith.constant 0 : index
    %218 = vector.load %arg12[%217, %c0_64, %c0_65] : memref<8x8x128xf32, #tpu.memory_space<vmem>>, vector<1x8x128xf32>
    %219 = vector.shape_cast %218 : vector<1x8x128xf32> to vector<8x128xf32>
    %220 = vector.shape_cast %216 : vector<8x128xf32> to vector<1x8x128xf32>
    tpu.vector_store %arg12[%217, %c0_64, %c0_65], %220 {strides = array<i32>} : memref<8x8x128xf32, #tpu.memory_space<vmem>>, vector<1x8x128xf32>,
    %c6_i32 = arith.constant 6 : i32
    %c0_66 = arith.constant 0 : index
    %c0_67 = arith.constant 0 : index
    %221 = vector.load %arg2[%c0_66, %c0_67] : memref<128x384xf32, #tpu.memory_space<vmem>>, vector<128x384xf32>
    %cst_68 = arith.constant dense<0.000000e+00> : vector<8x384xf32>
    %222 = tpu.matmul %216, %221, %cst_68 {dimension_numbers = #tpu.dot_dimension_numbers<[1], [0], [0], [1], [0, 0, 1, 1], [], []>} : vector<8x128xf32>, vector<128x384xf32>, vector<8x384xf32> -> vector<8x384xf32>
    %223 = arith.index_cast %c6_i32 : i32 to index
    %c0_69 = arith.constant 0 : index
    %c0_70 = arith.constant 0 : index
    %224 = vector.load %arg13[%223, %c0_69, %c0_70] : memref<8x8x384xf32, #tpu.memory_space<vmem>>, vector<1x8x384xf32>
    %225 = vector.shape_cast %224 : vector<1x8x384xf32> to vector<8x384xf32>
    %226 = vector.extract_strided_slice %225 {offsets = [0, 0], sizes = [8, 128], strides = [1, 1]} : vector<8x384xf32> to vector<8x128xf32>
    %227 = vector.extract_strided_slice %222 {offsets = [0, 0], sizes = [8, 128], strides = [1, 1]} : vector<8x384xf32> to vector<8x128xf32>
    %228 = arith.addf %226, %227 : vector<8x128xf32>
    %229 = arith.negf %228 : vector<8x128xf32>
    %230 = math.exp %229 : vector<8x128xf32>
    %cst_71 = arith.constant 1.000000e+00 : f32
    %231 = vector.broadcast %cst_71 : f32 to vector<8x128xf32>
    %232 = arith.addf %231, %230 : vector<8x128xf32>
    %233 = arith.divf %231, %232 : vector<8x128xf32>
    %234 = vector.extract_strided_slice %225 {offsets = [0, 128], sizes = [8, 128], strides = [1, 1]} : vector<8x384xf32> to vector<8x128xf32>
    %235 = vector.extract_strided_slice %222 {offsets = [0, 128], sizes = [8, 128], strides = [1, 1]} : vector<8x384xf32> to vector<8x128xf32>
    %236 = arith.addf %234, %235 : vector<8x128xf32>
    %237 = arith.negf %236 : vector<8x128xf32>
    %238 = math.exp %237 : vector<8x128xf32>
    %cst_72 = arith.constant 1.000000e+00 : f32
    %239 = vector.broadcast %cst_72 : f32 to vector<8x128xf32>
    %240 = arith.addf %239, %238 : vector<8x128xf32>
    %241 = arith.divf %239, %240 : vector<8x128xf32>
    %242 = vector.extract_strided_slice %225 {offsets = [0, 256], sizes = [8, 128], strides = [1, 1]} : vector<8x384xf32> to vector<8x128xf32>
    %243 = vector.extract_strided_slice %222 {offsets = [0, 256], sizes = [8, 128], strides = [1, 1]} : vector<8x384xf32> to vector<8x128xf32>
    %244 = vector.broadcast %9 : vector<1x128xf32> to vector<8x128xf32>
    %245 = arith.addf %243, %244 : vector<8x128xf32>
    %246 = arith.mulf %233, %245 : vector<8x128xf32>
    %247 = arith.addf %242, %246 : vector<8x128xf32>
    %248 = math.tanh %247 : vector<8x128xf32>
    %249 = arith.subf %216, %248 : vector<8x128xf32>
    %250 = arith.mulf %241, %249 : vector<8x128xf32>
    %251 = arith.addf %248, %250 : vector<8x128xf32>
    %252 = arith.index_cast %c6_i32 : i32 to index
    %c0_73 = arith.constant 0 : index
    %c0_74 = arith.constant 0 : index
    %253 = vector.load %arg12[%252, %c0_73, %c0_74] : memref<8x8x128xf32, #tpu.memory_space<vmem>>, vector<1x8x128xf32>
    %254 = vector.shape_cast %253 : vector<1x8x128xf32> to vector<8x128xf32>
    %255 = vector.shape_cast %251 : vector<8x128xf32> to vector<1x8x128xf32>
    tpu.vector_store %arg12[%252, %c0_73, %c0_74], %255 {strides = array<i32>} : memref<8x8x128xf32, #tpu.memory_space<vmem>>, vector<1x8x128xf32>,
    %c7_i32 = arith.constant 7 : i32
    %c0_75 = arith.constant 0 : index
    %c0_76 = arith.constant 0 : index
    %256 = vector.load %arg2[%c0_75, %c0_76] : memref<128x384xf32, #tpu.memory_space<vmem>>, vector<128x384xf32>
    %cst_77 = arith.constant dense<0.000000e+00> : vector<8x384xf32>
    %257 = tpu.matmul %251, %256, %cst_77 {dimension_numbers = #tpu.dot_dimension_numbers<[1], [0], [0], [1], [0, 0, 1, 1], [], []>} : vector<8x128xf32>, vector<128x384xf32>, vector<8x384xf32> -> vector<8x384xf32>
    %258 = arith.index_cast %c7_i32 : i32 to index
    %c0_78 = arith.constant 0 : index
    %c0_79 = arith.constant 0 : index
    %259 = vector.load %arg13[%258, %c0_78, %c0_79] : memref<8x8x384xf32, #tpu.memory_space<vmem>>, vector<1x8x384xf32>
    %260 = vector.shape_cast %259 : vector<1x8x384xf32> to vector<8x384xf32>
    %261 = vector.extract_strided_slice %260 {offsets = [0, 0], sizes = [8, 128], strides = [1, 1]} : vector<8x384xf32> to vector<8x128xf32>
    %262 = vector.extract_strided_slice %257 {offsets = [0, 0], sizes = [8, 128], strides = [1, 1]} : vector<8x384xf32> to vector<8x128xf32>
    %263 = arith.addf %261, %262 : vector<8x128xf32>
    %264 = arith.negf %263 : vector<8x128xf32>
    %265 = math.exp %264 : vector<8x128xf32>
    %cst_80 = arith.constant 1.000000e+00 : f32
    %266 = vector.broadcast %cst_80 : f32 to vector<8x128xf32>
    %267 = arith.addf %266, %265 : vector<8x128xf32>
    %268 = arith.divf %266, %267 : vector<8x128xf32>
    %269 = vector.extract_strided_slice %260 {offsets = [0, 128], sizes = [8, 128], strides = [1, 1]} : vector<8x384xf32> to vector<8x128xf32>
    %270 = vector.extract_strided_slice %257 {offsets = [0, 128], sizes = [8, 128], strides = [1, 1]} : vector<8x384xf32> to vector<8x128xf32>
    %271 = arith.addf %269, %270 : vector<8x128xf32>
    %272 = arith.negf %271 : vector<8x128xf32>
    %273 = math.exp %272 : vector<8x128xf32>
    %cst_81 = arith.constant 1.000000e+00 : f32
    %274 = vector.broadcast %cst_81 : f32 to vector<8x128xf32>
    %275 = arith.addf %274, %273 : vector<8x128xf32>
    %276 = arith.divf %274, %275 : vector<8x128xf32>
    %277 = vector.extract_strided_slice %260 {offsets = [0, 256], sizes = [8, 128], strides = [1, 1]} : vector<8x384xf32> to vector<8x128xf32>
    %278 = vector.extract_strided_slice %257 {offsets = [0, 256], sizes = [8, 128], strides = [1, 1]} : vector<8x384xf32> to vector<8x128xf32>
    %279 = vector.broadcast %9 : vector<1x128xf32> to vector<8x128xf32>
    %280 = arith.addf %278, %279 : vector<8x128xf32>
    %281 = arith.mulf %268, %280 : vector<8x128xf32>
    %282 = arith.addf %277, %281 : vector<8x128xf32>
    %283 = math.tanh %282 : vector<8x128xf32>
    %284 = arith.subf %251, %283 : vector<8x128xf32>
    %285 = arith.mulf %276, %284 : vector<8x128xf32>
    %286 = arith.addf %283, %285 : vector<8x128xf32>
    %287 = arith.index_cast %c7_i32 : i32 to index
    %c0_82 = arith.constant 0 : index
    %c0_83 = arith.constant 0 : index
    %288 = vector.load %arg12[%287, %c0_82, %c0_83] : memref<8x8x128xf32, #tpu.memory_space<vmem>>, vector<1x8x128xf32>
    %289 = vector.shape_cast %288 : vector<1x8x128xf32> to vector<8x128xf32>
    %290 = vector.shape_cast %286 : vector<8x128xf32> to vector<1x8x128xf32>
    tpu.vector_store %arg12[%287, %c0_82, %c0_83], %290 {strides = array<i32>} : memref<8x8x128xf32, #tpu.memory_space<vmem>>, vector<1x8x128xf32>,
    %c8_i32 = arith.constant 8 : i32
    %c0_84 = arith.constant 0 : index
    %c0_85 = arith.constant 0 : index
    %291 = vector.load %arg7[%c0_84, %c0_85] : memref<1x384xf32, #tpu.memory_space<vmem>>, vector<1x384xf32>
    %c0_86 = arith.constant 0 : index
    %c0_87 = arith.constant 0 : index
    %c0_88 = arith.constant 0 : index
    %292 = vector.load %arg12[%c0_86, %c0_87, %c0_88] : memref<8x8x128xf32, #tpu.memory_space<vmem>>, vector<8x8x128xf32>
    %293 = vector.shape_cast %292 : vector<8x8x128xf32> to vector<64x128xf32>
    %c0_89 = arith.constant 0 : index
    %c0_90 = arith.constant 0 : index
    %294 = vector.load %arg5[%c0_89, %c0_90] : memref<128x384xf32, #tpu.memory_space<vmem>>, vector<128x384xf32>
    %cst_91 = arith.constant dense<0.000000e+00> : vector<64x384xf32>
    %295 = tpu.matmul %293, %294, %cst_91 {dimension_numbers = #tpu.dot_dimension_numbers<[1], [0], [0], [1], [0, 0, 1, 1], [], []>} : vector<64x128xf32>, vector<128x384xf32>, vector<64x384xf32> -> vector<64x384xf32>
    %296 = vector.broadcast %291 : vector<1x384xf32> to vector<64x384xf32>
    %297 = arith.addf %295, %296 : vector<64x384xf32>
    %298 = vector.shape_cast %297 : vector<64x384xf32> to vector<8x8x384xf32>
    %c0_92 = arith.constant 0 : index
    %c0_93 = arith.constant 0 : index
    %c0_94 = arith.constant 0 : index
    %299 = vector.load %arg13[%c0_92, %c0_93, %c0_94] : memref<8x8x384xf32, #tpu.memory_space<vmem>>, vector<8x8x384xf32>
    tpu.vector_store %arg13[%c0_92, %c0_93, %c0_94], %298 {strides = array<i32>} : memref<8x8x384xf32, #tpu.memory_space<vmem>>, vector<8x8x384xf32>,
    %c0_95 = arith.constant 0 : index
    %c0_96 = arith.constant 0 : index
    %300 = vector.load %arg8[%c0_95, %c0_96] : memref<1x128xf32, #tpu.memory_space<vmem>>, vector<1x128xf32>
    %cst_97 = arith.constant 0.000000e+00 : f32
    %301 = vector.broadcast %cst_97 : f32 to vector<8x128xf32>
    %c0_i32_98 = arith.constant 0 : i32
    %c0_99 = arith.constant 0 : index
    %c0_100 = arith.constant 0 : index
    %302 = vector.load %arg6[%c0_99, %c0_100] : memref<128x384xf32, #tpu.memory_space<vmem>>, vector<128x384xf32>
    %cst_101 = arith.constant dense<0.000000e+00> : vector<8x384xf32>
    %303 = tpu.matmul %301, %302, %cst_101 {dimension_numbers = #tpu.dot_dimension_numbers<[1], [0], [0], [1], [0, 0, 1, 1], [], []>} : vector<8x128xf32>, vector<128x384xf32>, vector<8x384xf32> -> vector<8x384xf32>
    %304 = arith.index_cast %c0_i32_98 : i32 to index
    %c0_102 = arith.constant 0 : index
    %c0_103 = arith.constant 0 : index
    %305 = vector.load %arg13[%304, %c0_102, %c0_103] : memref<8x8x384xf32, #tpu.memory_space<vmem>>, vector<1x8x384xf32>
    %306 = vector.shape_cast %305 : vector<1x8x384xf32> to vector<8x384xf32>
    %307 = vector.extract_strided_slice %306 {offsets = [0, 0], sizes = [8, 128], strides = [1, 1]} : vector<8x384xf32> to vector<8x128xf32>
    %308 = vector.extract_strided_slice %303 {offsets = [0, 0], sizes = [8, 128], strides = [1, 1]} : vector<8x384xf32> to vector<8x128xf32>
    %309 = arith.addf %307, %308 : vector<8x128xf32>
    %310 = arith.negf %309 : vector<8x128xf32>
    %311 = math.exp %310 : vector<8x128xf32>
    %cst_104 = arith.constant 1.000000e+00 : f32
    %312 = vector.broadcast %cst_104 : f32 to vector<8x128xf32>
    %313 = arith.addf %312, %311 : vector<8x128xf32>
    %314 = arith.divf %312, %313 : vector<8x128xf32>
    %315 = vector.extract_strided_slice %306 {offsets = [0, 128], sizes = [8, 128], strides = [1, 1]} : vector<8x384xf32> to vector<8x128xf32>
    %316 = vector.extract_strided_slice %303 {offsets = [0, 128], sizes = [8, 128], strides = [1, 1]} : vector<8x384xf32> to vector<8x128xf32>
    %317 = arith.addf %315, %316 : vector<8x128xf32>
    %318 = arith.negf %317 : vector<8x128xf32>
    %319 = math.exp %318 : vector<8x128xf32>
    %cst_105 = arith.constant 1.000000e+00 : f32
    %320 = vector.broadcast %cst_105 : f32 to vector<8x128xf32>
    %321 = arith.addf %320, %319 : vector<8x128xf32>
    %322 = arith.divf %320, %321 : vector<8x128xf32>
    %323 = vector.extract_strided_slice %306 {offsets = [0, 256], sizes = [8, 128], strides = [1, 1]} : vector<8x384xf32> to vector<8x128xf32>
    %324 = vector.extract_strided_slice %303 {offsets = [0, 256], sizes = [8, 128], strides = [1, 1]} : vector<8x384xf32> to vector<8x128xf32>
    %325 = vector.broadcast %300 : vector<1x128xf32> to vector<8x128xf32>
    %326 = arith.addf %324, %325 : vector<8x128xf32>
    %327 = arith.mulf %314, %326 : vector<8x128xf32>
    %328 = arith.addf %323, %327 : vector<8x128xf32>
    %329 = math.tanh %328 : vector<8x128xf32>
    %330 = arith.subf %301, %329 : vector<8x128xf32>
    %331 = arith.mulf %322, %330 : vector<8x128xf32>
    %332 = arith.addf %329, %331 : vector<8x128xf32>
    %c1_i32_106 = arith.constant 1 : i32
    %c0_107 = arith.constant 0 : index
    %c0_108 = arith.constant 0 : index
    %333 = vector.load %arg6[%c0_107, %c0_108] : memref<128x384xf32, #tpu.memory_space<vmem>>, vector<128x384xf32>
    %cst_109 = arith.constant dense<0.000000e+00> : vector<8x384xf32>
    %334 = tpu.matmul %332, %333, %cst_109 {dimension_numbers = #tpu.dot_dimension_numbers<[1], [0], [0], [1], [0, 0, 1, 1], [], []>} : vector<8x128xf32>, vector<128x384xf32>, vector<8x384xf32> -> vector<8x384xf32>
    %335 = arith.index_cast %c1_i32_106 : i32 to index
    %c0_110 = arith.constant 0 : index
    %c0_111 = arith.constant 0 : index
    %336 = vector.load %arg13[%335, %c0_110, %c0_111] : memref<8x8x384xf32, #tpu.memory_space<vmem>>, vector<1x8x384xf32>
    %337 = vector.shape_cast %336 : vector<1x8x384xf32> to vector<8x384xf32>
    %338 = vector.extract_strided_slice %337 {offsets = [0, 0], sizes = [8, 128], strides = [1, 1]} : vector<8x384xf32> to vector<8x128xf32>
    %339 = vector.extract_strided_slice %334 {offsets = [0, 0], sizes = [8, 128], strides = [1, 1]} : vector<8x384xf32> to vector<8x128xf32>
    %340 = arith.addf %338, %339 : vector<8x128xf32>
    %341 = arith.negf %340 : vector<8x128xf32>
    %342 = math.exp %341 : vector<8x128xf32>
    %cst_112 = arith.constant 1.000000e+00 : f32
    %343 = vector.broadcast %cst_112 : f32 to vector<8x128xf32>
    %344 = arith.addf %343, %342 : vector<8x128xf32>
    %345 = arith.divf %343, %344 : vector<8x128xf32>
    %346 = vector.extract_strided_slice %337 {offsets = [0, 128], sizes = [8, 128], strides = [1, 1]} : vector<8x384xf32> to vector<8x128xf32>
    %347 = vector.extract_strided_slice %334 {offsets = [0, 128], sizes = [8, 128], strides = [1, 1]} : vector<8x384xf32> to vector<8x128xf32>
    %348 = arith.addf %346, %347 : vector<8x128xf32>
    %349 = arith.negf %348 : vector<8x128xf32>
    %350 = math.exp %349 : vector<8x128xf32>
    %cst_113 = arith.constant 1.000000e+00 : f32
    %351 = vector.broadcast %cst_113 : f32 to vector<8x128xf32>
    %352 = arith.addf %351, %350 : vector<8x128xf32>
    %353 = arith.divf %351, %352 : vector<8x128xf32>
    %354 = vector.extract_strided_slice %337 {offsets = [0, 256], sizes = [8, 128], strides = [1, 1]} : vector<8x384xf32> to vector<8x128xf32>
    %355 = vector.extract_strided_slice %334 {offsets = [0, 256], sizes = [8, 128], strides = [1, 1]} : vector<8x384xf32> to vector<8x128xf32>
    %356 = vector.broadcast %300 : vector<1x128xf32> to vector<8x128xf32>
    %357 = arith.addf %355, %356 : vector<8x128xf32>
    %358 = arith.mulf %345, %357 : vector<8x128xf32>
    %359 = arith.addf %354, %358 : vector<8x128xf32>
    %360 = math.tanh %359 : vector<8x128xf32>
    %361 = arith.subf %332, %360 : vector<8x128xf32>
    %362 = arith.mulf %353, %361 : vector<8x128xf32>
    %363 = arith.addf %360, %362 : vector<8x128xf32>
    %c2_i32_114 = arith.constant 2 : i32
    %c0_115 = arith.constant 0 : index
    %c0_116 = arith.constant 0 : index
    %364 = vector.load %arg6[%c0_115, %c0_116] : memref<128x384xf32, #tpu.memory_space<vmem>>, vector<128x384xf32>
    %cst_117 = arith.constant dense<0.000000e+00> : vector<8x384xf32>
    %365 = tpu.matmul %363, %364, %cst_117 {dimension_numbers = #tpu.dot_dimension_numbers<[1], [0], [0], [1], [0, 0, 1, 1], [], []>} : vector<8x128xf32>, vector<128x384xf32>, vector<8x384xf32> -> vector<8x384xf32>
    %366 = arith.index_cast %c2_i32_114 : i32 to index
    %c0_118 = arith.constant 0 : index
    %c0_119 = arith.constant 0 : index
    %367 = vector.load %arg13[%366, %c0_118, %c0_119] : memref<8x8x384xf32, #tpu.memory_space<vmem>>, vector<1x8x384xf32>
    %368 = vector.shape_cast %367 : vector<1x8x384xf32> to vector<8x384xf32>
    %369 = vector.extract_strided_slice %368 {offsets = [0, 0], sizes = [8, 128], strides = [1, 1]} : vector<8x384xf32> to vector<8x128xf32>
    %370 = vector.extract_strided_slice %365 {offsets = [0, 0], sizes = [8, 128], strides = [1, 1]} : vector<8x384xf32> to vector<8x128xf32>
    %371 = arith.addf %369, %370 : vector<8x128xf32>
    %372 = arith.negf %371 : vector<8x128xf32>
    %373 = math.exp %372 : vector<8x128xf32>
    %cst_120 = arith.constant 1.000000e+00 : f32
    %374 = vector.broadcast %cst_120 : f32 to vector<8x128xf32>
    %375 = arith.addf %374, %373 : vector<8x128xf32>
    %376 = arith.divf %374, %375 : vector<8x128xf32>
    %377 = vector.extract_strided_slice %368 {offsets = [0, 128], sizes = [8, 128], strides = [1, 1]} : vector<8x384xf32> to vector<8x128xf32>
    %378 = vector.extract_strided_slice %365 {offsets = [0, 128], sizes = [8, 128], strides = [1, 1]} : vector<8x384xf32> to vector<8x128xf32>
    %379 = arith.addf %377, %378 : vector<8x128xf32>
    %380 = arith.negf %379 : vector<8x128xf32>
    %381 = math.exp %380 : vector<8x128xf32>
    %cst_121 = arith.constant 1.000000e+00 : f32
    %382 = vector.broadcast %cst_121 : f32 to vector<8x128xf32>
    %383 = arith.addf %382, %381 : vector<8x128xf32>
    %384 = arith.divf %382, %383 : vector<8x128xf32>
    %385 = vector.extract_strided_slice %368 {offsets = [0, 256], sizes = [8, 128], strides = [1, 1]} : vector<8x384xf32> to vector<8x128xf32>
    %386 = vector.extract_strided_slice %365 {offsets = [0, 256], sizes = [8, 128], strides = [1, 1]} : vector<8x384xf32> to vector<8x128xf32>
    %387 = vector.broadcast %300 : vector<1x128xf32> to vector<8x128xf32>
    %388 = arith.addf %386, %387 : vector<8x128xf32>
    %389 = arith.mulf %376, %388 : vector<8x128xf32>
    %390 = arith.addf %385, %389 : vector<8x128xf32>
    %391 = math.tanh %390 : vector<8x128xf32>
    %392 = arith.subf %363, %391 : vector<8x128xf32>
    %393 = arith.mulf %384, %392 : vector<8x128xf32>
    %394 = arith.addf %391, %393 : vector<8x128xf32>
    %c3_i32_122 = arith.constant 3 : i32
    %c0_123 = arith.constant 0 : index
    %c0_124 = arith.constant 0 : index
    %395 = vector.load %arg6[%c0_123, %c0_124] : memref<128x384xf32, #tpu.memory_space<vmem>>, vector<128x384xf32>
    %cst_125 = arith.constant dense<0.000000e+00> : vector<8x384xf32>
    %396 = tpu.matmul %394, %395, %cst_125 {dimension_numbers = #tpu.dot_dimension_numbers<[1], [0], [0], [1], [0, 0, 1, 1], [], []>} : vector<8x128xf32>, vector<128x384xf32>, vector<8x384xf32> -> vector<8x384xf32>
    %397 = arith.index_cast %c3_i32_122 : i32 to index
    %c0_126 = arith.constant 0 : index
    %c0_127 = arith.constant 0 : index
    %398 = vector.load %arg13[%397, %c0_126, %c0_127] : memref<8x8x384xf32, #tpu.memory_space<vmem>>, vector<1x8x384xf32>
    %399 = vector.shape_cast %398 : vector<1x8x384xf32> to vector<8x384xf32>
    %400 = vector.extract_strided_slice %399 {offsets = [0, 0], sizes = [8, 128], strides = [1, 1]} : vector<8x384xf32> to vector<8x128xf32>
    %401 = vector.extract_strided_slice %396 {offsets = [0, 0], sizes = [8, 128], strides = [1, 1]} : vector<8x384xf32> to vector<8x128xf32>
    %402 = arith.addf %400, %401 : vector<8x128xf32>
    %403 = arith.negf %402 : vector<8x128xf32>
    %404 = math.exp %403 : vector<8x128xf32>
    %cst_128 = arith.constant 1.000000e+00 : f32
    %405 = vector.broadcast %cst_128 : f32 to vector<8x128xf32>
    %406 = arith.addf %405, %404 : vector<8x128xf32>
    %407 = arith.divf %405, %406 : vector<8x128xf32>
    %408 = vector.extract_strided_slice %399 {offsets = [0, 128], sizes = [8, 128], strides = [1, 1]} : vector<8x384xf32> to vector<8x128xf32>
    %409 = vector.extract_strided_slice %396 {offsets = [0, 128], sizes = [8, 128], strides = [1, 1]} : vector<8x384xf32> to vector<8x128xf32>
    %410 = arith.addf %408, %409 : vector<8x128xf32>
    %411 = arith.negf %410 : vector<8x128xf32>
    %412 = math.exp %411 : vector<8x128xf32>
    %cst_129 = arith.constant 1.000000e+00 : f32
    %413 = vector.broadcast %cst_129 : f32 to vector<8x128xf32>
    %414 = arith.addf %413, %412 : vector<8x128xf32>
    %415 = arith.divf %413, %414 : vector<8x128xf32>
    %416 = vector.extract_strided_slice %399 {offsets = [0, 256], sizes = [8, 128], strides = [1, 1]} : vector<8x384xf32> to vector<8x128xf32>
    %417 = vector.extract_strided_slice %396 {offsets = [0, 256], sizes = [8, 128], strides = [1, 1]} : vector<8x384xf32> to vector<8x128xf32>
    %418 = vector.broadcast %300 : vector<1x128xf32> to vector<8x128xf32>
    %419 = arith.addf %417, %418 : vector<8x128xf32>
    %420 = arith.mulf %407, %419 : vector<8x128xf32>
    %421 = arith.addf %416, %420 : vector<8x128xf32>
    %422 = math.tanh %421 : vector<8x128xf32>
    %423 = arith.subf %394, %422 : vector<8x128xf32>
    %424 = arith.mulf %415, %423 : vector<8x128xf32>
    %425 = arith.addf %422, %424 : vector<8x128xf32>
    %c4_i32_130 = arith.constant 4 : i32
    %c0_131 = arith.constant 0 : index
    %c0_132 = arith.constant 0 : index
    %426 = vector.load %arg6[%c0_131, %c0_132] : memref<128x384xf32, #tpu.memory_space<vmem>>, vector<128x384xf32>
    %cst_133 = arith.constant dense<0.000000e+00> : vector<8x384xf32>
    %427 = tpu.matmul %425, %426, %cst_133 {dimension_numbers = #tpu.dot_dimension_numbers<[1], [0], [0], [1], [0, 0, 1, 1], [], []>} : vector<8x128xf32>, vector<128x384xf32>, vector<8x384xf32> -> vector<8x384xf32>
    %428 = arith.index_cast %c4_i32_130 : i32 to index
    %c0_134 = arith.constant 0 : index
    %c0_135 = arith.constant 0 : index
    %429 = vector.load %arg13[%428, %c0_134, %c0_135] : memref<8x8x384xf32, #tpu.memory_space<vmem>>, vector<1x8x384xf32>
    %430 = vector.shape_cast %429 : vector<1x8x384xf32> to vector<8x384xf32>
    %431 = vector.extract_strided_slice %430 {offsets = [0, 0], sizes = [8, 128], strides = [1, 1]} : vector<8x384xf32> to vector<8x128xf32>
    %432 = vector.extract_strided_slice %427 {offsets = [0, 0], sizes = [8, 128], strides = [1, 1]} : vector<8x384xf32> to vector<8x128xf32>
    %433 = arith.addf %431, %432 : vector<8x128xf32>
    %434 = arith.negf %433 : vector<8x128xf32>
    %435 = math.exp %434 : vector<8x128xf32>
    %cst_136 = arith.constant 1.000000e+00 : f32
    %436 = vector.broadcast %cst_136 : f32 to vector<8x128xf32>
    %437 = arith.addf %436, %435 : vector<8x128xf32>
    %438 = arith.divf %436, %437 : vector<8x128xf32>
    %439 = vector.extract_strided_slice %430 {offsets = [0, 128], sizes = [8, 128], strides = [1, 1]} : vector<8x384xf32> to vector<8x128xf32>
    %440 = vector.extract_strided_slice %427 {offsets = [0, 128], sizes = [8, 128], strides = [1, 1]} : vector<8x384xf32> to vector<8x128xf32>
    %441 = arith.addf %439, %440 : vector<8x128xf32>
    %442 = arith.negf %441 : vector<8x128xf32>
    %443 = math.exp %442 : vector<8x128xf32>
    %cst_137 = arith.constant 1.000000e+00 : f32
    %444 = vector.broadcast %cst_137 : f32 to vector<8x128xf32>
    %445 = arith.addf %444, %443 : vector<8x128xf32>
    %446 = arith.divf %444, %445 : vector<8x128xf32>
    %447 = vector.extract_strided_slice %430 {offsets = [0, 256], sizes = [8, 128], strides = [1, 1]} : vector<8x384xf32> to vector<8x128xf32>
    %448 = vector.extract_strided_slice %427 {offsets = [0, 256], sizes = [8, 128], strides = [1, 1]} : vector<8x384xf32> to vector<8x128xf32>
    %449 = vector.broadcast %300 : vector<1x128xf32> to vector<8x128xf32>
    %450 = arith.addf %448, %449 : vector<8x128xf32>
    %451 = arith.mulf %438, %450 : vector<8x128xf32>
    %452 = arith.addf %447, %451 : vector<8x128xf32>
    %453 = math.tanh %452 : vector<8x128xf32>
    %454 = arith.subf %425, %453 : vector<8x128xf32>
    %455 = arith.mulf %446, %454 : vector<8x128xf32>
    %456 = arith.addf %453, %455 : vector<8x128xf32>
    %c5_i32_138 = arith.constant 5 : i32
    %c0_139 = arith.constant 0 : index
    %c0_140 = arith.constant 0 : index
    %457 = vector.load %arg6[%c0_139, %c0_140] : memref<128x384xf32, #tpu.memory_space<vmem>>, vector<128x384xf32>
    %cst_141 = arith.constant dense<0.000000e+00> : vector<8x384xf32>
    %458 = tpu.matmul %456, %457, %cst_141 {dimension_numbers = #tpu.dot_dimension_numbers<[1], [0], [0], [1], [0, 0, 1, 1], [], []>} : vector<8x128xf32>, vector<128x384xf32>, vector<8x384xf32> -> vector<8x384xf32>
    %459 = arith.index_cast %c5_i32_138 : i32 to index
    %c0_142 = arith.constant 0 : index
    %c0_143 = arith.constant 0 : index
    %460 = vector.load %arg13[%459, %c0_142, %c0_143] : memref<8x8x384xf32, #tpu.memory_space<vmem>>, vector<1x8x384xf32>
    %461 = vector.shape_cast %460 : vector<1x8x384xf32> to vector<8x384xf32>
    %462 = vector.extract_strided_slice %461 {offsets = [0, 0], sizes = [8, 128], strides = [1, 1]} : vector<8x384xf32> to vector<8x128xf32>
    %463 = vector.extract_strided_slice %458 {offsets = [0, 0], sizes = [8, 128], strides = [1, 1]} : vector<8x384xf32> to vector<8x128xf32>
    %464 = arith.addf %462, %463 : vector<8x128xf32>
    %465 = arith.negf %464 : vector<8x128xf32>
    %466 = math.exp %465 : vector<8x128xf32>
    %cst_144 = arith.constant 1.000000e+00 : f32
    %467 = vector.broadcast %cst_144 : f32 to vector<8x128xf32>
    %468 = arith.addf %467, %466 : vector<8x128xf32>
    %469 = arith.divf %467, %468 : vector<8x128xf32>
    %470 = vector.extract_strided_slice %461 {offsets = [0, 128], sizes = [8, 128], strides = [1, 1]} : vector<8x384xf32> to vector<8x128xf32>
    %471 = vector.extract_strided_slice %458 {offsets = [0, 128], sizes = [8, 128], strides = [1, 1]} : vector<8x384xf32> to vector<8x128xf32>
    %472 = arith.addf %470, %471 : vector<8x128xf32>
    %473 = arith.negf %472 : vector<8x128xf32>
    %474 = math.exp %473 : vector<8x128xf32>
    %cst_145 = arith.constant 1.000000e+00 : f32
    %475 = vector.broadcast %cst_145 : f32 to vector<8x128xf32>
    %476 = arith.addf %475, %474 : vector<8x128xf32>
    %477 = arith.divf %475, %476 : vector<8x128xf32>
    %478 = vector.extract_strided_slice %461 {offsets = [0, 256], sizes = [8, 128], strides = [1, 1]} : vector<8x384xf32> to vector<8x128xf32>
    %479 = vector.extract_strided_slice %458 {offsets = [0, 256], sizes = [8, 128], strides = [1, 1]} : vector<8x384xf32> to vector<8x128xf32>
    %480 = vector.broadcast %300 : vector<1x128xf32> to vector<8x128xf32>
    %481 = arith.addf %479, %480 : vector<8x128xf32>
    %482 = arith.mulf %469, %481 : vector<8x128xf32>
    %483 = arith.addf %478, %482 : vector<8x128xf32>
    %484 = math.tanh %483 : vector<8x128xf32>
    %485 = arith.subf %456, %484 : vector<8x128xf32>
    %486 = arith.mulf %477, %485 : vector<8x128xf32>
    %487 = arith.addf %484, %486 : vector<8x128xf32>
    %c6_i32_146 = arith.constant 6 : i32
    %c0_147 = arith.constant 0 : index
    %c0_148 = arith.constant 0 : index
    %488 = vector.load %arg6[%c0_147, %c0_148] : memref<128x384xf32, #tpu.memory_space<vmem>>, vector<128x384xf32>
    %cst_149 = arith.constant dense<0.000000e+00> : vector<8x384xf32>
    %489 = tpu.matmul %487, %488, %cst_149 {dimension_numbers = #tpu.dot_dimension_numbers<[1], [0], [0], [1], [0, 0, 1, 1], [], []>} : vector<8x128xf32>, vector<128x384xf32>, vector<8x384xf32> -> vector<8x384xf32>
    %490 = arith.index_cast %c6_i32_146 : i32 to index
    %c0_150 = arith.constant 0 : index
    %c0_151 = arith.constant 0 : index
    %491 = vector.load %arg13[%490, %c0_150, %c0_151] : memref<8x8x384xf32, #tpu.memory_space<vmem>>, vector<1x8x384xf32>
    %492 = vector.shape_cast %491 : vector<1x8x384xf32> to vector<8x384xf32>
    %493 = vector.extract_strided_slice %492 {offsets = [0, 0], sizes = [8, 128], strides = [1, 1]} : vector<8x384xf32> to vector<8x128xf32>
    %494 = vector.extract_strided_slice %489 {offsets = [0, 0], sizes = [8, 128], strides = [1, 1]} : vector<8x384xf32> to vector<8x128xf32>
    %495 = arith.addf %493, %494 : vector<8x128xf32>
    %496 = arith.negf %495 : vector<8x128xf32>
    %497 = math.exp %496 : vector<8x128xf32>
    %cst_152 = arith.constant 1.000000e+00 : f32
    %498 = vector.broadcast %cst_152 : f32 to vector<8x128xf32>
    %499 = arith.addf %498, %497 : vector<8x128xf32>
    %500 = arith.divf %498, %499 : vector<8x128xf32>
    %501 = vector.extract_strided_slice %492 {offsets = [0, 128], sizes = [8, 128], strides = [1, 1]} : vector<8x384xf32> to vector<8x128xf32>
    %502 = vector.extract_strided_slice %489 {offsets = [0, 128], sizes = [8, 128], strides = [1, 1]} : vector<8x384xf32> to vector<8x128xf32>
    %503 = arith.addf %501, %502 : vector<8x128xf32>
    %504 = arith.negf %503 : vector<8x128xf32>
    %505 = math.exp %504 : vector<8x128xf32>
    %cst_153 = arith.constant 1.000000e+00 : f32
    %506 = vector.broadcast %cst_153 : f32 to vector<8x128xf32>
    %507 = arith.addf %506, %505 : vector<8x128xf32>
    %508 = arith.divf %506, %507 : vector<8x128xf32>
    %509 = vector.extract_strided_slice %492 {offsets = [0, 256], sizes = [8, 128], strides = [1, 1]} : vector<8x384xf32> to vector<8x128xf32>
    %510 = vector.extract_strided_slice %489 {offsets = [0, 256], sizes = [8, 128], strides = [1, 1]} : vector<8x384xf32> to vector<8x128xf32>
    %511 = vector.broadcast %300 : vector<1x128xf32> to vector<8x128xf32>
    %512 = arith.addf %510, %511 : vector<8x128xf32>
    %513 = arith.mulf %500, %512 : vector<8x128xf32>
    %514 = arith.addf %509, %513 : vector<8x128xf32>
    %515 = math.tanh %514 : vector<8x128xf32>
    %516 = arith.subf %487, %515 : vector<8x128xf32>
    %517 = arith.mulf %508, %516 : vector<8x128xf32>
    %518 = arith.addf %515, %517 : vector<8x128xf32>
    %c7_i32_154 = arith.constant 7 : i32
    %c0_155 = arith.constant 0 : index
    %c0_156 = arith.constant 0 : index
    %519 = vector.load %arg6[%c0_155, %c0_156] : memref<128x384xf32, #tpu.memory_space<vmem>>, vector<128x384xf32>
    %cst_157 = arith.constant dense<0.000000e+00> : vector<8x384xf32>
    %520 = tpu.matmul %518, %519, %cst_157 {dimension_numbers = #tpu.dot_dimension_numbers<[1], [0], [0], [1], [0, 0, 1, 1], [], []>} : vector<8x128xf32>, vector<128x384xf32>, vector<8x384xf32> -> vector<8x384xf32>
    %521 = arith.index_cast %c7_i32_154 : i32 to index
    %c0_158 = arith.constant 0 : index
    %c0_159 = arith.constant 0 : index
    %522 = vector.load %arg13[%521, %c0_158, %c0_159] : memref<8x8x384xf32, #tpu.memory_space<vmem>>, vector<1x8x384xf32>
    %523 = vector.shape_cast %522 : vector<1x8x384xf32> to vector<8x384xf32>
    %524 = vector.extract_strided_slice %523 {offsets = [0, 0], sizes = [8, 128], strides = [1, 1]} : vector<8x384xf32> to vector<8x128xf32>
    %525 = vector.extract_strided_slice %520 {offsets = [0, 0], sizes = [8, 128], strides = [1, 1]} : vector<8x384xf32> to vector<8x128xf32>
    %526 = arith.addf %524, %525 : vector<8x128xf32>
    %527 = arith.negf %526 : vector<8x128xf32>
    %528 = math.exp %527 : vector<8x128xf32>
    %cst_160 = arith.constant 1.000000e+00 : f32
    %529 = vector.broadcast %cst_160 : f32 to vector<8x128xf32>
    %530 = arith.addf %529, %528 : vector<8x128xf32>
    %531 = arith.divf %529, %530 : vector<8x128xf32>
    %532 = vector.extract_strided_slice %523 {offsets = [0, 128], sizes = [8, 128], strides = [1, 1]} : vector<8x384xf32> to vector<8x128xf32>
    %533 = vector.extract_strided_slice %520 {offsets = [0, 128], sizes = [8, 128], strides = [1, 1]} : vector<8x384xf32> to vector<8x128xf32>
    %534 = arith.addf %532, %533 : vector<8x128xf32>
    %535 = arith.negf %534 : vector<8x128xf32>
    %536 = math.exp %535 : vector<8x128xf32>
    %cst_161 = arith.constant 1.000000e+00 : f32
    %537 = vector.broadcast %cst_161 : f32 to vector<8x128xf32>
    %538 = arith.addf %537, %536 : vector<8x128xf32>
    %539 = arith.divf %537, %538 : vector<8x128xf32>
    %540 = vector.extract_strided_slice %523 {offsets = [0, 256], sizes = [8, 128], strides = [1, 1]} : vector<8x384xf32> to vector<8x128xf32>
    %541 = vector.extract_strided_slice %520 {offsets = [0, 256], sizes = [8, 128], strides = [1, 1]} : vector<8x384xf32> to vector<8x128xf32>
    %542 = vector.broadcast %300 : vector<1x128xf32> to vector<8x128xf32>
    %543 = arith.addf %541, %542 : vector<8x128xf32>
    %544 = arith.mulf %531, %543 : vector<8x128xf32>
    %545 = arith.addf %540, %544 : vector<8x128xf32>
    %546 = math.tanh %545 : vector<8x128xf32>
    %547 = arith.subf %518, %546 : vector<8x128xf32>
    %548 = arith.mulf %539, %547 : vector<8x128xf32>
    %549 = arith.addf %546, %548 : vector<8x128xf32>
    %c8_i32_162 = arith.constant 8 : i32
    %c0_163 = arith.constant 0 : index
    %c0_164 = arith.constant 0 : index
    %550 = vector.load %arg9[%c0_163, %c0_164] : memref<128x128xf32, #tpu.memory_space<vmem>>, vector<128x128xf32>
    %cst_165 = arith.constant dense<0.000000e+00> : vector<8x128xf32>
    %551 = tpu.matmul %549, %550, %cst_165 {dimension_numbers = #tpu.dot_dimension_numbers<[1], [0], [0], [1], [0, 0, 1, 1], [], []>} : vector<8x128xf32>, vector<128x128xf32>, vector<8x128xf32> -> vector<8x128xf32>
    %c0_166 = arith.constant 0 : index
    %c0_167 = arith.constant 0 : index
    %552 = vector.load %arg10[%c0_166, %c0_167] : memref<1x128xf32, #tpu.memory_space<vmem>>, vector<1x128xf32>
    %553 = vector.broadcast %552 : vector<1x128xf32> to vector<8x128xf32>
    %554 = arith.addf %551, %553 : vector<8x128xf32>
    %c0_168 = arith.constant 0 : index
    %c0_169 = arith.constant 0 : index
    %555 = vector.load %arg11[%c0_168, %c0_169] : memref<8x128xf32, #tpu.memory_space<vmem>>, vector<8x128xf32>
    tpu.vector_store %arg11[%c0_168, %c0_169], %554 {strides = array<i32>} : memref<8x128xf32, #tpu.memory_space<vmem>>, vector<8x128xf32>,
    return
  }
}

</mosaic_0001>

<bundles_post_ra>
// kernel: tpu_custom_call.1
= control target key start
LH: loop header
LB: loop body
LE: loop exit
PB: predicated region body
PF: predicated region fallthrough
CT: control target
= control target key end

     0   :  { %16 = vsyncpa [#allocation5], 0  ;;  %s4931_s0 = inlined_call_operand.hbm [shape: f32[8,8,128], index: 0, kind: input, shape index: {}]   ;;  %s4932_s1 = inlined_call_operand.hbm [shape: f32[128,384], index: 1, kind: input, shape index: {}]   ;;  %s4933_s2 = inlined_call_operand.hbm [shape: f32[128,384], index: 2, kind: input, shape index: {}]   ;;  %s4934_s3 = inlined_call_operand.hbm [shape: f32[1,384], index: 3, kind: input, shape index: {}]   ;;  %s4935_s4 = inlined_call_operand.vmem [shape: f32[1,128], index: 4, kind: input, shape index: {}]   ;;  %s4936_s5 = inlined_call_operand.hbm [shape: f32[128,384], index: 5, kind: input, shape index: {}]   ;;  %s4937_s6 = inlined_call_operand.hbm [shape: f32[128,384], index: 6, kind: input, shape index: {}]   ;;  %s4938_s7 = inlined_call_operand.vmem [shape: f32[1,384], index: 7, kind: input, shape index: {}]   ;;  %s4939_s8 = inlined_call_operand.vmem [shape: f32[1,128], index: 8, kind: input, shape index: {}]   ;;  %s4940_s9 = inlined_call_operand.hbm [shape: f32[128,128], index: 9, kind: input, shape index: {}]   ;;  %s4941_s10 = inlined_call_operand.vmem [shape: f32[1,128], index: 10, kind: input, shape index: {}]   ;;  %s4942_s11 = inlined_call_operand.hbm [shape: f32[8,128], index: 11, kind: output, shape index: {}]  }
   0x1   :  { %17 = vsyncpa [#allocation8], 0 }
   0x2   :  { %18 = vsyncpa [#allocation11], 0 }
   0x3   :  { %19 = vsyncpa [#allocation14], 0  ;;  %s38_s19 = sshll.u32 %s4932_s1, 4  ;;  %s39_s19 = int_to_ptr.hbm [resolvable:$true] %s38_s19 }
   0x4   :  { %20 = vsyncpa [#allocation6], 0  ;;  %s3311_s20 = smov [#allocation7]   ;;  %s65_s24 = sshll.u32 %s4934_s3, 4  ;;  %s66_s24 = int_to_ptr.hbm [resolvable:$true] %s65_s24 }
   0x5   :  { %s40_s21 = sshll.u32 %s3311_s20, 4  ;;  %s3312_s25 = smov 384   ;;  %s41_s21 = int_to_ptr.vmem [resolvable:$true] %s40_s21 }
   0x6   :  { %s3313_s26 = smov 24   ;;  %s3314_s27 = smov [#allocation10]  }
   0x7   :  { %46 = dma.hbm_to_vmem [thread:$0]  %s39_s19, 6144, %s41_s21, [#allocation8], %s3312_s25, %s3312_s25, %s3313_s26  }
   0x8   :  { %s67_s28 = sshll.u32 %s3314_s27, 4  ;;  %s90_s30 = sshll.u32 %s4937_s6, 4  ;;  %s68_s28 = int_to_ptr.vmem [resolvable:$true] %s67_s28  ;;  %s91_s30 = int_to_ptr.hbm [resolvable:$true] %s90_s30 }
   0x9   :  { %70 = dma.hbm_to_vmem [thread:$0]  %s66_s24, 48, %s68_s28, [#allocation11]  }
   0xa   :  { %s25_s3 = sshll.u32 %s4931_s0, 4  ;;  %s3315_s14 = smov [#allocation13]   ;;  %s26_s3 = int_to_ptr.hbm [resolvable:$true] %s25_s3 }
   0xb   :  { %s92_s15 = sshll.u32 %s3315_s14, 4  ;;  %s3316_s16 = smov [#allocation4]   ;;  %s93_s15 = int_to_ptr.vmem [resolvable:$true] %s92_s15 }
   0xc   :  { %98 = dma.hbm_to_vmem [thread:$0]  %s91_s30, 6144, %s93_s15, [#allocation14], %s3312_s25, %s3312_s25, %s3313_s26  }
   0xd   :  { %s27_s17 = sshll.u32 %s3316_s16, 4  ;;  %s3317_s18 = smov 128   ;;  %s28_s17 = int_to_ptr.vmem [resolvable:$true] %s27_s17 }
   0xe   :  { %s3318_s6 = smov 8   ;;  %s51_s21 = sshll.u32 %s4933_s2, 4  ;;  %s52_s21 = int_to_ptr.hbm [resolvable:$true] %s51_s21 }
   0xf   :  { %33 = dma.hbm_to_vmem [thread:$0]  %s26_s3, 1024, %s28_s17, [#allocation5], %s3317_s18, %s3317_s18, %s3318_s6  }
  0x10   :  { %s3319_s0 = smov [#allocation9]   ;;  %s77_s27 = sshll.u32 %s4936_s5, 4  ;;  %s78_s27 = int_to_ptr.hbm [resolvable:$true] %s77_s27 }
  0x11   :  { %s53_s22 = sshll.u32 %s3319_s0, 4  ;;  %s3320_s28 = smov [#allocation12]   ;;  %s54_s22 = int_to_ptr.vmem [resolvable:$true] %s53_s22 }
  0x12   :  { %59 = dma.hbm_to_vmem [thread:$0]  %s52_s21, 6144, %s54_s22, [#allocation8], %s3312_s25, %s3312_s25, %s3313_s26  }
  0x13   :  { %s79_s29 = sshll.u32 %s3320_s28, 4  ;;  %s107_s12 = sshll.u32 %s4940_s9, 4  ;;  %s80_s29 = int_to_ptr.vmem [resolvable:$true] %s79_s29  ;;  %s108_s12 = int_to_ptr.hbm [resolvable:$true] %s107_s12 }
  0x14   :  { %85 = dma.hbm_to_vmem [thread:$0]  %s78_s27, 6144, %s80_s29, [#allocation11], %s3312_s25, %s3312_s25, %s3313_s26  }
  0x15   :  { %s3321_s2 = smov [#allocation15]  }
  0x16   :  { %s109_s13 = sshll.u32 %s3321_s2, 4  ;;  %s110_s13 = int_to_ptr.vmem [resolvable:$true] %s109_s13 }
  0x17   :  { %115 = dma.hbm_to_vmem [thread:$0]  %s108_s12, 2048, %s110_s13, [#allocation14], %s3317_s18, %s3317_s18, %s3318_s6  }
  0x18   :  { %3301 = dma.done.wait [#allocation5], 1024  }
  0x19   :  { %3302 = vsyncadd [#allocation5], 4294966272 }
  0x1a   :  { %3303 = dma.done.wait [#allocation8], 12288  }
  0x1b   :  { %3304 = vsyncadd [#allocation8], 4294955008 }
  0x1c   :  { %3305 = dma.done.wait [#allocation11], 6192  }
  0x1d   :  { %3306 = vsyncadd [#allocation11], 4294961104 }
  0x1e   :  { %3307 = dma.done.wait [#allocation14], 8192  }
  0x1f   :  { %3308 = vsyncadd [#allocation14], 4294959104  ;;  %v200_v0 = vld [vmem:[#allocation7 + $0x168] sm:$0xff]  ;;  %v197_v2 = vld [vmem:[#allocation7 + $0x150] sm:$0xff]  ;;  %v4943_v47 = vmov 0.0   ;;  %s3323_s18 = smov [#allocation16]  }
  0x20   :  { %v3417_v1 = vld [vmem:[#allocation9 + $0x168] sm:$0xff]  ;;  %210 = vmatpush.msra.mxu0 %v200_v0  ;;  %v3420_v3 = vld [vmem:[#allocation9 + $0x150] sm:$0xff]  ;;  %v194_v4 = vld [vmem:[#allocation7 + $0x138] sm:$0xff]  ;;  %s2836_s6 = sshll.u32 %s3323_s18, 4  ;;  %s2838_s21 = sshll.u32 %s4942_s11, 4  ;;  %s2837_s6 = int_to_ptr.vmem [resolvable:$true] %s2836_s6  ;;  %s2839_s21 = int_to_ptr.hbm [resolvable:$true] %s2838_s21 }
  0x21   :  { %406 = vmatpush.msra.mxu3 %v3417_v1  ;;  %v3422_v5 = vld [vmem:[#allocation9 + $0x138] sm:$0xff]  ;;  %v191_v6 = vld [vmem:[#allocation7 + $0x120] sm:$0xff]  ;;  %v188_v8 = vld [vmem:[#allocation7 + $0x108] sm:$0xff] }
  0x22   :  { %211 = vmatpush.msra.mxu0 %v197_v2  ;;  %v3425_v7 = vld [vmem:[#allocation9 + $0x120] sm:$0xff]  ;;  %v3428_v9 = vld [vmem:[#allocation9 + $0x108] sm:$0xff]  ;;  %v185_v10 = vld [vmem:[#allocation7 + $0xf0] sm:$0xff] }
  0x23   :  { %407 = vmatpush.msra.mxu3 %v3420_v3  ;;  %v3431_v11 = vld [vmem:[#allocation9 + $0xf0] sm:$0xff]  ;;  %v182_v12 = vld [vmem:[#allocation7 + $0xd8] sm:$0xff]  ;;  %v179_v14 = vld [vmem:[#allocation7 + $0xc0] sm:$0xff] }
  0x24   :  { %212 = vmatpush.msra.mxu0 %v194_v4  ;;  %v3434_v13 = vld [vmem:[#allocation9 + $0xd8] sm:$0xff]  ;;  %v3437_v15 = vld [vmem:[#allocation9 + $0xc0] sm:$0xff]  ;;  %v201_v16 = vld [vmem:[#allocation7 + $0x170] sm:$0xff] }
  0x25   :  { %408 = vmatpush.msra.mxu3 %v3422_v5  ;;  %v198_v17 = vld [vmem:[#allocation7 + $0x158] sm:$0xff]  ;;  %v176_v18 = vld [vmem:[#allocation7 + $0xa8] sm:$0xff]  ;;  %251 = vmatpush.msra.mxu1 %v201_v16  ;;  %v195_v20 = vld [vmem:[#allocation7 + $0x140] sm:$0xff] }
  0x26   :  { %213 = vmatpush.msra.mxu0 %v191_v6  ;;  %v3440_v19 = vld [vmem:[#allocation9 + $0xa8] sm:$0xff]  ;;  %v173_v21 = vld [vmem:[#allocation7 + $0x90] sm:$0xff]  ;;  %v170_v24 = vld [vmem:[#allocation7 + $0x78] sm:$0xff] }
  0x27   :  { %409 = vmatpush.msra.mxu3 %v3425_v7  ;;  %v3443_v22 = vld [vmem:[#allocation9 + $0x90] sm:$0xff]  ;;  %252 = vmatpush.msra.mxu1 %v198_v17  ;;  %v192_v23 = vld [vmem:[#allocation7 + $0x128] sm:$0xff]  ;;  %v3446_v25 = vld [vmem:[#allocation9 + $0x78] sm:$0xff] }
  0x28   :  { %214 = vmatpush.msra.mxu0 %v188_v8  ;;  %v167_v26 = vld [vmem:[#allocation7 + $0x60] sm:$0xff]  ;;  %v189_v28 = vld [vmem:[#allocation7 + $0x110] sm:$0xff]  ;;  %v186_v29 = vld [vmem:[#allocation7 + $0xf8] sm:$0xff] }
  0x29   :  { %410 = vmatpush.msra.mxu3 %v3428_v9  ;;  %253 = vmatpush.msra.mxu1 %v195_v20  ;;  %v3449_v27 = vld [vmem:[#allocation9 + $0x60] sm:$0xff]  ;;  %v164_v30 = vld [vmem:[#allocation7 + $0x48] sm:$0xff]  ;;  %v161_v33 = vld [vmem:[#allocation7 + $0x30] sm:$0xff] }
  0x2a   :  { %215 = vmatpush.msra.mxu0 %v185_v10  ;;  %v3452_v31 = vld [vmem:[#allocation9 + $0x48] sm:$0xff]  ;;  %v183_v32 = vld [vmem:[#allocation7 + $0xe0] sm:$0xff]  ;;  %v3455_v34 = vld [vmem:[#allocation9 + $0x30] sm:$0xff] }
  0x2b   :  { %411 = vmatpush.msra.mxu3 %v3431_v11  ;;  %254 = vmatpush.msra.mxu1 %v192_v23  ;;  %v180_v35 = vld [vmem:[#allocation7 + $0xc8] sm:$0xff]  ;;  %v158_v36 = vld [vmem:[#allocation7 + $0x18] sm:$0xff]  ;;  %v177_v38 = vld [vmem:[#allocation7 + $0xb0] sm:$0xff] }
  0x2c   :  { %216 = vmatpush.msra.mxu0 %v182_v12  ;;  %v3458_v37 = vld [vmem:[#allocation9 + $0x18] sm:$0xff]  ;;  %v155_v39 = vld [vmem:[#allocation7] sm:$0xff]  ;;  %v3466_v43 = vld [vmem:[#allocation9 + $0x170] sm:$0xff] }
  0x2d   :  { %412 = vmatpush.msra.mxu3 %v3434_v13  ;;  %255 = vmatpush.msra.mxu1 %v189_v28  ;;  %v3461_v40 = vld [vmem:[#allocation9] sm:$0xff]  ;;  %v202_v42 = vld [vmem:[#allocation7 + $0x178] sm:$0xff]  ;;  %v196_v51 = vld [vmem:[#allocation7 + $0x148] sm:$0xff] }
  0x2e   :  { %217 = vmatpush.msra.mxu0 %v179_v14  ;;  %v3464_v41 = vld [vmem:[#allocation4] sm:$0xff]  ;;  %v3468_v44 = vld [vmem:[#allocation9 + $0x178] sm:$0xff]  ;;  %292 = vmatpush.msra.mxu2 %v202_v42  ;;  %v3481_v53 = vld [vmem:[#allocation9 + $0x148] sm:$0xff] }
  0x2f   :  { %413 = vmatpush.msra.mxu3 %v3437_v15  ;;  %256 = vmatpush.msra.mxu1 %v186_v29  ;;  %v174_v45 = vld [vmem:[#allocation7 + $0x98] sm:$0xff]  ;;  %v199_v46 = vld [vmem:[#allocation7 + $0x160] sm:$0xff]  ;;  %v168_v54 = vld [vmem:[#allocation7 + $0x68] sm:$0xff] }
  0x30   :  { %218 = vmatpush.msra.mxu0 %v176_v18  ;;  %v3473_v48 = vld [vmem:[#allocation9 + $0x158] sm:$0xff]  ;;  %v3475_v49 = vld [vmem:[#allocation9 + $0x160] sm:$0xff]  ;;  %293 = vmatpush.msra.mxu2 %v199_v46  ;;  %v193_v55 = vld [vmem:[#allocation7 + $0x130] sm:$0xff] }
  0x31   :  { %414 = vmatpush.msra.mxu3 %v3440_v19  ;;  %257 = vmatpush.msra.mxu1 %v183_v32  ;;  %v171_v50 = vld [vmem:[#allocation7 + $0x80] sm:$0xff]  ;;  %v3485_v56 = vld [vmem:[#allocation9 + $0x128] sm:$0xff]  ;;  %v3487_v57 = vld [vmem:[#allocation9 + $0x130] sm:$0xff] }
  0x32   :  { %219 = vmatpush.msra.mxu0 %v173_v21  ;;  %v3479_v52 = vld [vmem:[#allocation9 + $0x140] sm:$0xff]  ;;  %294 = vmatpush.msra.mxu2 %v196_v51  ;;  %v3490_v58 = vld [vmem:[#allocation4 + $0x8] sm:$0xff]  ;;  %v165_v59 = vld [vmem:[#allocation7 + $0x50] sm:$0xff] }
  0x33   :  { %415 = vmatpush.msra.mxu3 %v3443_v22  ;;  %258 = vmatpush.msra.mxu1 %v180_v35  ;;  %v3493_v60 = vld [vmem:[#allocation9 + $0x110] sm:$0xff]  ;;  %v3495_v61 = vld [vmem:[#allocation9 + $0x118] sm:$0xff]  ;;  %v3502_v2 = vld [vmem:[#allocation9 + $0x100] sm:$0xff] }
  0x34   :  { %220 = vmatpush.msra.mxu0 %v170_v24  ;;  %295 = vmatpush.msra.mxu2 %v193_v55  ;;  %v162_v62 = vld [vmem:[#allocation7 + $0x38] sm:$0xff]  ;;  %v159_v4 = vld [vmem:[#allocation7 + $0x20] sm:$0xff]  ;;  %v3508_v10 = vld [vmem:[#allocation9 + $0xe8] sm:$0xff] }
  0x35   :  { %416 = vmatpush.msra.mxu3 %v3446_v25  ;;  %259 = vmatpush.msra.mxu1 %v177_v38  ;;  %v190_v63 = vld [vmem:[#allocation7 + $0x118] sm:$0xff]  ;;  %v187_v6 = vld [vmem:[#allocation7 + $0x100] sm:$0xff]  ;;  %v156_v12 = vld [vmem:[#allocation7 + $0x8] sm:$0xff] }
  0x36   :  { %221 = vmatpush.msra.mxu0 %v167_v26  ;;  %v3500_v0 = vld [vmem:[#allocation9 + $0xf8] sm:$0xff]  ;;  %v3506_v8 = vld [vmem:[#allocation9 + $0xe0] sm:$0xff]  ;;  %296 = vmatpush.msra.mxu2 %v190_v63  ;;  %v184_v14 = vld [vmem:[#allocation7 + $0xe8] sm:$0xff] }
  0x37   :  { %417 = vmatpush.msra.mxu3 %v3449_v27  ;;  %260 = vmatpush.msra.mxu1 %v174_v45  ;;  %v3512_v16 = vld [vmem:[#allocation9 + $0xc8] sm:$0xff]  ;;  %v3514_v17 = vld [vmem:[#allocation9 + $0xd0] sm:$0xff]  ;;  %v3522_v21 = vld [vmem:[#allocation9 + $0xb8] sm:$0xff] }
  0x38   :  { %222 = vmatpush.msra.mxu0 %v164_v30  ;;  %297 = vmatpush.msra.mxu2 %v187_v6  ;;  %v3517_v18 = vld [vmem:[#allocation4 + $0x10] sm:$0xff]  ;;  %v3527_v24 = vld [vmem:[#allocation9 + $0x98] sm:$0xff]  ;;  %v3530_v26 = vld [vmem:[#allocation9 + $0xa0] sm:$0xff] }
  0x39   :  { %418 = vmatpush.msra.mxu3 %v3452_v31  ;;  %261 = vmatpush.msra.mxu1 %v171_v50  ;;  %v3520_v20 = vld [vmem:[#allocation9 + $0xb0] sm:$0xff]  ;;  %v178_v28 = vld [vmem:[#allocation7 + $0xb8] sm:$0xff]  ;;  %v3534_v29 = vld [vmem:[#allocation9 + $0x80] sm:$0xff] }
  0x3a   :  { %223 = vmatpush.msra.mxu0 %v161_v33  ;;  %298 = vmatpush.msra.mxu2 %v184_v14  ;;  %v181_v23 = vld [vmem:[#allocation7 + $0xd0] sm:$0xff]  ;;  %v3536_v30 = vld [vmem:[#allocation9 + $0x88] sm:$0xff]  ;;  %v175_v32 = vld [vmem:[#allocation7 + $0xa0] sm:$0xff] }
  0x3b   :  { %419 = vmatpush.msra.mxu3 %v3455_v34  ;;  %262 = vmatpush.msra.mxu1 %v168_v54  ;;  %v3541_v33 = vld [vmem:[#allocation9 + $0x68] sm:$0xff]  ;;  %v3543_v35 = vld [vmem:[#allocation9 + $0x70] sm:$0xff]  ;;  %v3552_v42 = vld [vmem:[#allocation9 + $0x58] sm:$0xff] }
  0x3c   :  { %224 = vmatpush.msra.mxu0 %v158_v36  ;;  %299 = vmatpush.msra.mxu2 %v181_v23  ;;  %v3547_v36 = vld [vmem:[#allocation4 + $0x18] sm:$0xff]  ;;  %v172_v38 = vld [vmem:[#allocation7 + $0x88] sm:$0xff]  ;;  %v169_v45 = vld [vmem:[#allocation7 + $0x70] sm:$0xff] }
  0x3d   :  { %420 = vmatpush.msra.mxu3 %v3458_v37  ;;  %263 = vmatpush.msra.mxu1 %v165_v59  ;;  %v3558_v46 = vld [vmem:[#allocation9 + $0x38] sm:$0xff]  ;;  %v3560_v50 = vld [vmem:[#allocation9 + $0x40] sm:$0xff]  ;;  %v3566_v55 = vld [vmem:[#allocation9 + $0x28] sm:$0xff] }
  0x3e   :  { %225 = vmatpush.msra.mxu0 %v155_v39  ;;  %300 = vmatpush.msra.mxu2 %v178_v28  ;;  %v3550_v39 = vld [vmem:[#allocation9 + $0x50] sm:$0xff]  ;;  %v166_v51 = vld [vmem:[#allocation7 + $0x58] sm:$0xff]  ;;  %v3564_v54 = vld [vmem:[#allocation9 + $0x20] sm:$0xff] }
  0x3f   :  { %421 = vmatpush.msra.mxu3 %v3461_v40  ;;  %226 = vmatmul.f32.vlgmr.msra.gmra.mxu0 %v3464_v41  ;;  %v163_v59 = vld [vmem:[#allocation7 + $0x40] sm:$0xff]  ;;  %v3573_v63 = vld [vmem:[#allocation9 + $0x10] sm:$0xff]  ;;  %v160_v6 = vld [vmem:[#allocation7 + $0x28] sm:$0xff] }
  0x40   :  { %422 = vmatmul.f32.vlgmr.msra.gmra.mxu3 %v4943_v47  ;;  %446 = vmatpush.msrb.mxu0 %v3468_v44  ;;  %v3591_v14 = vld [vmem:[#allocation4 + $0x28] sm:$0xff] }
  0x41   :  { %426 = vmatpush.msrb.mxu3 %v3466_v43  ;;  %264 = vmatpush.msra.mxu1 %v162_v62  ;;  %v3571_v62 = vld [vmem:[#allocation9 + $0x8] sm:$0xff] }
  0x42   :  { %447 = vmatpush.msrb.mxu0 %v3475_v49  ;;  %301 = vmatpush.msra.mxu2 %v175_v32 }
  0x43   :  { %427 = vmatpush.msrb.mxu3 %v3473_v48  ;;  %265 = vmatpush.msra.mxu1 %v159_v4  ;;  %v3577_v4 = vld [vmem:[#allocation4 + $0x20] sm:$0xff] }
  0x44   :  { %448 = vmatpush.msrb.mxu0 %v3481_v53  ;;  %302 = vmatpush.msra.mxu2 %v172_v38 }
  0x45   :  { %428 = vmatpush.msrb.mxu3 %v3479_v52  ;;  %266 = vmatpush.msra.mxu1 %v156_v12  ;;  %v157_v12 = vld [vmem:[#allocation7 + $0x10] sm:$0xff] }
  0x46   :  { %449 = vmatpush.msrb.mxu0 %v3487_v57  ;;  %267 = vmatmul.f32.vlgmr.msra.gmra.mxu1 %v3464_v41 }
  0x47   :  { %429 = vmatpush.msrb.mxu3 %v3485_v56  ;;  %229 = vmatmul.f32.gmra.mxu0 %v3490_v58 }
  0x48   :  { %450 = vmatpush.msrb.mxu0 %v3495_v61  ;;  %568 = vmatpush.msrb.mxu1 %v3417_v1 }
  0x49   :  { %430 = vmatpush.msrb.mxu3 %v3493_v60  ;;  %303 = vmatpush.msra.mxu2 %v169_v45 }
  0x4a   :  { %451 = vmatpush.msrb.mxu0 %v3502_v2  ;;  %569 = vmatpush.msrb.mxu1 %v3420_v3 }
  0x4b   :  { %431 = vmatpush.msrb.mxu3 %v3500_v0  ;;  %304 = vmatpush.msra.mxu2 %v166_v51 }
  0x4c   :  { %452 = vmatpush.msrb.mxu0 %v3508_v10  ;;  %570 = vmatpush.msrb.mxu1 %v3422_v5 }
  0x4d   :  { %432 = vmatpush.msrb.mxu3 %v3506_v8  ;;  %305 = vmatpush.msra.mxu2 %v163_v59 }
  0x4e   :  { %453 = vmatpush.msrb.mxu0 %v3514_v17  ;;  %270 = vmatmul.f32.gmra.mxu1 %v3490_v58 }
  0x4f   :  { %433 = vmatpush.msrb.mxu3 %v3512_v16  ;;  %232 = vmatmul.f32.gmra.mxu0 %v3517_v18 }
  0x50   :  { %454 = vmatpush.msrb.mxu0 %v3522_v21  ;;  %571 = vmatpush.msrb.mxu1 %v3425_v7 }
  0x51   :  { %434 = vmatpush.msrb.mxu3 %v3520_v20  ;;  %306 = vmatpush.msra.mxu2 %v160_v6 }
  0x52   :  { %455 = vmatpush.msrb.mxu0 %v3530_v26  ;;  %572 = vmatpush.msrb.mxu1 %v3428_v9 }
  0x53   :  { %435 = vmatpush.msrb.mxu3 %v3527_v24  ;;  %307 = vmatpush.msra.mxu2 %v157_v12 }
  0x54   :  { %456 = vmatpush.msrb.mxu0 %v3536_v30  ;;  %573 = vmatpush.msrb.mxu1 %v3431_v11 }
  0x55   :  { %436 = vmatpush.msrb.mxu3 %v3534_v29  ;;  %308 = vmatmul.f32.vlgmr.msra.gmra.mxu2 %v3464_v41 }
  0x56   :  { %457 = vmatpush.msrb.mxu0 %v3543_v35  ;;  %273 = vmatmul.f32.gmra.mxu1 %v3517_v18 }
  0x57   :  { %437 = vmatpush.msrb.mxu3 %v3541_v33  ;;  %235 = vmatmul.f32.gmra.mxu0 %v3547_v36 }
  0x58   :  { %458 = vmatpush.msrb.mxu0 %v3552_v42  ;;  %574 = vmatpush.msrb.mxu1 %v3434_v13 }
  0x59   :  { %438 = vmatpush.msrb.mxu3 %v3550_v39  ;;  %588 = vmatpush.msrb.mxu2 %v3466_v43 }
  0x5a   :  { %459 = vmatpush.msrb.mxu0 %v3560_v50  ;;  %575 = vmatpush.msrb.mxu1 %v3437_v15 }
  0x5b   :  { %439 = vmatpush.msrb.mxu3 %v3558_v46  ;;  %589 = vmatpush.msrb.mxu2 %v3473_v48 }
  0x5c   :  { %460 = vmatpush.msrb.mxu0 %v3566_v55  ;;  %576 = vmatpush.msrb.mxu1 %v3440_v19 }
  0x5d   :  { %440 = vmatpush.msrb.mxu3 %v3564_v54  ;;  %590 = vmatpush.msrb.mxu2 %v3479_v52 }
  0x5e   :  { %461 = vmatpush.msrb.mxu0 %v3573_v63  ;;  %577 = vmatpush.msrb.mxu1 %v3443_v22 }
  0x5f   :  { %441 = vmatpush.msrb.mxu3 %v3571_v62  ;;  %238 = vmatmul.f32.gmra.mxu0 %v3577_v4 }
  0x60   :  { %442 = vmatmul.f32.vlgmr.msrb.gmra.mxu3 %v4943_v47  ;;  %729 = vmatpush.msra.mxu0 %v3417_v1  ;;  %v3609_v1 = vld [vmem:[#allocation4 + $0x30] sm:$0xff] }
  0x61   :  { %608 = vmatpush.msra.mxu3 %v3468_v44  ;;  %276 = vmatmul.f32.gmra.mxu1 %v3547_v36 }
  0x62   :  { %591 = vmatpush.msrb.mxu2 %v3485_v56  ;;  %578 = vmatpush.msrb.mxu1 %v3446_v25 }
  0x63   :  { %609 = vmatpush.msra.mxu3 %v3475_v49  ;;  %311 = vmatmul.f32.gmra.mxu2 %v3490_v58 }
  0x64   :  { %592 = vmatpush.msrb.mxu2 %v3493_v60  ;;  %579 = vmatpush.msrb.mxu1 %v3449_v27 }
  0x65   :  { %610 = vmatpush.msra.mxu3 %v3481_v53  ;;  %730 = vmatpush.msra.mxu0 %v3420_v3  ;;  %v3627_v3 = vld [vmem:[#allocation4 + $0x38] sm:$0xff] }
  0x66   :  { %593 = vmatpush.msrb.mxu2 %v3500_v0  ;;  %580 = vmatpush.msrb.mxu1 %v3452_v31 }
  0x67   :  { %241 = vmatmul.f32.gmra.mxu0 %v3591_v14  ;;  %611 = vmatpush.msra.mxu3 %v3487_v57 }
  0x68   :  { %594 = vmatpush.msrb.mxu2 %v3506_v8  ;;  %581 = vmatpush.msrb.mxu1 %v3455_v34 }
  0x69   :  { %612 = vmatpush.msra.mxu3 %v3495_v61  ;;  %279 = vmatmul.f32.gmra.mxu1 %v3577_v4 }
  0x6a   :  { %595 = vmatpush.msrb.mxu2 %v3512_v16  ;;  %582 = vmatpush.msrb.mxu1 %v3458_v37 }
  0x6b   :  { %613 = vmatpush.msra.mxu3 %v3502_v2  ;;  %314 = vmatmul.f32.gmra.mxu2 %v3517_v18 }
  0x6c   :  { %596 = vmatpush.msrb.mxu2 %v3520_v20  ;;  %583 = vmatpush.msrb.mxu1 %v3461_v40 }
  0x6d   :  { %614 = vmatpush.msra.mxu3 %v3508_v10  ;;  %731 = vmatpush.msra.mxu0 %v3422_v5 }
  0x6e   :  { %749 = vmatpush.msra.mxu1 %v3466_v43  ;;  %597 = vmatpush.msrb.mxu2 %v3527_v24 }
  0x6f   :  { %244 = vmatmul.f32.gmra.mxu0 %v3609_v1  ;;  %615 = vmatpush.msra.mxu3 %v3514_v17 }
  0x70   :  { %598 = vmatpush.msrb.mxu2 %v3534_v29  ;;  %750 = vmatpush.msra.mxu1 %v3473_v48 }
  0x71   :  { %616 = vmatpush.msra.mxu3 %v3522_v21  ;;  %282 = vmatmul.f32.gmra.mxu1 %v3591_v14 }
  0x72   :  { %599 = vmatpush.msrb.mxu2 %v3541_v33  ;;  %751 = vmatpush.msra.mxu1 %v3479_v52 }
  0x73   :  { %617 = vmatpush.msra.mxu3 %v3530_v26  ;;  %317 = vmatmul.f32.gmra.mxu2 %v3547_v36 }
  0x74   :  { %600 = vmatpush.msrb.mxu2 %v3550_v39  ;;  %732 = vmatpush.msra.mxu0 %v3425_v7  ;;  %v146_v7 = vld [vmem:[#allocation10] sm:$0x7] }
  0x75   :  { %618 = vmatpush.msra.mxu3 %v3536_v30  ;;  %752 = vmatpush.msra.mxu1 %v3485_v56  ;;  %v3731_v36 = vperm.slane %v146_v7, 2 }
  0x76   :  { %601 = vmatpush.msrb.mxu2 %v3558_v46  ;;  %733 = vmatpush.msra.mxu0 %v3428_v9 }
  0x77   :  { %247 = vmatmul.f32.gmra.mxu0 %v3627_v3  ;;  %619 = vmatpush.msra.mxu3 %v3543_v35 }
  0x78   :  { %602 = vmatpush.msrb.mxu2 %v3564_v54  ;;  %753 = vmatpush.msra.mxu1 %v3493_v60 }
  0x79   :  { %620 = vmatpush.msra.mxu3 %v3552_v42  ;;  %285 = vmatmul.f32.gmra.mxu1 %v3609_v1 }
  0x7a   :  { %734 = vmatpush.msra.mxu0 %v3431_v11  ;;  %603 = vmatpush.msrb.mxu2 %v3571_v62  ;;  %v3702_v11 = vperm.slane %v146_v7, 0 }
  0x7b   :  { %621 = vmatpush.msra.mxu3 %v3560_v50  ;;  %754 = vmatpush.msra.mxu1 %v3500_v0 }
  0x7c   :  { %320 = vmatmul.f32.gmra.mxu2 %v3577_v4  ;;  %735 = vmatpush.msra.mxu0 %v3434_v13 }
  0x7d   :  { %622 = vmatpush.msra.mxu3 %v3566_v55  ;;  %769 = vmatpush.msra.mxu2 %v3468_v44 }
  0x7e   :  { %755 = vmatpush.msra.mxu1 %v3506_v8  ;;  %736 = vmatpush.msra.mxu0 %v3437_v15 }
  0x7f   :  { %462 = vmatmul.f32.vlgmr.msrb.gmra.mxu0 %v4943_v47  ;;  %623 = vmatpush.msra.mxu3 %v3573_v63 }
  0x80   :  { %770 = vmatpush.msra.mxu2 %v3475_v49  ;;  %756 = vmatpush.msra.mxu1 %v3512_v16 }
  0x81   :  { %737 = vmatpush.msra.mxu0 %v3440_v19  ;;  %288 = vmatmul.f32.gmra.mxu1 %v3627_v3 }
  0x82   :  { %771 = vmatpush.msra.mxu2 %v3481_v53  ;;  %757 = vmatpush.msra.mxu1 %v3520_v20 }
  0x83   :  { %738 = vmatpush.msra.mxu0 %v3443_v22 }
  0x84   :  { %772 = vmatpush.msra.mxu2 %v3487_v57  ;;  %758 = vmatpush.msra.mxu1 %v3527_v24 }
  0x85   :  { %323 = vmatmul.f32.gmra.mxu2 %v3591_v14  ;;  %739 = vmatpush.msra.mxu0 %v3446_v25 }
  0x86   :  { %773 = vmatpush.msra.mxu2 %v3495_v61  ;;  %759 = vmatpush.msra.mxu1 %v3534_v29 }
  0x87   :  { %740 = vmatpush.msra.mxu0 %v3449_v27 }
  0x88   :  { %774 = vmatpush.msra.mxu2 %v3502_v2  ;;  %760 = vmatpush.msra.mxu1 %v3541_v33  ;;  %v3729_v33 = vld [vmem:[%s4935_s4] ss:$0 sm:$0xff] }
  0x89   :  { %741 = vmatpush.msra.mxu0 %v3452_v31 }
  0x8a   :  { %775 = vmatpush.msra.mxu2 %v3508_v10  ;;  %761 = vmatpush.msra.mxu1 %v3550_v39 }
  0x8b   :  { %742 = vmatpush.msra.mxu0 %v3455_v34  ;;  %v3709_v34 = vperm.slane %v146_v7, 1 }
  0x8c   :  { %776 = vmatpush.msra.mxu2 %v3514_v17  ;;  %762 = vmatpush.msra.mxu1 %v3558_v46 }
  0x8d   :  { %326 = vmatmul.f32.gmra.mxu2 %v3609_v1  ;;  %743 = vmatpush.msra.mxu0 %v3458_v37 }
  0x8e   :  { %777 = vmatpush.msra.mxu2 %v3522_v21  ;;  %763 = vmatpush.msra.mxu1 %v3564_v54 }
  0x8f   :  { %744 = vmatpush.msra.mxu0 %v3461_v40 }
  0x90   :  { %778 = vmatpush.msra.mxu2 %v3530_v26  ;;  %764 = vmatpush.msra.mxu1 %v3571_v62 }
  0x92   :  { %779 = vmatpush.msra.mxu2 %v3536_v30 }
  0x94   :  { %780 = vmatpush.msra.mxu2 %v3543_v35 }
  0x95   :  { %329 = vmatmul.f32.gmra.mxu2 %v3627_v3 }
  0x96   :  { %781 = vmatpush.msra.mxu2 %v3552_v42 }
  0x98   :  { %782 = vmatpush.msra.mxu2 %v3560_v50 }
  0x9a   :  { %783 = vmatpush.msra.mxu2 %v3566_v55 }
  0x9c   :  { %784 = vmatpush.msra.mxu2 %v3573_v63 }
  0xbc   :  { %v227_v5 = vpop.f32.mrf.mxu0 }
  0xbd   :  { %v228_v15 = vadd.f32 %v227_v5, %v3702_v11 }
  0xc3   :  { %v423_v13 = vpop.f32.mrf.mxu3  ;;  %v268_v40 = vpop.f32.mrf.mxu1 }
  0xc4   :  { %v3700_v9 = vpop.f32.mrf.mxu0  ;;  %v469_v22 = vadd.f32 %v423_v13, %v228_v15  ;;  %v269_v44 = vadd.f32 %v268_v40, %v3709_v34 }
  0xc6   :  { %v2851_v25 = vmul.f32 -1.442695, %v469_v22 }
  0xc8   :  { %2899 = vpow2.f32 %v2851_v25 }
  0xcc   :  { %v3705_v19 = vpop.f32.mrf.mxu0 }
  0xce   :  { %v2900_v31 = vpop.eup %2899 }
  0xcf   :  { %v473_v43 = vadd.f32 1.0, %v2900_v31 }
  0xd1   :  { %2901 = vrcp.f32 %v473_v43  ;;  %v485_v29 = vand.u32 2147483648, %v473_v43  ;;  %vm479_vm1 = vweird.f32 %v473_v43  ;;  %v483_v32 = vand.u32 2147483647, %v473_v43 }
  0xd3   :  { %v486_v51 = vor.u32 1.1754944e-38, %v485_v29  ;;  %vm484_vm3 = vcmp.eq.f32.partialorder %v483_v32, 8.507059e+37 }
  0xd4   :  { %v3707_v27 = vpop.f32.mrf.mxu0 }
  0xd7   :  { %v2902_v57 = vpop.eup %2901 }
  0xd8   :  { %v309_v58 = vpop.f32.mrf.mxu2  ;;  %v475_v60 = vmul.f32 %v2902_v57, %v473_v43  ;;  %vm480_vm0 = vweird.f32 %v2902_v57 }
  0xd9   :  { %vm481_vm2 = vmor %vm479_vm1, %vm480_vm0  ;;  %v310_v59 = vadd.f32 %v309_v58, %v3731_v36 }
  0xda   :  { %v476_v10 = vsub.f32 1.0, %v475_v60 }
  0xdc   :  { %v239_v37 = vpop.f32.mrf.mxu0  ;;  %v477_v17 = vmul.f32 %v2902_v57, %v476_v10 }
  0xdd   :  { %v3712_v41 = vadd.f32 %v239_v37, %v3702_v11 }
  0xde   :  { %v478_v24 = vadd.f32 %v2902_v57, %v477_v17 }
  0xdf   :  { %4964 = vst [vmem:[#allocation22_spill] sm:$0xff] %v3712_v41 }
  0xe0   :  { %v482_v39 = vsel %vm481_vm2, %v2902_v57, %v478_v24  ;;  %v271_v57 = vpop.f32.mrf.mxu1 }
  0xe1   :  { %v487_v62 = vsel %vm484_vm3, %v486_v51, %v482_v39  ;;  %v272_v29 = vadd.f32 %v271_v57, %v3709_v34 }
  0xe3   :  { %v443_v48 = vpop.f32.mrf.mxu3 }
  0xe4   :  { %v489_v49 = vadd.f32 %v443_v48, %v269_v44  ;;  %v242_v52 = vpop.f32.mrf.mxu0 }
  0xe5   :  { %v3716_v56 = vadd.f32 %v242_v52, %v3702_v11 }
  0xe6   :  { %v2852_v53 = vmul.f32 -1.442695, %v489_v49  ;;  %v3721_v16 = vpop.f32.mrf.mxu2 }
  0xe7   :  { %4965 = vst [vmem:[#allocation23_spill] sm:$0xff] %v3716_v56 }
  0xe8   :  { %2903 = vpow2.f32 %v2852_v53  ;;  %v3754_v58 = vpop.f32.mrf.mxu1 }
  0xec   :  { %v245_v61 = vpop.f32.mrf.mxu0 }
  0xed   :  { %v3719_v2 = vadd.f32 %v245_v61, %v3702_v11 }
  0xee   :  { %v2904_v0 = vpop.eup %2903  ;;  %v3733_v38 = vpop.f32.mrf.mxu2 }
  0xef   :  { %4966 = vst [vmem:[#allocation24_spill] sm:$0xff] %v3719_v2  ;;  %v493_v8 = vadd.f32 1.0, %v2904_v0 }
  0xf0   :  { %v3756_v60 = vpop.f32.mrf.mxu1 }
  0xf1   :  { %2905 = vrcp.f32 %v493_v8  ;;  %vm499_vm4 = vweird.f32 %v493_v8  ;;  %v505_v3 = vand.u32 2147483648, %v493_v8  ;;  %v503_v7 = vand.u32 2147483647, %v493_v8 }
  0xf3   :  { %v506_v13 = vor.u32 1.1754944e-38, %v505_v3  ;;  %vm504_vm7 = vcmp.eq.f32.partialorder %v503_v7, 8.507059e+37 }
  0xf4   :  { %v248_v18 = vpop.f32.mrf.mxu0 }
  0xf5   :  { %v3724_v20 = vadd.f32 %v248_v18, %v3702_v11  ;;  %v231_v18 = vadd.f32 %v3700_v9, %v3702_v11 }
  0xf6   :  { %v318_v14 = vpop.f32.mrf.mxu2 }
  0xf7   :  { %4967 = vst [vmem:[#allocation25_spill] sm:$0xff] %v3724_v20  ;;  %v2906_v23 = vpop.eup %2905  ;;  %v3738_v1 = vadd.f32 %v318_v14, %v3731_v36 }
  0xf8   :  { %v495_v28 = vmul.f32 %v2906_v23, %v493_v8  ;;  %vm500_vm5 = vweird.f32 %v2906_v23  ;;  %v3758_v61 = vpop.f32.mrf.mxu1 }
  0xf9   :  { %vm501_vm6 = vmor %vm499_vm4, %vm500_vm5 }
  0xfa   :  { %v496_v45 = vsub.f32 1.0, %v495_v28 }
  0xfc   :  { %v463_v46 = vpop.f32.mrf.mxu0  ;;  %v497_v6 = vmul.f32 %v2906_v23, %v496_v45 }
  0xfd   :  { %v512_v54 = vadd.f32 %v3729_v33, %v463_v46 }
  0xfe   :  { %v498_v5 = vadd.f32 %v2906_v23, %v497_v6 }
  0xff   :  { %v513_v4 = vmul.f32 %v512_v54, %v487_v62  ;;  %v321_v25 = vpop.f32.mrf.mxu2 }
 0x100   :  { %v502_v15 = vsel %vm501_vm6, %v2906_v23, %v498_v5  ;;  %v3741_v37 = vadd.f32 %v321_v25, %v3731_v36  ;;  %v3760_v0 = vpop.f32.mrf.mxu1 }
 0x101   :  { %v514_v12 = vadd.f32 %v513_v4, %v310_v59  ;;  %v507_v40 = vsel %vm504_vm7, %v506_v13, %v502_v15  ;;  %4972 = vst [vmem:[#allocation30_spill] sm:$0xff] %v3760_v0 }
 0x102   :  { %4968 = vst [vmem:[#allocation26_spill] sm:$0xff] %v3741_v37 }
 0x103   :  { %2907 = vtanh.f32 %v514_v12 }
 0x108   :  { %v324_v48 = vpop.f32.mrf.mxu2  ;;  %v3762_v8 = vpop.f32.mrf.mxu1 }
 0x109   :  { %v2908_v22 = vpop.eup %2907  ;;  %v3749_v49 = vadd.f32 %v324_v48, %v3731_v36  ;;  %4973 = vst [vmem:[#allocation31_spill] sm:$0xff] %v3762_v8 }
 0x10a   :  { %v516_v31 = vsub.f32 0.0, %v2908_v22 }
 0x10b   :  { %4970 = vst [vmem:[#allocation28_spill] sm:$0xff] %v3749_v49 }
 0x10c   :  { %v517_v43 = vmul.f32 %v516_v31, %v507_v40 }
 0x10e   :  { %v3743_v44 = vadd.f32 %v2908_v22, %v517_v43  ;;  %v313_v43 = vadd.f32 %v3721_v16, %v3731_v36  ;;  %v3780_v16 = vld [vmem:[#allocation9 + $0x168] sm:$0xff] }
 0x10f   :  { %890 = vmatpush.msrb.mxu3 %v3780_v16 }
 0x110   :  { %4969 = vst [vmem:[#allocation27_spill] sm:$0xff] %v3743_v44  ;;  %584 = vmatmul.f32.vlgmr.msrb.gmra.mxu1 %v3743_v44  ;;  %604 = vmatmul.f32.vlgmr.msrb.gmra.mxu2 %v3743_v44  ;;  %v327_v52 = vpop.f32.mrf.mxu2  ;;  %v3764_v10 = vpop.f32.mrf.mxu1 }
 0x111   :  { %624 = vmatmul.f32.vlgmr.msra.gmra.mxu3 %v3743_v44  ;;  %v3752_v53 = vadd.f32 %v327_v52, %v3731_v36  ;;  %4974 = vst [vmem:[#allocation32_spill] sm:$0xff] %v3764_v10  ;;  %1051 = vmatpush.msrb.mxu2 %v3780_v16  ;;  %v3913_v10 = vld [vmem:[#allocation9 + $0x18] sm:$0xff] }
 0x113   :  { %4971 = vst [vmem:[#allocation29_spill] sm:$0xff] %v3752_v53  ;;  %v3915_v53 = vld [vmem:[#allocation9 + $0x20] sm:$0xff] }
 0x118   :  { %v3766_v17 = vpop.f32.mrf.mxu2 }
 0x119   :  { %4975 = vst [vmem:[#allocation33_spill] sm:$0xff] %v3766_v17  ;;  %v3871_v17 = vld [vmem:[#allocation9 + $0x90] sm:$0xff] }
 0x18d   :  { %v585_v23 = vpop.f32.mrf.mxu1 }
 0x18e   :  { %v632_v24 = vadd.f32 %v585_v23, %v231_v18 }
 0x190   :  { %v2853_v28 = vmul.f32 -1.442695, %v632_v24 }
 0x192   :  { %2909 = vpow2.f32 %v2853_v28 }
 0x193   :  { %v605_v32 = vpop.f32.mrf.mxu2 }
 0x194   :  { %v652_v39 = vadd.f32 %v605_v32, %v272_v29  ;;  %v625_v5 = vpop.f32.mrf.mxu3 }
 0x195   :  { %v672_v31 = vadd.f32 %v3729_v33, %v625_v5  ;;  %v3811_v5 = vld [vmem:[#allocation9 + $0x128] sm:$0xff] }
 0x196   :  { %v2854_v45 = vmul.f32 -1.442695, %v652_v39 }
 0x198   :  { %v2910_v46 = vpop.eup %2909  ;;  %2911 = vpow2.f32 %v2854_v45 }
 0x199   :  { %v636_v51 = vadd.f32 1.0, %v2910_v46 }
 0x19b   :  { %2913 = vrcp.f32 %v636_v51  ;;  %v648_v9 = vand.u32 2147483648, %v636_v51  ;;  %v646_v14 = vand.u32 2147483647, %v636_v51  ;;  %vm642_vm9 = vweird.f32 %v636_v51 }
 0x19d   :  { %v649_v15 = vor.u32 1.1754944e-38, %v648_v9  ;;  %vm647_vm11 = vcmp.eq.f32.partialorder %v646_v14, 8.507059e+37  ;;  %v3799_v9 = vld [vmem:[#allocation9 + $0x138] sm:$0xff]  ;;  %v3803_v14 = vld [vmem:[#allocation9 + $0x148] sm:$0xff] }
 0x19e   :  { %v2912_v54 = vpop.eup %2911 }
 0x19f   :  { %v656_v59 = vadd.f32 1.0, %v2912_v54  ;;  %v3782_v54 = vld [vmem:[#allocation9 + $0x170] sm:$0xff] }
 0x1a0   :  { %910 = vmatpush.msrb.mxu0 %v3782_v54 }
 0x1a1   :  { %v2914_v62 = vpop.eup %2913  ;;  %2915 = vrcp.f32 %v656_v59  ;;  %v668_v23 = vand.u32 2147483648, %v656_v59  ;;  %vm662_vm13 = vweird.f32 %v656_v59  ;;  %v666_v24 = vand.u32 2147483647, %v656_v59 }
 0x1a2   :  { %v638_v4 = vmul.f32 %v2914_v62, %v636_v51  ;;  %vm643_vm8 = vweird.f32 %v2914_v62 }
 0x1a3   :  { %vm644_vm10 = vmor %vm642_vm9, %vm643_vm8  ;;  %v669_v32 = vor.u32 1.1754944e-38, %v668_v23  ;;  %vm667_vm15 = vcmp.eq.f32.partialorder %v666_v24, 8.507059e+37  ;;  %v3853_v23 = vld [vmem:[#allocation9 + $0xc0] sm:$0xff]  ;;  %v3855_v24 = vld [vmem:[#allocation9 + $0xc8] sm:$0xff] }
 0x1a4   :  { %v639_v6 = vsub.f32 1.0, %v638_v4  ;;  %v3791_v4 = vld [vmem:[#allocation9 + $0x158] sm:$0xff] }
 0x1a5   :  { %911 = vmatpush.msrb.mxu0 %v3791_v4 }
 0x1a6   :  { %v640_v12 = vmul.f32 %v2914_v62, %v639_v6  ;;  %v3793_v6 = vld [vmem:[#allocation9 + $0x160] sm:$0xff] }
 0x1a7   :  { %v2916_v3 = vpop.eup %2915 }
 0x1a8   :  { %v658_v7 = vmul.f32 %v2916_v3, %v656_v59  ;;  %v641_v13 = vadd.f32 %v2914_v62, %v640_v12  ;;  %vm663_vm12 = vweird.f32 %v2916_v3  ;;  %v3784_v59 = vld [vmem:[#allocation9 + $0x178] sm:$0xff]  ;;  %v3801_v12 = vld [vmem:[#allocation9 + $0x140] sm:$0xff] }
 0x1a9   :  { %vm664_vm14 = vmor %vm662_vm13, %vm663_vm12  ;;  %930 = vmatpush.msrb.mxu1 %v3784_v59  ;;  %912 = vmatpush.msrb.mxu0 %v3801_v12 }
 0x1aa   :  { %v659_v22 = vsub.f32 1.0, %v658_v7  ;;  %v645_v25 = vsel %vm644_vm10, %v2914_v62, %v641_v13  ;;  %v3789_v62 = vld [vmem:[#allocation9 + $0x150] sm:$0xff]  ;;  %v3819_v13 = vld [vmem:[#allocation9 + $0x108] sm:$0xff] }
 0x1ab   :  { %v650_v40 = vsel %vm647_vm11, %v649_v15, %v645_v25  ;;  %891 = vmatpush.msrb.mxu3 %v3789_v62  ;;  %931 = vmatpush.msrb.mxu1 %v3793_v6  ;;  %v3813_v7 = vld [vmem:[#allocation9 + $0x130] sm:$0xff] }
 0x1ac   :  { %v673_v48 = vmul.f32 %v672_v31, %v650_v40  ;;  %v660_v52 = vmul.f32 %v2916_v3, %v659_v22  ;;  %1052 = vmatpush.msrb.mxu2 %v3789_v62  ;;  %913 = vmatpush.msrb.mxu0 %v3811_v5  ;;  %v3821_v15 = vld [vmem:[#allocation9 + $0x110] sm:$0xff]  ;;  %v3823_v22 = vld [vmem:[#allocation9 + $0x118] sm:$0xff]  ;;  %v3833_v40 = vld [vmem:[#allocation9 + $0x100] sm:$0xff] }
 0x1ad   :  { %892 = vmatpush.msrb.mxu3 %v3799_v9  ;;  %932 = vmatpush.msrb.mxu1 %v3803_v14  ;;  %v3829_v25 = vld [vmem:[#allocation9 + $0xf0] sm:$0xff]  ;;  %v3831_v31 = vld [vmem:[#allocation9 + $0xf8] sm:$0xff] }
 0x1ae   :  { %v674_v57 = vadd.f32 %v673_v48, %v313_v43  ;;  %v661_v18 = vadd.f32 %v2916_v3, %v660_v52  ;;  %1053 = vmatpush.msrb.mxu2 %v3799_v9  ;;  %914 = vmatpush.msrb.mxu0 %v3821_v15  ;;  %v3839_v43 = vld [vmem:[#allocation9 + $0xd8] sm:$0xff]  ;;  %v3841_v48 = vld [vmem:[#allocation9 + $0xe0] sm:$0xff]  ;;  %v3843_v52 = vld [vmem:[#allocation9 + $0xe8] sm:$0xff] }
 0x1af   :  { %933 = vmatpush.msrb.mxu1 %v3813_v7 }
 0x1b0   :  { %2917 = vtanh.f32 %v674_v57  ;;  %v665_v28 = vsel %vm664_vm14, %v2916_v3, %v661_v18  ;;  %v3809_v3 = vld [vmem:[#allocation9 + $0x120] sm:$0xff]  ;;  %915 = vmatpush.msrb.mxu0 %v3831_v31  ;;  %v234_v57 = vadd.f32 %v3705_v19, %v3702_v11  ;;  %v275_v18 = vadd.f32 %v3754_v58, %v3709_v34  ;;  %v3863_v58 = vld [vmem:[#allocation9 + $0xa8] sm:$0xff] }
 0x1b1   :  { %v670_v45 = vsel %vm667_vm15, %v669_v32, %v665_v28  ;;  %893 = vmatpush.msrb.mxu3 %v3809_v3  ;;  %1054 = vmatpush.msrb.mxu2 %v3809_v3  ;;  %v3857_v28 = vld [vmem:[#allocation9 + $0xd0] sm:$0xff] }
 0x1b2   :  { %934 = vmatpush.msrb.mxu1 %v3823_v22  ;;  %916 = vmatpush.msrb.mxu0 %v3841_v48 }
 0x1b3   :  { %894 = vmatpush.msrb.mxu3 %v3819_v13  ;;  %1055 = vmatpush.msrb.mxu2 %v3819_v13 }
 0x1b4   :  { %935 = vmatpush.msrb.mxu1 %v3833_v40  ;;  %917 = vmatpush.msrb.mxu0 %v3855_v24 }
 0x1b5   :  { %895 = vmatpush.msrb.mxu3 %v3829_v25  ;;  %1056 = vmatpush.msrb.mxu2 %v3829_v25 }
 0x1b6   :  { %v2918_v29 = vpop.eup %2917  ;;  %936 = vmatpush.msrb.mxu1 %v3843_v52 }
 0x1b7   :  { %v676_v39 = vsub.f32 %v3743_v44, %v2918_v29  ;;  %896 = vmatpush.msrb.mxu3 %v3839_v43  ;;  %1057 = vmatpush.msrb.mxu2 %v3839_v43 }
 0x1b8   :  { %937 = vmatpush.msrb.mxu1 %v3857_v28 }
 0x1b9   :  { %v677_v46 = vmul.f32 %v676_v39, %v670_v45  ;;  %897 = vmatpush.msrb.mxu3 %v3853_v23  ;;  %v3865_v45 = vld [vmem:[#allocation9 + $0xb0] sm:$0xff]  ;;  %1058 = vmatpush.msrb.mxu2 %v3853_v23 }
 0x1ba   :  { %918 = vmatpush.msrb.mxu0 %v3865_v45  ;;  %938 = vmatpush.msrb.mxu1 %v3522_v21  ;;  %v3887_v21 = vld [vmem:[#allocation9 + $0x60] sm:$0xff] }
 0x1bb   :  { %v3775_v51 = vadd.f32 %v2918_v29, %v677_v46  ;;  %898 = vmatpush.msrb.mxu3 %v3863_v58  ;;  %1059 = vmatpush.msrb.mxu2 %v3863_v58 }
 0x1bc   :  { %939 = vmatpush.msrb.mxu1 %v3530_v26  ;;  %v3895_v26 = vld [vmem:[#allocation9 + $0x48] sm:$0xff] }
 0x1bd   :  { %745 = vmatmul.f32.vlgmr.msra.gmra.mxu0 %v3775_v51  ;;  %765 = vmatmul.f32.vlgmr.msra.gmra.mxu1 %v3775_v51 }
 0x1be   :  { %785 = vmatmul.f32.vlgmr.msra.gmra.mxu2 %v3775_v51  ;;  %899 = vmatpush.msrb.mxu3 %v3871_v17 }
 0x1bf   :  { %1060 = vmatpush.msrb.mxu2 %v3871_v17  ;;  %940 = vmatpush.msrb.mxu1 %v3536_v30 }
 0x1c1   :  { %941 = vmatpush.msrb.mxu1 %v3543_v35 }
 0x1c3   :  { %942 = vmatpush.msrb.mxu1 %v3552_v42  ;;  %v3920_v42 = vld [vmem:[#allocation9] sm:$0xff] }
 0x1c5   :  { %943 = vmatpush.msrb.mxu1 %v3560_v50 }
 0x1c7   :  { %944 = vmatpush.msrb.mxu1 %v3566_v55 }
 0x1c9   :  { %945 = vmatpush.msrb.mxu1 %v3573_v63 }
 0x1cb   :  { %1212 = vmatpush.msra.mxu1 %v3780_v16 }
 0x1cd   :  { %1213 = vmatpush.msra.mxu1 %v3789_v62 }
 0x1cf   :  { %1214 = vmatpush.msra.mxu1 %v3799_v9 }
 0x1d1   :  { %1215 = vmatpush.msra.mxu1 %v3809_v3 }
 0x1d3   :  { %1216 = vmatpush.msra.mxu1 %v3819_v13 }
 0x1d5   :  { %1217 = vmatpush.msra.mxu1 %v3829_v25 }
 0x1d7   :  { %1218 = vmatpush.msra.mxu1 %v3839_v43 }
 0x1d9   :  { %1219 = vmatpush.msra.mxu1 %v3853_v23 }
 0x1db   :  { %1220 = vmatpush.msra.mxu1 %v3863_v58 }
 0x1dd   :  { %1221 = vmatpush.msra.mxu1 %v3871_v17 }
 0x23a   :  { %v746_v29 = vpop.f32.mrf.mxu0  ;;  %v766_v32 = vpop.f32.mrf.mxu1 }
 0x23b   :  { %v793_v19 = vadd.f32 %v746_v29, %v234_v57  ;;  %v813_v39 = vadd.f32 %v766_v32, %v275_v18  ;;  %v3873_v57 = vld [vmem:[#allocation9 + $0x98] sm:$0xff]  ;;  %v3881_v29 = vld [vmem:[#allocation9 + $0x80] sm:$0xff]  ;;  %v3889_v32 = vld [vmem:[#allocation9 + $0x68] sm:$0xff] }
 0x23c   :  { %919 = vmatpush.msrb.mxu0 %v3873_v57  ;;  %v3879_v18 = vld [vmem:[#allocation9 + $0x78] sm:$0xff] }
 0x23d   :  { %v2855_v46 = vmul.f32 -1.442695, %v793_v19  ;;  %v2856_v47 = vmul.f32 -1.442695, %v813_v39  ;;  %900 = vmatpush.msrb.mxu3 %v3879_v18  ;;  %1061 = vmatpush.msrb.mxu2 %v3879_v18  ;;  %v3903_v19 = vld [vmem:[#allocation9 + $0x30] sm:$0xff]  ;;  %v3905_v39 = vld [vmem:[#allocation9 + $0x38] sm:$0xff] }
 0x23e   :  { %920 = vmatpush.msrb.mxu0 %v3881_v29  ;;  %1222 = vmatpush.msra.mxu1 %v3879_v18 }
 0x23f   :  { %2919 = vpow2.f32 %v2855_v46  ;;  %901 = vmatpush.msrb.mxu3 %v3887_v21  ;;  %1062 = vmatpush.msrb.mxu2 %v3887_v21 }
 0x240   :  { %2921 = vpow2.f32 %v2856_v47  ;;  %921 = vmatpush.msrb.mxu0 %v3889_v32  ;;  %v3897_v47 = vld [vmem:[#allocation9 + $0x50] sm:$0xff]  ;;  %1223 = vmatpush.msra.mxu1 %v3887_v21 }
 0x241   :  { %902 = vmatpush.msrb.mxu3 %v3895_v26  ;;  %1063 = vmatpush.msrb.mxu2 %v3895_v26 }
 0x242   :  { %922 = vmatpush.msrb.mxu0 %v3897_v47  ;;  %1224 = vmatpush.msra.mxu1 %v3895_v26 }
 0x243   :  { %903 = vmatpush.msrb.mxu3 %v3903_v19  ;;  %1064 = vmatpush.msrb.mxu2 %v3903_v19 }
 0x244   :  { %923 = vmatpush.msrb.mxu0 %v3905_v39  ;;  %1225 = vmatpush.msra.mxu1 %v3903_v19 }
 0x245   :  { %v2920_v30 = vpop.eup %2919  ;;  %904 = vmatpush.msrb.mxu3 %v3913_v10  ;;  %1065 = vmatpush.msrb.mxu2 %v3913_v10 }
 0x246   :  { %v2922_v35 = vpop.eup %2921  ;;  %v797_v46 = vadd.f32 1.0, %v2920_v30  ;;  %924 = vmatpush.msrb.mxu0 %v3915_v53  ;;  %v3922_v30 = vld [vmem:[#allocation9 + $0x8] sm:$0xff]  ;;  %1226 = vmatpush.msra.mxu1 %v3913_v10 }
 0x247   :  { %v3910_v20 = vadd.f32 1.0, %v2922_v35  ;;  %905 = vmatpush.msrb.mxu3 %v3920_v42  ;;  %1066 = vmatpush.msrb.mxu2 %v3920_v42 }
 0x248   :  { %2923 = vrcp.f32 %v797_v46  ;;  %925 = vmatpush.msrb.mxu0 %v3922_v30  ;;  %v809_v8 = vand.u32 2147483648, %v797_v46  ;;  %v807_v49 = vand.u32 2147483647, %v797_v46  ;;  %vm803_vm1 = vweird.f32 %v797_v46  ;;  %1227 = vmatpush.msra.mxu1 %v3920_v42 }
 0x249   :  { %2925 = vrcp.f32 %v3910_v20  ;;  %1071 = vmatpush.msra.mxu3 %v3782_v54  ;;  %1232 = vmatpush.msra.mxu2 %v3782_v54  ;;  %vm823_vm5 = vweird.f32 %v3910_v20 }
 0x24a   :  { %1091 = vmatpush.msra.mxu0 %v3784_v59  ;;  %vm808_vm3 = vcmp.eq.f32.partialorder %v807_v49, 8.507059e+37 }
 0x24b   :  { %1072 = vmatpush.msra.mxu3 %v3791_v4  ;;  %1233 = vmatpush.msra.mxu2 %v3791_v4 }
 0x24c   :  { %1092 = vmatpush.msra.mxu0 %v3793_v6 }
 0x24d   :  { %1073 = vmatpush.msra.mxu3 %v3801_v12  ;;  %1234 = vmatpush.msra.mxu2 %v3801_v12 }
 0x24e   :  { %v2924_v50 = vpop.eup %2923  ;;  %1093 = vmatpush.msra.mxu0 %v3803_v14 }
 0x24f   :  { %v3937_v55 = vpop.eup %2925  ;;  %v799_v35 = vmul.f32 %v2924_v50, %v797_v46  ;;  %1074 = vmatpush.msra.mxu3 %v3811_v5  ;;  %vm804_vm0 = vweird.f32 %v2924_v50  ;;  %1235 = vmatpush.msra.mxu2 %v3811_v5 }
 0x250   :  { %v819_v2 = vmul.f32 %v3937_v55, %v3910_v20  ;;  %1094 = vmatpush.msra.mxu0 %v3813_v7  ;;  %vm805_vm2 = vmor %vm803_vm1, %vm804_vm0  ;;  %vm824_vm4 = vweird.f32 %v3937_v55 }
 0x251   :  { %v800_v63 = vsub.f32 1.0, %v799_v35  ;;  %1075 = vmatpush.msra.mxu3 %v3821_v15  ;;  %v786_v35 = vpop.f32.mrf.mxu2  ;;  %1236 = vmatpush.msra.mxu2 %v3821_v15  ;;  %vm825_vm6 = vmor %vm823_vm5, %vm824_vm4 }
 0x252   :  { %1095 = vmatpush.msra.mxu0 %v3823_v22  ;;  %v820_v56 = vsub.f32 1.0, %v819_v2  ;;  %v833_v41 = vadd.f32 %v3729_v33, %v786_v35  ;;  %v316_v2 = vadd.f32 %v3733_v38, %v3731_v36  ;;  %v827_v38 = vand.u32 2147483647, %v3910_v20 }
 0x253   :  { %v801_v44 = vmul.f32 %v2924_v50, %v800_v63  ;;  %1076 = vmatpush.msra.mxu3 %v3831_v31  ;;  %v810_v63 = vor.u32 1.1754944e-38, %v809_v8  ;;  %1237 = vmatpush.msra.mxu2 %v3831_v31 }
 0x254   :  { %1096 = vmatpush.msra.mxu0 %v3833_v40  ;;  %v821_v49 = vmul.f32 %v3937_v55, %v820_v56  ;;  %v829_v56 = vand.u32 2147483648, %v3910_v20  ;;  %vm828_vm7 = vcmp.eq.f32.partialorder %v827_v38, 8.507059e+37 }
 0x255   :  { %v802_v0 = vadd.f32 %v2924_v50, %v801_v44  ;;  %1077 = vmatpush.msra.mxu3 %v3841_v48  ;;  %1238 = vmatpush.msra.mxu2 %v3841_v48 }
 0x256   :  { %1097 = vmatpush.msra.mxu0 %v3843_v52 }
 0x257   :  { %v806_v37 = vsel %vm805_vm2, %v2924_v50, %v802_v0  ;;  %1078 = vmatpush.msra.mxu3 %v3855_v24  ;;  %1239 = vmatpush.msra.mxu2 %v3855_v24  ;;  %v830_v50 = vor.u32 1.1754944e-38, %v829_v56 }
 0x258   :  { %v811_v44 = vsel %vm808_vm3, %v810_v63, %v806_v37  ;;  %1098 = vmatpush.msra.mxu0 %v3857_v28 }
 0x259   :  { %v834_v8 = vmul.f32 %v833_v41, %v811_v44  ;;  %1079 = vmatpush.msra.mxu3 %v3865_v45  ;;  %v822_v41 = vadd.f32 %v3937_v55, %v821_v49  ;;  %1240 = vmatpush.msra.mxu2 %v3865_v45  ;;  %v4061_v44 = vld [vmem:[#allocation9 + $0x10] sm:$0xff] }
 0x25b   :  { %v835_v0 = vadd.f32 %v834_v8, %v316_v2  ;;  %1080 = vmatpush.msra.mxu3 %v3873_v57  ;;  %1241 = vmatpush.msra.mxu2 %v3873_v57  ;;  %v826_v37 = vsel %vm825_vm6, %v3937_v55, %v822_v41 }
 0x25c   :  { %v831_v35 = vsel %vm828_vm7, %v830_v50, %v826_v37 }
 0x25d   :  { %2927 = vtanh.f32 %v835_v0  ;;  %1081 = vmatpush.msra.mxu3 %v3881_v29  ;;  %1242 = vmatpush.msra.mxu2 %v3881_v29 }
 0x25f   :  { %1082 = vmatpush.msra.mxu3 %v3889_v32  ;;  %1243 = vmatpush.msra.mxu2 %v3889_v32 }
 0x261   :  { %1083 = vmatpush.msra.mxu3 %v3897_v47  ;;  %1244 = vmatpush.msra.mxu2 %v3897_v47 }
 0x263   :  { %v2928_v46 = vpop.eup %2927  ;;  %1084 = vmatpush.msra.mxu3 %v3905_v39  ;;  %1245 = vmatpush.msra.mxu2 %v3905_v39 }
 0x264   :  { %v837_v20 = vsub.f32 %v3775_v51, %v2928_v46 }
 0x265   :  { %1085 = vmatpush.msra.mxu3 %v3915_v53  ;;  %1246 = vmatpush.msra.mxu2 %v3915_v53 }
 0x266   :  { %v838_v63 = vmul.f32 %v837_v20, %v831_v35 }
 0x267   :  { %1086 = vmatpush.msra.mxu3 %v3922_v30  ;;  %1247 = vmatpush.msra.mxu2 %v3922_v30 }
 0x268   :  { %v3996_v55 = vadd.f32 %v2928_v46, %v838_v63 }
 0x26a   :  { %906 = vmatmul.f32.vlgmr.msrb.gmra.mxu3 %v3996_v55  ;;  %926 = vmatmul.f32.vlgmr.msrb.gmra.mxu0 %v3996_v55 }
 0x26b   :  { %946 = vmatmul.f32.vlgmr.msrb.gmra.mxu1 %v3996_v55  ;;  %1252 = vmatpush.msrb.mxu3 %v3784_v59 }
 0x26c   :  { %1393 = vmatpush.msrb.mxu1 %v3782_v54  ;;  %v278_v54 = vadd.f32 %v3756_v60, %v3709_v34 }
 0x26d   :  { %1253 = vmatpush.msrb.mxu3 %v3793_v6 }
 0x26e   :  { %1394 = vmatpush.msrb.mxu1 %v3791_v4 }
 0x26f   :  { %1254 = vmatpush.msrb.mxu3 %v3803_v14 }
 0x270   :  { %1395 = vmatpush.msrb.mxu1 %v3801_v12 }
 0x271   :  { %1255 = vmatpush.msrb.mxu3 %v3813_v7 }
 0x272   :  { %1396 = vmatpush.msrb.mxu1 %v3811_v5 }
 0x273   :  { %1256 = vmatpush.msrb.mxu3 %v3823_v22 }
 0x274   :  { %1397 = vmatpush.msrb.mxu1 %v3821_v15  ;;  %v237_v15 = vadd.f32 %v3707_v27, %v3702_v11  ;;  %v4045_v11 = vld [vmem:[#allocation9 + $0x70] sm:$0xff]  ;;  %v4049_v27 = vld [vmem:[#allocation9 + $0x58] sm:$0xff] }
 0x275   :  { %1257 = vmatpush.msrb.mxu3 %v3833_v40 }
 0x276   :  { %1398 = vmatpush.msrb.mxu1 %v3831_v31 }
 0x277   :  { %1258 = vmatpush.msrb.mxu3 %v3843_v52 }
 0x278   :  { %1399 = vmatpush.msrb.mxu1 %v3841_v48 }
 0x279   :  { %1259 = vmatpush.msrb.mxu3 %v3857_v28 }
 0x27a   :  { %1400 = vmatpush.msrb.mxu1 %v3855_v24  ;;  %v4035_v24 = vld [vmem:[#allocation9 + $0xb8] sm:$0xff] }
 0x27b   :  { %1099 = vmatpush.msra.mxu0 %v4035_v24  ;;  %1260 = vmatpush.msrb.mxu3 %v4035_v24 }
 0x27c   :  { %1401 = vmatpush.msrb.mxu1 %v3865_v45  ;;  %v4039_v45 = vld [vmem:[#allocation9 + $0xa0] sm:$0xff] }
 0x27d   :  { %1100 = vmatpush.msra.mxu0 %v4039_v45  ;;  %1261 = vmatpush.msrb.mxu3 %v4039_v45 }
 0x27e   :  { %1402 = vmatpush.msrb.mxu1 %v3873_v57  ;;  %v4041_v57 = vld [vmem:[#allocation9 + $0x88] sm:$0xff] }
 0x27f   :  { %1101 = vmatpush.msra.mxu0 %v4041_v57  ;;  %1262 = vmatpush.msrb.mxu3 %v4041_v57 }
 0x280   :  { %1403 = vmatpush.msrb.mxu1 %v3881_v29  ;;  %v4053_v29 = vld [vmem:[#allocation9 + $0x40] sm:$0xff] }
 0x281   :  { %1102 = vmatpush.msra.mxu0 %v4045_v11  ;;  %1263 = vmatpush.msrb.mxu3 %v4045_v11 }
 0x282   :  { %1404 = vmatpush.msrb.mxu1 %v3889_v32 }
 0x283   :  { %1103 = vmatpush.msra.mxu0 %v4049_v27  ;;  %1264 = vmatpush.msrb.mxu3 %v4049_v27 }
 0x284   :  { %1405 = vmatpush.msrb.mxu1 %v3897_v47 }
 0x285   :  { %1104 = vmatpush.msra.mxu0 %v4053_v29  ;;  %1265 = vmatpush.msrb.mxu3 %v4053_v29 }
 0x286   :  { %1406 = vmatpush.msrb.mxu1 %v3905_v39  ;;  %v4057_v39 = vld [vmem:[#allocation9 + $0x28] sm:$0xff] }
 0x287   :  { %1105 = vmatpush.msra.mxu0 %v4057_v39  ;;  %1266 = vmatpush.msrb.mxu3 %v4057_v39 }
 0x288   :  { %1407 = vmatpush.msrb.mxu1 %v3915_v53 }
 0x289   :  { %1106 = vmatpush.msra.mxu0 %v4061_v44  ;;  %1267 = vmatpush.msrb.mxu3 %v4061_v44 }
 0x28a   :  { %1408 = vmatpush.msrb.mxu1 %v3922_v30 }
 0x28b   :  { %1373 = vmatpush.msrb.mxu0 %v3780_v16 }
 0x28d   :  { %1374 = vmatpush.msrb.mxu0 %v3789_v62 }
 0x28f   :  { %1375 = vmatpush.msrb.mxu0 %v3799_v9 }
 0x291   :  { %1376 = vmatpush.msrb.mxu0 %v3809_v3 }
 0x293   :  { %1377 = vmatpush.msrb.mxu0 %v3819_v13 }
 0x295   :  { %1378 = vmatpush.msrb.mxu0 %v3829_v25 }
 0x297   :  { %1379 = vmatpush.msrb.mxu0 %v3839_v43 }
 0x299   :  { %1380 = vmatpush.msrb.mxu0 %v3853_v23 }
 0x29b   :  { %1381 = vmatpush.msrb.mxu0 %v3863_v58 }
 0x29d   :  { %1382 = vmatpush.msrb.mxu0 %v3871_v17 }
 0x29f   :  { %1383 = vmatpush.msrb.mxu0 %v3879_v18 }
 0x2a1   :  { %1384 = vmatpush.msrb.mxu0 %v3887_v21 }
 0x2a3   :  { %1385 = vmatpush.msrb.mxu0 %v3895_v26 }
 0x2a5   :  { %1386 = vmatpush.msrb.mxu0 %v3903_v19 }
 0x2a7   :  { %1387 = vmatpush.msrb.mxu0 %v3913_v10  ;;  %v281_v10 = vadd.f32 %v3758_v61, %v3709_v34 }
 0x2a9   :  { %1388 = vmatpush.msrb.mxu0 %v3920_v42 }
 0x2e7   :  { %v927_v4 = vpop.f32.mrf.mxu0 }
 0x2e8   :  { %v974_v12 = vadd.f32 %v927_v4, %v278_v54  ;;  %v947_v46 = vpop.f32.mrf.mxu1 }
 0x2e9   :  { %v994_v9 = vadd.f32 %v3729_v33, %v947_v46 }
 0x2ea   :  { %v2858_v5 = vmul.f32 -1.442695, %v974_v12 }
 0x2ec   :  { %2929 = vpow2.f32 %v2858_v5 }
 0x2ed   :  { %v907_v31 = vpop.f32.mrf.mxu3 }
 0x2ee   :  { %v954_v48 = vadd.f32 %v907_v31, %v237_v15 }
 0x2f0   :  { %v2857_v53 = vmul.f32 -1.442695, %v954_v48 }
 0x2f2   :  { %2931 = vpow2.f32 %v2857_v53  ;;  %v2930_v60 = vpop.eup %2929 }
 0x2f3   :  { %v978_v47 = vadd.f32 1.0, %v2930_v60 }
 0x2f5   :  { %v990_v54 = vand.u32 2147483648, %v978_v47  ;;  %vm984_vm13 = vweird.f32 %v978_v47  ;;  %v988_v4 = vand.u32 2147483647, %v978_v47 }
 0x2f7   :  { %v991_v12 = vor.u32 1.1754944e-38, %v990_v54  ;;  %vm989_vm15 = vcmp.eq.f32.partialorder %v988_v4, 8.507059e+37  ;;  %v1695_v54 = vld [vmem:[#allocation12 + $0x138] sm:$0xff]  ;;  %v1692_v4 = vld [vmem:[#allocation12 + $0x120] sm:$0xff] }
 0x2f8   :  { %v2932_v32 = vpop.eup %2931 }
 0x2f9   :  { %v958_v30 = vadd.f32 1.0, %v2932_v32 }
 0x2fb   :  { %2933 = vrcp.f32 %v958_v30  ;;  %v970_v56 = vand.u32 2147483648, %v958_v30  ;;  %v968_v37 = vand.u32 2147483647, %v958_v30  ;;  %vm964_vm9 = vweird.f32 %v958_v30 }
 0x2fc   :  { %2935 = vrcp.f32 %v978_v47 }
 0x2fd   :  { %v971_v62 = vor.u32 1.1754944e-38, %v970_v56  ;;  %vm969_vm11 = vcmp.eq.f32.partialorder %v968_v37, 8.507059e+37 }
 0x301   :  { %v2934_v2 = vpop.eup %2933 }
 0x302   :  { %v2936_v8 = vpop.eup %2935  ;;  %v960_v49 = vmul.f32 %v2934_v2, %v958_v30  ;;  %vm965_vm8 = vweird.f32 %v2934_v2 }
 0x303   :  { %v980_v41 = vmul.f32 %v2936_v8, %v978_v47  ;;  %vm966_vm10 = vmor %vm964_vm9, %vm965_vm8  ;;  %vm985_vm12 = vweird.f32 %v2936_v8 }
 0x304   :  { %v961_v0 = vsub.f32 1.0, %v960_v49  ;;  %vm986_vm14 = vmor %vm984_vm13, %vm985_vm12 }
 0x305   :  { %v981_v16 = vsub.f32 1.0, %v980_v41 }
 0x306   :  { %v962_v38 = vmul.f32 %v2934_v2, %v961_v0 }
 0x307   :  { %v982_v63 = vmul.f32 %v2936_v8, %v981_v16 }
 0x308   :  { %v963_v50 = vadd.f32 %v2934_v2, %v962_v38  ;;  %v4977_v38 = vld [vmem:[#allocation26_spill] sm:$0xff] }
 0x309   :  { %v983_v25 = vadd.f32 %v2936_v8, %v982_v63 }
 0x30a   :  { %v967_v20 = vsel %vm966_vm10, %v2934_v2, %v963_v50 }
 0x30b   :  { %v972_v3 = vsel %vm969_vm11, %v971_v62, %v967_v20  ;;  %v987_v43 = vsel %vm986_vm14, %v2936_v8, %v983_v25  ;;  %v1698_v25 = vld [vmem:[#allocation12 + $0x150] sm:$0xff] }
 0x30c   :  { %v995_v35 = vmul.f32 %v994_v9, %v972_v3  ;;  %v992_v58 = vsel %vm989_vm15, %v991_v12, %v987_v43 }
 0x30e   :  { %v996_v13 = vadd.f32 %v995_v35, %v3738_v1 }
 0x310   :  { %2937 = vtanh.f32 %v996_v13  ;;  %v1701_v13 = vld [vmem:[#allocation12 + $0x168] sm:$0xff] }
 0x316   :  { %v2938_v23 = vpop.eup %2937 }
 0x317   :  { %v998_v1 = vsub.f32 %v3996_v55, %v2938_v23 }
 0x319   :  { %v999_v17 = vmul.f32 %v998_v1, %v992_v58  ;;  %v1689_v1 = vld [vmem:[#allocation12 + $0x108] sm:$0xff] }
 0x31b   :  { %v4085_v18 = vadd.f32 %v2938_v23, %v999_v17  ;;  %v4978_v23 = vld [vmem:[#allocation23_spill] sm:$0xff] }
 0x31c   :  { %v1686_v17 = vld [vmem:[#allocation12 + $0xf0] sm:$0xff] }
 0x31d   :  { %1067 = vmatmul.f32.vlgmr.msrb.gmra.mxu2 %v4085_v18  ;;  %1087 = vmatmul.f32.vlgmr.msra.gmra.mxu3 %v4085_v18 }
 0x31e   :  { %1107 = vmatmul.f32.vlgmr.msra.gmra.mxu0 %v4085_v18  ;;  %1413 = vmatpush.msrb.mxu2 %v3784_v59 }
 0x320   :  { %1414 = vmatpush.msrb.mxu2 %v3793_v6 }
 0x322   :  { %1415 = vmatpush.msrb.mxu2 %v3803_v14  ;;  %v4976_v14 = vld [vmem:[#allocation22_spill] sm:$0xff] }
 0x324   :  { %1416 = vmatpush.msrb.mxu2 %v3813_v7 }
 0x326   :  { %1417 = vmatpush.msrb.mxu2 %v3823_v22 }
 0x328   :  { %1418 = vmatpush.msrb.mxu2 %v3833_v40 }
 0x32a   :  { %1419 = vmatpush.msrb.mxu2 %v3843_v52 }
 0x32c   :  { %1420 = vmatpush.msrb.mxu2 %v3857_v28 }
 0x32e   :  { %1421 = vmatpush.msrb.mxu2 %v4035_v24 }
 0x330   :  { %1422 = vmatpush.msrb.mxu2 %v4039_v45 }
 0x332   :  { %1423 = vmatpush.msrb.mxu2 %v4041_v57 }
 0x334   :  { %1424 = vmatpush.msrb.mxu2 %v4045_v11 }
 0x336   :  { %1425 = vmatpush.msrb.mxu2 %v4049_v27 }
 0x338   :  { %1426 = vmatpush.msrb.mxu2 %v4053_v29 }
 0x33a   :  { %1427 = vmatpush.msrb.mxu2 %v4057_v39 }
 0x33c   :  { %1428 = vmatpush.msrb.mxu2 %v4061_v44 }
 0x39b   :  { %v1108_v32 = vpop.f32.mrf.mxu0 }
 0x39c   :  { %v1155_v8 = vadd.f32 %v3729_v33, %v1108_v32  ;;  %v1656_v32 = vld [vmem:[#allocation12] sm:$0xff] }
 0x3a0   :  { %v1068_v59 = vpop.f32.mrf.mxu2  ;;  %v1088_v6 = vpop.f32.mrf.mxu3 }
 0x3a1   :  { %v1115_v7 = vadd.f32 %v1068_v59, %v4976_v14  ;;  %v1135_v22 = vadd.f32 %v1088_v6, %v281_v10  ;;  %v4979_v10 = vld [vmem:[#allocation30_spill] sm:$0xff]  ;;  %v1683_v6 = vld [vmem:[#allocation12 + $0xd8] sm:$0xff] }
 0x3a2   :  { %v284_v59 = vadd.f32 %v4979_v10, %v3709_v34  ;;  %v1533_v10 = vld [vmem:[#allocation9 + $0x178] sm:$0xff] }
 0x3a3   :  { %v2859_v40 = vmul.f32 -1.442695, %v1115_v7  ;;  %v2860_v52 = vmul.f32 -1.442695, %v1135_v22  ;;  %v1680_v22 = vld [vmem:[#allocation12 + $0xc0] sm:$0xff] }
 0x3a5   :  { %2939 = vpow2.f32 %v2859_v40 }
 0x3a6   :  { %2941 = vpow2.f32 %v2860_v52  ;;  %v1677_v52 = vld [vmem:[#allocation12 + $0xa8] sm:$0xff] }
 0x3ab   :  { %v2940_v28 = vpop.eup %2939 }
 0x3ac   :  { %v2942_v21 = vpop.eup %2941  ;;  %v1119_v26 = vadd.f32 1.0, %v2940_v28 }
 0x3ad   :  { %v1139_v19 = vadd.f32 1.0, %v2942_v21  ;;  %v1674_v21 = vld [vmem:[#allocation12 + $0x90] sm:$0xff] }
 0x3ae   :  { %2943 = vrcp.f32 %v1119_v26  ;;  %v1131_v61 = vand.u32 2147483648, %v1119_v26  ;;  %v1129_v60 = vand.u32 2147483647, %v1119_v26  ;;  %vm1125_vm1 = vweird.f32 %v1119_v26 }
 0x3af   :  { %2945 = vrcp.f32 %v1139_v19  ;;  %v1151_v50 = vand.u32 2147483648, %v1139_v19  ;;  %vm1145_vm5 = vweird.f32 %v1139_v19  ;;  %v1149_v16 = vand.u32 2147483647, %v1139_v19 }
 0x3b0   :  { %v1132_v30 = vor.u32 1.1754944e-38, %v1131_v61  ;;  %vm1130_vm3 = vcmp.eq.f32.partialorder %v1129_v60, 8.507059e+37 }
 0x3b1   :  { %v1152_v20 = vor.u32 1.1754944e-38, %v1151_v50  ;;  %vm1150_vm7 = vcmp.eq.f32.partialorder %v1149_v16, 8.507059e+37  ;;  %v4124_v50 = vld [vmem:[%s4935_s4] ss:$0 sm:$0xff] }
 0x3b4   :  { %v2944_v42 = vpop.eup %2943 }
 0x3b5   :  { %v2946_v5 = vpop.eup %2945  ;;  %v1121_v15 = vmul.f32 %v2944_v42, %v1119_v26  ;;  %vm1126_vm0 = vweird.f32 %v2944_v42 }
 0x3b6   :  { %v1141_v48 = vmul.f32 %v2946_v5, %v1139_v19  ;;  %vm1127_vm2 = vmor %vm1125_vm1, %vm1126_vm0  ;;  %vm1146_vm4 = vweird.f32 %v2946_v5  ;;  %v1671_v19 = vld [vmem:[#allocation12 + $0x78] sm:$0xff] }
 0x3b7   :  { %v1122_v31 = vsub.f32 1.0, %v1121_v15  ;;  %vm1147_vm6 = vmor %vm1145_vm5, %vm1146_vm4  ;;  %v1665_v15 = vld [vmem:[#allocation12 + $0x48] sm:$0xff] }
 0x3b8   :  { %v1142_v2 = vsub.f32 1.0, %v1141_v48  ;;  %v1659_v48 = vld [vmem:[#allocation12 + $0x18] sm:$0xff] }
 0x3b9   :  { %v1123_v53 = vmul.f32 %v2944_v42, %v1122_v31  ;;  %v1662_v31 = vld [vmem:[#allocation12 + $0x30] sm:$0xff] }
 0x3ba   :  { %v1143_v56 = vmul.f32 %v2946_v5, %v1142_v2 }
 0x3bb   :  { %v1124_v47 = vadd.f32 %v2944_v42, %v1123_v53 }
 0x3bc   :  { %v1144_v46 = vadd.f32 %v2946_v5, %v1143_v56 }
 0x3bd   :  { %v1128_v49 = vsel %vm1127_vm2, %v2944_v42, %v1124_v47  ;;  %v1668_v42 = vld [vmem:[#allocation12 + $0x60] sm:$0xff] }
 0x3be   :  { %v1133_v0 = vsel %vm1130_vm3, %v1132_v30, %v1128_v49  ;;  %v1148_v62 = vsel %vm1147_vm6, %v2946_v5, %v1144_v46 }
 0x3bf   :  { %v1156_v41 = vmul.f32 %v1155_v8, %v1133_v0  ;;  %v1153_v3 = vsel %vm1150_vm7, %v1152_v20, %v1148_v62 }
 0x3c1   :  { %v1157_v37 = vadd.f32 %v1156_v41, %v4977_v38 }
 0x3c3   :  { %2947 = vtanh.f32 %v1157_v37 }
 0x3c9   :  { %v2948_v9 = vpop.eup %2947 }
 0x3ca   :  { %v1159_v33 = vsub.f32 %v4085_v18, %v2948_v9 }
 0x3cc   :  { %v1160_v35 = vmul.f32 %v1159_v33, %v1153_v3  ;;  %v4980_v33 = vld [vmem:[#allocation28_spill] sm:$0xff] }
 0x3ce   :  { %v4113_v63 = vadd.f32 %v2948_v9, %v1160_v35 }
 0x3d0   :  { %1228 = vmatmul.f32.vlgmr.msra.gmra.mxu1 %v4113_v63  ;;  %1248 = vmatmul.f32.vlgmr.msra.gmra.mxu2 %v4113_v63 }
 0x3d1   :  { %1268 = vmatmul.f32.vlgmr.msrb.gmra.mxu3 %v4113_v63  ;;  %1711 = vmatpush.msra.mxu2 %v1701_v13 }
 0x3d2   :  { %1574 = vmatpush.msra.mxu1 %v1533_v10  ;;  %v1693_v10 = vld [vmem:[#allocation12 + $0x128] sm:$0xff] }
 0x3d3   :  { %1712 = vmatpush.msra.mxu2 %v1698_v25 }
 0x3d5   :  { %1713 = vmatpush.msra.mxu2 %v1695_v54 }
 0x3d7   :  { %1714 = vmatpush.msra.mxu2 %v1692_v4 }
 0x3d9   :  { %1715 = vmatpush.msra.mxu2 %v1689_v1 }
 0x3db   :  { %1716 = vmatpush.msra.mxu2 %v1686_v17  ;;  %v4981_v17 = vld [vmem:[#allocation27_spill] sm:$0xff] }
 0x3dd   :  { %1717 = vmatpush.msra.mxu2 %v1683_v6  ;;  %v1531_v6 = vld [vmem:[#allocation9 + $0x168] sm:$0xff] }
 0x3de   :  { %1534 = vmatpush.msra.mxu3 %v1531_v6  ;;  %v4171_v6 = vld [vmem:[#allocation13 + $0xc0] sm:$0xff] }
 0x3df   :  { %1718 = vmatpush.msra.mxu2 %v1680_v22  ;;  %v1528_v22 = vld [vmem:[#allocation9 + $0x150] sm:$0xff] }
 0x3e0   :  { %1535 = vmatpush.msra.mxu3 %v1528_v22  ;;  %v4983_v22 = vld [vmem:[#allocation24_spill] sm:$0xff] }
 0x3e1   :  { %1719 = vmatpush.msra.mxu2 %v1677_v52  ;;  %v1525_v52 = vld [vmem:[#allocation9 + $0x138] sm:$0xff] }
 0x3e2   :  { %1536 = vmatpush.msra.mxu3 %v1525_v52 }
 0x3e3   :  { %1720 = vmatpush.msra.mxu2 %v1674_v21  ;;  %v1524_v21 = vld [vmem:[#allocation9 + $0x130] sm:$0xff] }
 0x3e5   :  { %1721 = vmatpush.msra.mxu2 %v1671_v19  ;;  %v1518_v19 = vld [vmem:[#allocation9 + $0x100] sm:$0xff] }
 0x3e7   :  { %1722 = vmatpush.msra.mxu2 %v1668_v42  ;;  %v1515_v42 = vld [vmem:[#allocation9 + $0xe8] sm:$0xff] }
 0x3e9   :  { %1723 = vmatpush.msra.mxu2 %v1665_v15  ;;  %v1523_v15 = vld [vmem:[#allocation9 + $0x128] sm:$0xff] }
 0x3eb   :  { %1724 = vmatpush.msra.mxu2 %v1662_v31  ;;  %v1512_v31 = vld [vmem:[#allocation9 + $0xd0] sm:$0xff] }
 0x3ed   :  { %1725 = vmatpush.msra.mxu2 %v1659_v48  ;;  %v1520_v48 = vld [vmem:[#allocation9 + $0x110] sm:$0xff] }
 0x3ef   :  { %1726 = vmatpush.msra.mxu2 %v1656_v32  ;;  %v1513_v32 = vld [vmem:[#allocation9 + $0xd8] sm:$0xff] }
 0x44d   :  { %v1229_v43 = vpop.f32.mrf.mxu1 }
 0x44e   :  { %v1276_v12 = vadd.f32 %v1229_v43, %v4978_v23 }
 0x450   :  { %v2861_v58 = vmul.f32 -1.442695, %v1276_v12 }
 0x452   :  { %2949 = vpow2.f32 %v2861_v58 }
 0x453   :  { %v1249_v14 = vpop.f32.mrf.mxu2 }
 0x454   :  { %v1296_v7 = vadd.f32 %v1249_v14, %v284_v59  ;;  %v1269_v0 = vpop.f32.mrf.mxu3  ;;  %v1530_v59 = vld [vmem:[#allocation9 + $0x160] sm:$0xff]  ;;  %v1532_v14 = vld [vmem:[#allocation9 + $0x170] sm:$0xff] }
 0x455   :  { %v1316_v16 = vadd.f32 %v4124_v50, %v1269_v0  ;;  %1554 = vmatpush.msra.mxu0 %v1532_v14  ;;  %1575 = vmatpush.msra.mxu1 %v1530_v59  ;;  %v1501_v0 = vld [vmem:[#allocation9 + $0x78] sm:$0xff] }
 0x456   :  { %v2862_v40 = vmul.f32 -1.442695, %v1296_v7  ;;  %v1527_v7 = vld [vmem:[#allocation9 + $0x148] sm:$0xff]  ;;  %v1694_v59 = vld [vmem:[#allocation12 + $0x130] sm:$0xff] }
 0x457   :  { %1576 = vmatpush.msra.mxu1 %v1527_v7 }
 0x458   :  { %v2950_v28 = vpop.eup %2949  ;;  %2951 = vpow2.f32 %v2862_v40  ;;  %v1529_v40 = vld [vmem:[#allocation9 + $0x158] sm:$0xff] }
 0x459   :  { %v1280_v26 = vadd.f32 1.0, %v2950_v28  ;;  %v1526_v28 = vld [vmem:[#allocation9 + $0x140] sm:$0xff]  ;;  %1555 = vmatpush.msra.mxu0 %v1529_v40  ;;  %1577 = vmatpush.msra.mxu1 %v1524_v21 }
 0x45a   :  { %v1691_v21 = vld [vmem:[#allocation12 + $0x118] sm:$0xff] }
 0x45b   :  { %2953 = vrcp.f32 %v1280_v26  ;;  %v1292_v30 = vand.u32 2147483648, %v1280_v26  ;;  %v1290_v8 = vand.u32 2147483647, %v1280_v26  ;;  %vm1286_vm9 = vweird.f32 %v1280_v26  ;;  %1556 = vmatpush.msra.mxu0 %v1526_v28  ;;  %v1690_v28 = vld [vmem:[#allocation12 + $0x110] sm:$0xff] }
 0x45d   :  { %v1293_v38 = vor.u32 1.1754944e-38, %v1292_v30  ;;  %vm1291_vm11 = vcmp.eq.f32.partialorder %v1290_v8, 8.507059e+37  ;;  %1557 = vmatpush.msra.mxu0 %v1523_v15  ;;  %v1510_v30 = vld [vmem:[#allocation9 + $0xc0] sm:$0xff]  ;;  %v1507_v8 = vld [vmem:[#allocation9 + $0xa8] sm:$0xff] }
 0x45e   :  { %v2952_v5 = vpop.eup %2951  ;;  %v1688_v15 = vld [vmem:[#allocation12 + $0x100] sm:$0xff] }
 0x45f   :  { %v1300_v61 = vadd.f32 1.0, %v2952_v5  ;;  %v1522_v5 = vld [vmem:[#allocation9 + $0x120] sm:$0xff]  ;;  %1558 = vmatpush.msra.mxu0 %v1520_v48  ;;  %v1685_v48 = vld [vmem:[#allocation12 + $0xe8] sm:$0xff] }
 0x460   :  { %1537 = vmatpush.msra.mxu3 %v1522_v5  ;;  %v1687_v5 = vld [vmem:[#allocation12 + $0xf8] sm:$0xff] }
 0x461   :  { %v2954_v53 = vpop.eup %2953  ;;  %2955 = vrcp.f32 %v1300_v61  ;;  %v1312_v13 = vand.u32 2147483648, %v1300_v61  ;;  %vm1306_vm13 = vweird.f32 %v1300_v61  ;;  %v1310_v25 = vand.u32 2147483647, %v1300_v61 }
 0x462   :  { %v1282_v60 = vmul.f32 %v2954_v53, %v1280_v26  ;;  %vm1287_vm8 = vweird.f32 %v2954_v53  ;;  %v1521_v26 = vld [vmem:[#allocation9 + $0x118] sm:$0xff] }
 0x463   :  { %vm1288_vm10 = vmor %vm1286_vm9, %vm1287_vm8  ;;  %v1313_v43 = vor.u32 1.1754944e-38, %v1312_v13  ;;  %vm1311_vm15 = vcmp.eq.f32.partialorder %v1310_v25, 8.507059e+37  ;;  %1578 = vmatpush.msra.mxu1 %v1521_v26  ;;  %v1699_v13 = vld [vmem:[#allocation12 + $0x158] sm:$0xff]  ;;  %v1700_v25 = vld [vmem:[#allocation12 + $0x160] sm:$0xff] }
 0x464   :  { %v1283_v47 = vsub.f32 1.0, %v1282_v60  ;;  %v1517_v60 = vld [vmem:[#allocation9 + $0xf8] sm:$0xff]  ;;  %v4175_v26 = vld [vmem:[#allocation13 + $0xa8] sm:$0xff] }
 0x465   :  { %1579 = vmatpush.msra.mxu1 %v1518_v19  ;;  %1559 = vmatpush.msra.mxu0 %v1517_v60  ;;  %v1681_v60 = vld [vmem:[#allocation12 + $0xc8] sm:$0xff] }
 0x466   :  { %v1284_v2 = vmul.f32 %v2954_v53, %v1283_v47  ;;  %v1514_v47 = vld [vmem:[#allocation9 + $0xe0] sm:$0xff] }
 0x467   :  { %v2956_v49 = vpop.eup %2955  ;;  %1580 = vmatpush.msra.mxu1 %v1515_v42  ;;  %1560 = vmatpush.msra.mxu0 %v1514_v47  ;;  %v4184_v47 = vld [vmem:[#allocation13 + $0x60] sm:$0xff] }
 0x468   :  { %v1302_v41 = vmul.f32 %v2956_v49, %v1300_v61  ;;  %v1285_v56 = vadd.f32 %v2954_v53, %v1284_v2  ;;  %vm1307_vm12 = vweird.f32 %v2956_v49  ;;  %v1519_v61 = vld [vmem:[#allocation9 + $0x108] sm:$0xff] }
 0x469   :  { %vm1308_vm14 = vmor %vm1306_vm13, %vm1307_vm12  ;;  %1581 = vmatpush.msra.mxu1 %v1512_v31  ;;  %1538 = vmatpush.msra.mxu3 %v1519_v61  ;;  %v1511_v2 = vld [vmem:[#allocation9 + $0xc8] sm:$0xff]  ;;  %v4178_v31 = vld [vmem:[#allocation13 + $0x90] sm:$0xff] }
 0x46a   :  { %v1303_v37 = vsub.f32 1.0, %v1302_v41  ;;  %v1289_v46 = vsel %vm1288_vm10, %v2954_v53, %v1285_v56  ;;  %v1516_v53 = vld [vmem:[#allocation9 + $0xf0] sm:$0xff]  ;;  %1561 = vmatpush.msra.mxu0 %v1511_v2  ;;  %v1498_v41 = vld [vmem:[#allocation9 + $0x60] sm:$0xff] }
 0x46b   :  { %v1294_v62 = vsel %vm1291_vm11, %v1293_v38, %v1289_v46  ;;  %1582 = vmatpush.msra.mxu1 %v4035_v24  ;;  %1539 = vmatpush.msra.mxu3 %v1516_v53  ;;  %v1508_v24 = vld [vmem:[#allocation9 + $0xb0] sm:$0xff]  ;;  %v1493_v46 = vld [vmem:[#allocation9 + $0x38] sm:$0xff]  ;;  %v1684_v61 = vld [vmem:[#allocation12 + $0xe0] sm:$0xff] }
 0x46c   :  { %v1317_v9 = vmul.f32 %v1316_v16, %v1294_v62  ;;  %v1304_v20 = vmul.f32 %v2956_v49, %v1303_v37  ;;  %1562 = vmatpush.msra.mxu0 %v1508_v24  ;;  %v4147_v56 = vld [vmem:[#allocation13 + $0x168] sm:$0xff]  ;;  %v1489_v16 = vld [vmem:[#allocation9 + $0x18] sm:$0xff]  ;;  %v1490_v62 = vld [vmem:[#allocation9 + $0x20] sm:$0xff] }
 0x46d   :  { %1583 = vmatpush.msra.mxu1 %v4039_v45  ;;  %1540 = vmatpush.msra.mxu3 %v1513_v32  ;;  %v1505_v45 = vld [vmem:[#allocation9 + $0x98] sm:$0xff]  ;;  %v1496_v38 = vld [vmem:[#allocation9 + $0x50] sm:$0xff] }
 0x46e   :  { %v1318_v3 = vadd.f32 %v1317_v9, %v4980_v33  ;;  %v1305_v35 = vadd.f32 %v2956_v49, %v1304_v20  ;;  %1563 = vmatpush.msra.mxu0 %v1505_v45  ;;  %v1492_v37 = vld [vmem:[#allocation9 + $0x30] sm:$0xff]  ;;  %v1486_v9 = vld [vmem:[#allocation9] sm:$0xff]  ;;  %v1487_v20 = vld [vmem:[#allocation9 + $0x8] sm:$0xff] }
 0x46f   :  { %1584 = vmatpush.msra.mxu1 %v4041_v57  ;;  %1541 = vmatpush.msra.mxu3 %v1510_v30  ;;  %v1502_v57 = vld [vmem:[#allocation9 + $0x80] sm:$0xff]  ;;  %v1702_v33 = vld [vmem:[#allocation12 + $0x170] sm:$0xff] }
 0x470   :  { %2957 = vtanh.f32 %v1318_v3  ;;  %v1309_v54 = vsel %vm1308_vm14, %v2956_v49, %v1305_v35  ;;  %v1504_v49 = vld [vmem:[#allocation9 + $0x90] sm:$0xff]  ;;  %1564 = vmatpush.msra.mxu0 %v1502_v57  ;;  %v1703_v3 = vld [vmem:[#allocation12 + $0x178] sm:$0xff]  ;;  %v1676_v45 = vld [vmem:[#allocation12 + $0xa0] sm:$0xff] }
 0x471   :  { %v1314_v12 = vsel %vm1311_vm15, %v1313_v43, %v1309_v54  ;;  %1585 = vmatpush.msra.mxu1 %v4045_v11  ;;  %1542 = vmatpush.msra.mxu3 %v1507_v8  ;;  %v1499_v11 = vld [vmem:[#allocation9 + $0x68] sm:$0xff]  ;;  %v4163_v54 = vld [vmem:[#allocation13 + $0xf0] sm:$0xff]  ;;  %v4181_v53 = vld [vmem:[#allocation13 + $0x78] sm:$0xff] }
 0x472   :  { %1565 = vmatpush.msra.mxu0 %v1499_v11  ;;  %v4160_v35 = vld [vmem:[#allocation13 + $0x108] sm:$0xff]  ;;  %v1682_v32 = vld [vmem:[#allocation12 + $0xd0] sm:$0xff]  ;;  %v1679_v2 = vld [vmem:[#allocation12 + $0xb8] sm:$0xff] }
 0x473   :  { %1586 = vmatpush.msra.mxu1 %v4049_v27  ;;  %1543 = vmatpush.msra.mxu3 %v1504_v49  ;;  %v1495_v27 = vld [vmem:[#allocation9 + $0x48] sm:$0xff]  ;;  %v1678_v30 = vld [vmem:[#allocation12 + $0xb0] sm:$0xff]  ;;  %v1675_v49 = vld [vmem:[#allocation12 + $0x98] sm:$0xff] }
 0x474   :  { %1566 = vmatpush.msra.mxu0 %v1496_v38  ;;  %v1697_v43 = vld [vmem:[#allocation12 + $0x148] sm:$0xff] }
 0x475   :  { %1587 = vmatpush.msra.mxu1 %v4053_v29  ;;  %1544 = vmatpush.msra.mxu3 %v1501_v0  ;;  %v4151_v29 = vld [vmem:[#allocation13 + $0x150] sm:$0xff]  ;;  %v4187_v8 = vld [vmem:[#allocation13 + $0x48] sm:$0xff] }
 0x476   :  { %v2958_v4 = vpop.eup %2957  ;;  %1567 = vmatpush.msra.mxu0 %v1493_v46  ;;  %v4190_v0 = vld [vmem:[#allocation13 + $0x30] sm:$0xff]  ;;  %v1673_v38 = vld [vmem:[#allocation12 + $0x88] sm:$0xff] }
 0x477   :  { %v1320_v23 = vsub.f32 %v4113_v63, %v2958_v4  ;;  %1588 = vmatpush.msra.mxu1 %v4057_v39  ;;  %1545 = vmatpush.msra.mxu3 %v1498_v41  ;;  %v4154_v39 = vld [vmem:[#allocation13 + $0x138] sm:$0xff]  ;;  %v1669_v46 = vld [vmem:[#allocation12 + $0x68] sm:$0xff] }
 0x478   :  { %1568 = vmatpush.msra.mxu0 %v1490_v62  ;;  %v4199_v62 = vld [vmem:[#allocation13] sm:$0xff] }
 0x479   :  { %v1321_v1 = vmul.f32 %v1320_v23, %v1314_v12  ;;  %1589 = vmatpush.msra.mxu1 %v4061_v44  ;;  %1546 = vmatpush.msra.mxu3 %v1495_v27  ;;  %v4157_v44 = vld [vmem:[#allocation13 + $0x120] sm:$0xff]  ;;  %v4166_v23 = vld [vmem:[#allocation13 + $0xd8] sm:$0xff]  ;;  %v4982_v12 = vld [vmem:[#allocation31_spill] sm:$0xff]  ;;  %4984 = vst [vmem:[#allocation22_spill] sm:$0xff] %v4199_v62 }
 0x47a   :  { %1569 = vmatpush.msra.mxu0 %v1487_v20  ;;  %v1672_v27 = vld [vmem:[#allocation12 + $0x80] sm:$0xff]  ;;  %v1667_v20 = vld [vmem:[#allocation12 + $0x58] sm:$0xff] }
 0x47b   :  { %v4129_v58 = vadd.f32 %v2958_v4, %v1321_v1  ;;  %1547 = vmatpush.msra.mxu3 %v1492_v37  ;;  %v1696_v4 = vld [vmem:[#allocation12 + $0x140] sm:$0xff]  ;;  %v287_v1 = vadd.f32 %v4982_v12, %v3709_v34  ;;  %v4195_v37 = vld [vmem:[#allocation13 + $0x18] sm:$0xff]  ;;  %v1661_v12 = vld [vmem:[#allocation12 + $0x28] sm:$0xff] }
 0x47d   :  { %1389 = vmatmul.f32.vlgmr.msrb.gmra.mxu0 %v4129_v58  ;;  %1409 = vmatmul.f32.vlgmr.msrb.gmra.mxu1 %v4129_v58 }
 0x47e   :  { %1429 = vmatmul.f32.vlgmr.msrb.gmra.mxu2 %v4129_v58  ;;  %1907 = vmatpush.msrb.mxu1 %v4147_v56 }
 0x47f   :  { %1548 = vmatpush.msra.mxu3 %v1489_v16  ;;  %1793 = vmatpush.msrb.mxu0 %v1703_v3  ;;  %v1670_v16 = vld [vmem:[#allocation12 + $0x70] sm:$0xff]  ;;  %v1663_v3 = vld [vmem:[#allocation12 + $0x38] sm:$0xff] }
 0x480   :  { %1908 = vmatpush.msrb.mxu1 %v4151_v29 }
 0x481   :  { %1549 = vmatpush.msra.mxu3 %v1486_v9  ;;  %1794 = vmatpush.msrb.mxu0 %v1700_v25  ;;  %v1666_v9 = vld [vmem:[#allocation12 + $0x50] sm:$0xff] }
 0x482   :  { %1909 = vmatpush.msrb.mxu1 %v4154_v39 }
 0x483   :  { %1752 = vmatpush.msrb.mxu3 %v1702_v33  ;;  %1795 = vmatpush.msrb.mxu0 %v1697_v43  ;;  %v1660_v43 = vld [vmem:[#allocation12 + $0x20] sm:$0xff] }
 0x484   :  { %1910 = vmatpush.msrb.mxu1 %v4157_v44 }
 0x485   :  { %1753 = vmatpush.msrb.mxu3 %v1699_v13  ;;  %1796 = vmatpush.msrb.mxu0 %v1694_v59  ;;  %v1664_v13 = vld [vmem:[#allocation12 + $0x40] sm:$0xff] }
 0x486   :  { %1727 = vmatmul.f32.vlgmr.msra.gmra.mxu2 %v4981_v17  ;;  %1911 = vmatpush.msrb.mxu1 %v4160_v35 }
 0x487   :  { %1754 = vmatpush.msrb.mxu3 %v1696_v4  ;;  %1797 = vmatpush.msrb.mxu0 %v1691_v21 }
 0x488   :  { %1912 = vmatpush.msrb.mxu1 %v4163_v54 }
 0x489   :  { %1755 = vmatpush.msrb.mxu3 %v1693_v10  ;;  %1798 = vmatpush.msrb.mxu0 %v1688_v15 }
 0x48a   :  { %1913 = vmatpush.msrb.mxu1 %v4166_v23 }
 0x48b   :  { %1756 = vmatpush.msrb.mxu3 %v1690_v28  ;;  %1799 = vmatpush.msrb.mxu0 %v1685_v48 }
 0x48c   :  { %1914 = vmatpush.msrb.mxu1 %v4171_v6 }
 0x48d   :  { %1757 = vmatpush.msrb.mxu3 %v1687_v5  ;;  %1800 = vmatpush.msrb.mxu0 %v1682_v32 }
 0x48e   :  { %1730 = vmatmul.f32.gmra.mxu2 %v3775_v51  ;;  %1915 = vmatpush.msrb.mxu1 %v4175_v26 }
 0x48f   :  { %1758 = vmatpush.msrb.mxu3 %v1684_v61  ;;  %1801 = vmatpush.msrb.mxu0 %v1679_v2 }
 0x490   :  { %1916 = vmatpush.msrb.mxu1 %v4178_v31 }
 0x491   :  { %1759 = vmatpush.msrb.mxu3 %v1681_v60  ;;  %1802 = vmatpush.msrb.mxu0 %v1676_v45  ;;  %v4985_v60 = vld [vmem:[#allocation29_spill] sm:$0xff] }
 0x492   :  { %1917 = vmatpush.msrb.mxu1 %v4181_v53 }
 0x493   :  { %1760 = vmatpush.msrb.mxu3 %v1678_v30  ;;  %1803 = vmatpush.msrb.mxu0 %v1673_v38 }
 0x494   :  { %1918 = vmatpush.msrb.mxu1 %v4184_v47 }
 0x495   :  { %1761 = vmatpush.msrb.mxu3 %v1675_v49  ;;  %1804 = vmatpush.msrb.mxu0 %v1670_v16  ;;  %v4211_v16 = vld [vmem:[#allocation13 + $0x170] sm:$0xff] }
 0x496   :  { %1733 = vmatmul.f32.gmra.mxu2 %v3996_v55  ;;  %1919 = vmatpush.msrb.mxu1 %v4187_v8 }
 0x497   :  { %1762 = vmatpush.msrb.mxu3 %v1672_v27  ;;  %1805 = vmatpush.msrb.mxu0 %v1667_v20  ;;  %v4226_v20 = vld [vmem:[#allocation13 + $0x128] sm:$0xff] }
 0x498   :  { %1920 = vmatpush.msrb.mxu1 %v4190_v0 }
 0x499   :  { %1763 = vmatpush.msrb.mxu3 %v1669_v46  ;;  %1806 = vmatpush.msrb.mxu0 %v1664_v13  ;;  %v4238_v13 = vld [vmem:[#allocation13 + $0xf8] sm:$0xff] }
 0x49a   :  { %1921 = vmatpush.msrb.mxu1 %v4195_v37 }
 0x49b   :  { %1764 = vmatpush.msrb.mxu3 %v1666_v9  ;;  %1807 = vmatpush.msrb.mxu0 %v1661_v12  ;;  %v4221_v9 = vld [vmem:[#allocation13 + $0x140] sm:$0xff] }
 0x49c   :  { %1922 = vmatpush.msrb.mxu1 %v4199_v62  ;;  %v4263_v12 = vld [vmem:[#allocation13 + $0x80] sm:$0xff] }
 0x49d   :  { %1765 = vmatpush.msrb.mxu3 %v1663_v3  ;;  %v4986_v3 = vmov 0.0  }
 0x49e   :  { %1736 = vmatmul.f32.gmra.mxu2 %v4085_v18 }
 0x49f   :  { %1766 = vmatpush.msrb.mxu3 %v1660_v43  ;;  %v4258_v43 = vld [vmem:[#allocation13 + $0x98] sm:$0xff] }
 0x4a6   :  { %1739 = vmatmul.f32.gmra.mxu2 %v4113_v63 }
 0x4ae   :  { %1742 = vmatmul.f32.gmra.mxu2 %v4129_v58 }
 0x4fa   :  { %v1390_v14 = vpop.f32.mrf.mxu0  ;;  %v1410_v7 = vpop.f32.mrf.mxu1 }
 0x4fb   :  { %v1437_v40 = vadd.f32 %v1390_v14, %v4983_v22  ;;  %v1457_v52 = vadd.f32 %v1410_v7, %v287_v1  ;;  %v1657_v14 = vld [vmem:[#allocation12 + $0x8] sm:$0xff]  ;;  %v1658_v7 = vld [vmem:[#allocation12 + $0x10] sm:$0xff] }
 0x4fc   :  { %1767 = vmatpush.msrb.mxu3 %v1657_v14  ;;  %1808 = vmatpush.msrb.mxu0 %v1658_v7  ;;  %v4286_v14 = vld [vmem:[#allocation13 + $0x20] sm:$0xff]  ;;  %v4291_v7 = vld [vmem:[#allocation13 + $0x8] sm:$0xff] }
 0x4fd   :  { %v2863_v19 = vmul.f32 -1.442695, %v1437_v40  ;;  %v2864_v42 = vmul.f32 -1.442695, %v1457_v52  ;;  %4987 = vst [vmem:[#allocation26_spill] sm:$0xff] %v4286_v14 }
 0x4fe   :  { %4988 = vst [vmem:[#allocation23_spill] sm:$0xff] %v4291_v7 }
 0x4ff   :  { %2959 = vpow2.f32 %v2863_v19 }
 0x500   :  { %2961 = vpow2.f32 %v2864_v42 }
 0x501   :  { %v1430_v52 = vpop.f32.mrf.mxu2 }
 0x502   :  { %v1477_v5 = vadd.f32 %v4124_v50, %v1430_v52  ;;  %v4341_v52 = vld [vmem:[#allocation13 + $0x130] sm:$0xff] }
 0x505   :  { %v2960_v24 = vpop.eup %2959 }
 0x506   :  { %v2962_v57 = vpop.eup %2961  ;;  %v1441_v41 = vadd.f32 1.0, %v2960_v24 }
 0x507   :  { %v4192_v11 = vadd.f32 1.0, %v2962_v57 }
 0x508   :  { %2963 = vrcp.f32 %v1441_v41  ;;  %v1453_v59 = vand.u32 2147483648, %v1441_v41  ;;  %v1451_v40 = vand.u32 2147483647, %v1441_v41  ;;  %vm1447_vm1 = vweird.f32 %v1441_v41 }
 0x509   :  { %2965 = vrcp.f32 %v4192_v11  ;;  %v1473_v2 = vand.u32 2147483648, %v4192_v11  ;;  %vm1467_vm5 = vweird.f32 %v4192_v11  ;;  %v1471_v24 = vand.u32 2147483647, %v4192_v11 }
 0x50a   :  { %v1454_v19 = vor.u32 1.1754944e-38, %v1453_v59  ;;  %vm1452_vm3 = vcmp.eq.f32.partialorder %v1451_v40, 8.507059e+37  ;;  %v4281_v59 = vld [vmem:[#allocation13 + $0x178] sm:$0xff]  ;;  %v4339_v40 = vld [vmem:[#allocation13 + $0x148] sm:$0xff] }
 0x50b   :  { %v1474_v57 = vor.u32 1.1754944e-38, %v1473_v2  ;;  %vm1472_vm7 = vcmp.eq.f32.partialorder %v1471_v24, 8.507059e+37  ;;  %1947 = vmatpush.msrb.mxu2 %v4281_v59 }
 0x50e   :  { %v2964_v33 = vpop.eup %2963 }
 0x50f   :  { %v2966_v25 = vpop.eup %2965  ;;  %v1443_v4 = vmul.f32 %v2964_v33, %v1441_v41  ;;  %vm1448_vm0 = vweird.f32 %v2964_v33 }
 0x510   :  { %v1463_v10 = vmul.f32 %v2966_v25, %v4192_v11  ;;  %vm1449_vm2 = vmor %vm1447_vm1, %vm1448_vm0  ;;  %vm1468_vm4 = vweird.f32 %v2966_v25  ;;  %v4217_v11 = vld [vmem:[#allocation13 + $0x158] sm:$0xff] }
 0x511   :  { %v1444_v1 = vsub.f32 1.0, %v1443_v4  ;;  %vm1469_vm6 = vmor %vm1467_vm5, %vm1468_vm4  ;;  %v4247_v4 = vld [vmem:[#allocation13 + $0xc8] sm:$0xff] }
 0x512   :  { %v1464_v21 = vsub.f32 1.0, %v1463_v10  ;;  %v4279_v10 = vld [vmem:[#allocation13 + $0x38] sm:$0xff] }
 0x513   :  { %v1445_v22 = vmul.f32 %v2964_v33, %v1444_v1  ;;  %v4268_v1 = vld [vmem:[#allocation13 + $0x68] sm:$0xff] }
 0x514   :  { %v1465_v48 = vmul.f32 %v2966_v25, %v1464_v21 }
 0x515   :  { %v1446_v28 = vadd.f32 %v2964_v33, %v1445_v22 }
 0x516   :  { %v1466_v30 = vadd.f32 %v2966_v25, %v1465_v48  ;;  %v4361_v48 = vld [vmem:[#allocation13 + $0xd0] sm:$0xff] }
 0x517   :  { %v1450_v42 = vsel %vm1449_vm2, %v2964_v33, %v1446_v28  ;;  %v4231_v33 = vld [vmem:[#allocation13 + $0x110] sm:$0xff]  ;;  %v4345_v28 = vld [vmem:[#allocation13 + $0x118] sm:$0xff] }
 0x518   :  { %v1455_v15 = vsel %vm1452_vm3, %v1454_v19, %v1450_v42  ;;  %v1470_v49 = vsel %vm1469_vm6, %v2966_v25, %v1466_v30  ;;  %v4242_v25 = vld [vmem:[#allocation13 + $0xe0] sm:$0xff] }
 0x519   :  { %v1478_v61 = vmul.f32 %v1477_v5, %v1455_v15  ;;  %v1475_v27 = vsel %vm1472_vm7, %v1474_v57, %v1470_v49  ;;  %v4990_v42 = vld [vmem:[#allocation25_spill] sm:$0xff]  ;;  %v4356_v15 = vld [vmem:[#allocation13 + $0xe8] sm:$0xff]  ;;  %v4387_v57 = vld [vmem:[#allocation13 + $0x70] sm:$0xff] }
 0x51a   :  { %v4377_v49 = vld [vmem:[#allocation13 + $0xa0] sm:$0xff] }
 0x51b   :  { %v1479_v32 = vadd.f32 %v1478_v61, %v4985_v60  ;;  %v4366_v60 = vld [vmem:[#allocation13 + $0xb8] sm:$0xff] }
 0x51d   :  { %2967 = vtanh.f32 %v1479_v32 }
 0x523   :  { %v2968_v45 = vpop.eup %2967 }
 0x524   :  { %v1481_v41 = vsub.f32 %v4129_v58, %v2968_v45 }
 0x526   :  { %v1482_v38 = vmul.f32 %v1481_v41, %v1475_v27  ;;  %v4392_v41 = vld [vmem:[#allocation13 + $0x58] sm:$0xff] }
 0x527   :  { %4991 = vst [vmem:[#allocation30_spill] sm:$0xff] %v4392_v41 }
 0x528   :  { %v4209_v46 = vadd.f32 %v2968_v45, %v1482_v38  ;;  %v4381_v45 = vld [vmem:[#allocation13 + $0x88] sm:$0xff]  ;;  %v4397_v38 = vld [vmem:[#allocation13 + $0x40] sm:$0xff] }
 0x529   :  { %4992 = vst [vmem:[#allocation28_spill] sm:$0xff] %v4397_v38 }
 0x52a   :  { %1550 = vmatmul.f32.vlgmr.msra.gmra.mxu3 %v4209_v46  ;;  %1570 = vmatmul.f32.vlgmr.msra.gmra.mxu0 %v4209_v46 }
 0x52b   :  { %1590 = vmatmul.f32.vlgmr.msra.gmra.mxu1 %v4209_v46  ;;  %1745 = vmatmul.f32.gmra.mxu2 %v4209_v46 }
 0x52c   :  { %1927 = vmatpush.msra.mxu1 %v4211_v16  ;;  %2020 = vmatpush.msra.mxu3 %v4147_v56 }
 0x52d   :  { %2040 = vmatpush.msra.mxu0 %v4211_v16 }
 0x52e   :  { %1928 = vmatpush.msra.mxu1 %v4217_v11  ;;  %2021 = vmatpush.msra.mxu3 %v4151_v29 }
 0x52f   :  { %2041 = vmatpush.msra.mxu0 %v4217_v11 }
 0x530   :  { %1929 = vmatpush.msra.mxu1 %v4221_v9  ;;  %2022 = vmatpush.msra.mxu3 %v4154_v39 }
 0x531   :  { %2042 = vmatpush.msra.mxu0 %v4221_v9 }
 0x532   :  { %1930 = vmatpush.msra.mxu1 %v4226_v20  ;;  %1768 = vmatmul.f32.vlgmr.msrb.gmra.mxu3 %v4981_v17 }
 0x533   :  { %1809 = vmatmul.f32.vlgmr.msrb.gmra.mxu0 %v4981_v17  ;;  %1923 = vmatmul.f32.vlgmr.msrb.gmra.mxu1 %v4986_v3  ;;  %v4252_v17 = vld [vmem:[#allocation13 + $0xb0] sm:$0xff] }
 0x534   :  { %1931 = vmatpush.msra.mxu1 %v4231_v33  ;;  %2023 = vmatpush.msra.mxu3 %v4157_v44 }
 0x535   :  { %2043 = vmatpush.msra.mxu0 %v4226_v20 }
 0x536   :  { %1932 = vmatpush.msra.mxu1 %v4238_v13  ;;  %2024 = vmatpush.msra.mxu3 %v4160_v35 }
 0x537   :  { %2044 = vmatpush.msra.mxu0 %v4231_v33 }
 0x538   :  { %1933 = vmatpush.msra.mxu1 %v4242_v25  ;;  %2025 = vmatpush.msra.mxu3 %v4163_v54 }
 0x539   :  { %2045 = vmatpush.msra.mxu0 %v4238_v13 }
 0x53a   :  { %1934 = vmatpush.msra.mxu1 %v4247_v4  ;;  %1771 = vmatmul.f32.gmra.mxu3 %v3775_v51 }
 0x53b   :  { %1812 = vmatmul.f32.gmra.mxu0 %v3775_v51  ;;  %2026 = vmatpush.msra.mxu3 %v4166_v23  ;;  %v4273_v51 = vld [vmem:[#allocation13 + $0x50] sm:$0xff] }
 0x53c   :  { %1935 = vmatpush.msra.mxu1 %v4252_v17  ;;  %2046 = vmatpush.msra.mxu0 %v4242_v25 }
 0x53d   :  { %2027 = vmatpush.msra.mxu3 %v4171_v6 }
 0x53e   :  { %1936 = vmatpush.msra.mxu1 %v4258_v43  ;;  %2047 = vmatpush.msra.mxu0 %v4247_v4 }
 0x53f   :  { %2028 = vmatpush.msra.mxu3 %v4175_v26 }
 0x540   :  { %1937 = vmatpush.msra.mxu1 %v4263_v12  ;;  %2048 = vmatpush.msra.mxu0 %v4252_v17 }
 0x541   :  { %2029 = vmatpush.msra.mxu3 %v4178_v31 }
 0x542   :  { %1938 = vmatpush.msra.mxu1 %v4268_v1  ;;  %1774 = vmatmul.f32.gmra.mxu3 %v3996_v55 }
 0x543   :  { %1815 = vmatmul.f32.gmra.mxu0 %v3996_v55  ;;  %2030 = vmatpush.msra.mxu3 %v4181_v53  ;;  %v4332_v55 = vld [vmem:[#allocation13 + $0x160] sm:$0xff] }
 0x544   :  { %1939 = vmatpush.msra.mxu1 %v4273_v51  ;;  %2049 = vmatpush.msra.mxu0 %v4258_v43 }
 0x545   :  { %2031 = vmatpush.msra.mxu3 %v4184_v47  ;;  %1948 = vmatpush.msrb.mxu2 %v4332_v55 }
 0x546   :  { %1940 = vmatpush.msra.mxu1 %v4279_v10  ;;  %2050 = vmatpush.msra.mxu0 %v4263_v12 }
 0x547   :  { %2032 = vmatpush.msra.mxu3 %v4187_v8  ;;  %1949 = vmatpush.msrb.mxu2 %v4339_v40 }
 0x548   :  { %1941 = vmatpush.msra.mxu1 %v4286_v14  ;;  %2051 = vmatpush.msra.mxu0 %v4268_v1 }
 0x549   :  { %2033 = vmatpush.msra.mxu3 %v4190_v0  ;;  %1950 = vmatpush.msrb.mxu2 %v4341_v52 }
 0x54a   :  { %1942 = vmatpush.msra.mxu1 %v4291_v7  ;;  %1777 = vmatmul.f32.gmra.mxu3 %v4085_v18 }
 0x54b   :  { %1943 = vmatmul.f32.vlgmr.msra.gmra.mxu1 %v4986_v3  ;;  %1818 = vmatmul.f32.gmra.mxu0 %v4085_v18  ;;  %v4989_v18 = vld [vmem:[#allocation32_spill] sm:$0xff] }
 0x54c   :  { %2060 = vmatpush.msrb.mxu1 %v4281_v59  ;;  %2034 = vmatpush.msra.mxu3 %v4195_v37 }
 0x54d   :  { %2052 = vmatpush.msra.mxu0 %v4273_v51  ;;  %1951 = vmatpush.msrb.mxu2 %v4345_v28 }
 0x54e   :  { %2035 = vmatpush.msra.mxu3 %v4199_v62  ;;  %2061 = vmatpush.msrb.mxu1 %v4332_v55 }
 0x54f   :  { %2053 = vmatpush.msra.mxu0 %v4279_v10 }
 0x550   :  { %2150 = vmatpush.msrb.mxu3 %v4211_v16  ;;  %2062 = vmatpush.msrb.mxu1 %v4339_v40 }
 0x551   :  { %2054 = vmatpush.msra.mxu0 %v4286_v14 }
 0x552   :  { %2151 = vmatpush.msrb.mxu3 %v4217_v11  ;;  %2063 = vmatpush.msrb.mxu1 %v4341_v52 }
 0x553   :  { %1780 = vmatmul.f32.gmra.mxu3 %v4113_v63  ;;  %1821 = vmatmul.f32.gmra.mxu0 %v4113_v63  ;;  %v290_v63 = vadd.f32 %v4989_v18, %v3709_v34  ;;  %v4350_v34 = vld [vmem:[#allocation13 + $0x100] sm:$0xff]  ;;  %v4399_v18 = vld [vmem:[#allocation13 + $0x28] sm:$0xff] }
 0x554   :  { %2152 = vmatpush.msrb.mxu3 %v4221_v9  ;;  %2055 = vmatpush.msra.mxu0 %v4291_v7  ;;  %4993 = vst [vmem:[#allocation27_spill] sm:$0xff] %v4399_v18 }
 0x555   :  { %2064 = vmatpush.msrb.mxu1 %v4345_v28  ;;  %1952 = vmatpush.msrb.mxu2 %v4350_v34 }
 0x556   :  { %2170 = vmatpush.msrb.mxu0 %v4281_v59  ;;  %2153 = vmatpush.msrb.mxu3 %v4226_v20 }
 0x557   :  { %2065 = vmatpush.msrb.mxu1 %v4350_v34  ;;  %1953 = vmatpush.msrb.mxu2 %v4356_v15 }
 0x558   :  { %2154 = vmatpush.msrb.mxu3 %v4231_v33  ;;  %2171 = vmatpush.msrb.mxu0 %v4332_v55 }
 0x559   :  { %2066 = vmatpush.msrb.mxu1 %v4356_v15  ;;  %1954 = vmatpush.msrb.mxu2 %v4361_v48 }
 0x55a   :  { %2155 = vmatpush.msrb.mxu3 %v4238_v13  ;;  %2172 = vmatpush.msrb.mxu0 %v4339_v40 }
 0x55b   :  { %1783 = vmatmul.f32.gmra.mxu3 %v4129_v58  ;;  %1824 = vmatmul.f32.gmra.mxu0 %v4129_v58 }
 0x55c   :  { %2156 = vmatpush.msrb.mxu3 %v4242_v25  ;;  %2173 = vmatpush.msrb.mxu0 %v4341_v52 }
 0x55d   :  { %2067 = vmatpush.msrb.mxu1 %v4361_v48  ;;  %1955 = vmatpush.msrb.mxu2 %v4366_v60 }
 0x55e   :  { %2157 = vmatpush.msrb.mxu3 %v4247_v4  ;;  %2174 = vmatpush.msrb.mxu0 %v4345_v28 }
 0x55f   :  { %2068 = vmatpush.msrb.mxu1 %v4366_v60  ;;  %1956 = vmatpush.msrb.mxu2 %v4377_v49 }
 0x560   :  { %2158 = vmatpush.msrb.mxu3 %v4252_v17  ;;  %2175 = vmatpush.msrb.mxu0 %v4350_v34 }
 0x561   :  { %2069 = vmatpush.msrb.mxu1 %v4377_v49  ;;  %1957 = vmatpush.msrb.mxu2 %v4381_v45 }
 0x562   :  { %2159 = vmatpush.msrb.mxu3 %v4258_v43  ;;  %2176 = vmatpush.msrb.mxu0 %v4356_v15 }
 0x563   :  { %1786 = vmatmul.f32.gmra.mxu3 %v4209_v46  ;;  %1827 = vmatmul.f32.gmra.mxu0 %v4209_v46 }
 0x564   :  { %2160 = vmatpush.msrb.mxu3 %v4263_v12  ;;  %2177 = vmatpush.msrb.mxu0 %v4361_v48 }
 0x565   :  { %2070 = vmatpush.msrb.mxu1 %v4381_v45  ;;  %1958 = vmatpush.msrb.mxu2 %v4387_v57 }
 0x566   :  { %2161 = vmatpush.msrb.mxu3 %v4268_v1  ;;  %2178 = vmatpush.msrb.mxu0 %v4366_v60 }
 0x567   :  { %2071 = vmatpush.msrb.mxu1 %v4387_v57  ;;  %1959 = vmatpush.msrb.mxu2 %v4392_v41 }
 0x568   :  { %2162 = vmatpush.msrb.mxu3 %v4273_v51  ;;  %2179 = vmatpush.msrb.mxu0 %v4377_v49 }
 0x569   :  { %2072 = vmatpush.msrb.mxu1 %v4392_v41  ;;  %1960 = vmatpush.msrb.mxu2 %v4397_v38 }
 0x56a   :  { %2163 = vmatpush.msrb.mxu3 %v4279_v10  ;;  %2180 = vmatpush.msrb.mxu0 %v4381_v45 }
 0x56b   :  { %2073 = vmatpush.msrb.mxu1 %v4397_v38  ;;  %1961 = vmatpush.msrb.mxu2 %v4399_v18 }
 0x56c   :  { %2164 = vmatpush.msrb.mxu3 %v4286_v14  ;;  %2181 = vmatpush.msrb.mxu0 %v4387_v57 }
 0x56d   :  { %2074 = vmatpush.msrb.mxu1 %v4399_v18 }
 0x56e   :  { %2165 = vmatpush.msrb.mxu3 %v4291_v7  ;;  %2182 = vmatpush.msrb.mxu0 %v4392_v41 }
 0x570   :  { %2183 = vmatpush.msrb.mxu0 %v4397_v38 }
 0x572   :  { %2184 = vmatpush.msrb.mxu0 %v4399_v18 }
 0x5a7   :  { %v1571_v58 = vpop.f32.mrf.mxu0 }
 0x5a8   :  { %v1618_v22 = vadd.f32 %v1571_v58, %v290_v63 }
 0x5aa   :  { %v2866_v21 = vmul.f32 -1.442695, %v1618_v22  ;;  %v4406_v22 = vld [vmem:[#allocation13 + $0x10] sm:$0xff] }
 0x5ab   :  { %4994 = vst [vmem:[#allocation31_spill] sm:$0xff] %v4406_v22  ;;  %1962 = vmatpush.msrb.mxu2 %v4406_v22  ;;  %2075 = vmatpush.msrb.mxu1 %v4406_v22 }
 0x5ac   :  { %2969 = vpow2.f32 %v2866_v21  ;;  %2185 = vmatpush.msrb.mxu0 %v4406_v22  ;;  %v4995_v22 = vld [vmem:[#allocation33_spill] sm:$0xff] }
 0x5ad   :  { %v1551_v19 = vpop.f32.mrf.mxu3  ;;  %2130 = vmatpush.msra.mxu2 %v4147_v56  ;;  %2240 = vmatpush.msra.mxu1 %v4147_v56 }
 0x5ae   :  { %v1598_v5 = vadd.f32 %v1551_v19, %v4990_v42 }
 0x5af   :  { %2131 = vmatpush.msra.mxu2 %v4151_v29  ;;  %2241 = vmatpush.msra.mxu1 %v4151_v29 }
 0x5b0   :  { %v2865_v61 = vmul.f32 -1.442695, %v1598_v5 }
 0x5b1   :  { %2132 = vmatpush.msra.mxu2 %v4154_v39  ;;  %2242 = vmatpush.msra.mxu1 %v4154_v39 }
 0x5b2   :  { %2971 = vpow2.f32 %v2865_v61  ;;  %v2970_v32 = vpop.eup %2969 }
 0x5b3   :  { %v4375_v2 = vadd.f32 1.0, %v2970_v32  ;;  %v1591_v32 = vpop.f32.mrf.mxu1  ;;  %2133 = vmatpush.msra.mxu2 %v4157_v44  ;;  %2243 = vmatpush.msra.mxu1 %v4157_v44 }
 0x5b5   :  { %2134 = vmatpush.msra.mxu2 %v4160_v35  ;;  %2244 = vmatpush.msra.mxu1 %v4160_v35  ;;  %vm1628_vm13 = vweird.f32 %v4375_v2 }
 0x5b7   :  { %2135 = vmatpush.msra.mxu2 %v4163_v54  ;;  %2245 = vmatpush.msra.mxu1 %v4163_v54 }
 0x5b8   :  { %v2972_v30 = vpop.eup %2971 }
 0x5b9   :  { %v1602_v24 = vadd.f32 1.0, %v2972_v30  ;;  %2136 = vmatpush.msra.mxu2 %v4166_v23  ;;  %2246 = vmatpush.msra.mxu1 %v4166_v23 }
 0x5bb   :  { %2973 = vrcp.f32 %v1602_v24  ;;  %v1614_v42 = vand.u32 2147483648, %v1602_v24  ;;  %v1612_v61 = vand.u32 2147483647, %v1602_v24  ;;  %vm1608_vm9 = vweird.f32 %v1602_v24  ;;  %2137 = vmatpush.msra.mxu2 %v4171_v6  ;;  %2247 = vmatpush.msra.mxu1 %v4171_v6 }
 0x5bc   :  { %2975 = vrcp.f32 %v4375_v2 }
 0x5bd   :  { %v1615_v38 = vor.u32 1.1754944e-38, %v1614_v42  ;;  %vm1613_vm11 = vcmp.eq.f32.partialorder %v1612_v61, 8.507059e+37  ;;  %2138 = vmatpush.msra.mxu2 %v4175_v26  ;;  %2248 = vmatpush.msra.mxu1 %v4175_v26 }
 0x5bf   :  { %2139 = vmatpush.msra.mxu2 %v4178_v31  ;;  %2249 = vmatpush.msra.mxu1 %v4178_v31 }
 0x5c1   :  { %v2974_v27 = vpop.eup %2973  ;;  %2140 = vmatpush.msra.mxu2 %v4181_v53  ;;  %2250 = vmatpush.msra.mxu1 %v4181_v53 }
 0x5c2   :  { %v4402_v63 = vpop.eup %2975  ;;  %v1604_v58 = vmul.f32 %v2974_v27, %v1602_v24  ;;  %vm1609_vm8 = vweird.f32 %v2974_v27 }
 0x5c3   :  { %v1624_v19 = vmul.f32 %v4402_v63, %v4375_v2  ;;  %vm1610_vm10 = vmor %vm1608_vm9, %vm1609_vm8  ;;  %vm1629_vm12 = vweird.f32 %v4402_v63  ;;  %2141 = vmatpush.msra.mxu2 %v4184_v47  ;;  %2251 = vmatpush.msra.mxu1 %v4184_v47 }
 0x5c4   :  { %v1605_v21 = vsub.f32 1.0, %v1604_v58  ;;  %vm1630_vm14 = vmor %vm1628_vm13, %vm1629_vm12 }
 0x5c5   :  { %v1625_v58 = vsub.f32 1.0, %v1624_v19  ;;  %2142 = vmatpush.msra.mxu2 %v4187_v8  ;;  %2252 = vmatpush.msra.mxu1 %v4187_v8 }
 0x5c6   :  { %v1606_v5 = vmul.f32 %v2974_v27, %v1605_v21  ;;  %v1638_v21 = vadd.f32 %v4124_v50, %v1591_v32  ;;  %v1647_v32 = vld [vmem:[%s4938_s7] sm:$0x7] }
 0x5c7   :  { %v1626_v19 = vmul.f32 %v4402_v63, %v1625_v58  ;;  %2143 = vmatpush.msra.mxu2 %v4190_v0  ;;  %2253 = vmatpush.msra.mxu1 %v4190_v0 }
 0x5c8   :  { %v1607_v30 = vadd.f32 %v2974_v27, %v1606_v5  ;;  %v331_v5 = vadd.f32 %v4995_v22, %v3731_v36  ;;  %v1634_v36 = vand.u32 2147483648, %v4375_v2 }
 0x5c9   :  { %v1627_v50 = vadd.f32 %v4402_v63, %v1626_v19  ;;  %2144 = vmatpush.msra.mxu2 %v4195_v37  ;;  %2254 = vmatpush.msra.mxu1 %v4195_v37 }
 0x5ca   :  { %v1611_v18 = vsel %vm1610_vm10, %v2974_v27, %v1607_v30  ;;  %v4482_v30 = vperm.slane %v1647_v32, 0 }
 0x5cb   :  { %v1616_v41 = vsel %vm1613_vm11, %v1615_v38, %v1611_v18  ;;  %v1631_v27 = vsel %vm1630_vm14, %v4402_v63, %v1627_v50  ;;  %v1635_v18 = vor.u32 1.1754944e-38, %v1634_v36  ;;  %2145 = vmatpush.msra.mxu2 %v4199_v62  ;;  %2255 = vmatpush.msra.mxu1 %v4199_v62  ;;  %v4489_v50 = vperm.slane %v1647_v32, 1  ;;  %v1769_v36 = vpop.f32.mrf.mxu3 }
 0x5cc   :  { %v1639_v24 = vmul.f32 %v1638_v21, %v1616_v41  ;;  %v1632_v41 = vand.u32 2147483647, %v4375_v2  ;;  %4997 = vst [vmem:[#allocation29_spill] sm:$0xff] %v4482_v30  ;;  %v1924_v21 = vpop.f32.mrf.mxu1 }
 0x5cd   :  { %5000 = vst [vmem:[#allocation33_spill] sm:$0xff] %v4489_v50 }
 0x5ce   :  { %v1640_v42 = vadd.f32 %v1639_v24, %v331_v5  ;;  %vm1633_vm15 = vcmp.eq.f32.partialorder %v1632_v41, 8.507059e+37 }
 0x5cf   :  { %v1636_v61 = vsel %vm1633_vm15, %v1635_v18, %v1631_v27  ;;  %v1770_v27 = vadd.f32 %v1769_v36, %v4489_v50 }
 0x5d0   :  { %2977 = vtanh.f32 %v1640_v42 }
 0x5d4   :  { %v1944_v41 = vpop.f32.mrf.mxu1 }
 0x5d6   :  { %v2978_v38 = vpop.eup %2977 }
 0x5d7   :  { %v1642_v22 = vsub.f32 %v4209_v46, %v2978_v38  ;;  %v1728_v46 = vpop.f32.mrf.mxu2 }
 0x5d8   :  { %v1729_v5 = vadd.f32 %v1728_v46, %v4482_v30 }
 0x5d9   :  { %v1643_v2 = vmul.f32 %v1642_v22, %v1636_v61  ;;  %v1990_v22 = vadd.f32 %v1944_v41, %v1770_v27 }
 0x5da   :  { %v1970_v24 = vadd.f32 %v1924_v21, %v1729_v5 }
 0x5db   :  { %v1644_v63 = vadd.f32 %v2978_v38, %v1643_v2  ;;  %v2868_v2 = vmul.f32 -1.442695, %v1990_v22  ;;  %v4503_v22 = vld [vmem:[%s4939_s8] ss:$0 sm:$0xff] }
 0x5dc   :  { %v2867_v42 = vmul.f32 -1.442695, %v1970_v24 }
 0x5dd   :  { %1748 = vmatmul.f32.gmra.mxu2 %v1644_v63  ;;  %1789 = vmatmul.f32.gmra.mxu3 %v1644_v63 }
 0x5de   :  { %1830 = vmatmul.f32.gmra.mxu0 %v1644_v63  ;;  %2979 = vpow2.f32 %v2867_v42 }
 0x5e4   :  { %v2980_v38 = vpop.eup %2979 }
 0x5e5   :  { %1963 = vmatmul.f32.vlgmr.msrb.gmra.mxu2 %v4986_v3  ;;  %v4477_v3 = vpop.f32.mrf.mxu2  ;;  %v1974_v61 = vadd.f32 1.0, %v2980_v38 }
 0x5e6   :  { %2260 = vmatpush.msrb.mxu2 %v4211_v16  ;;  %4996 = vst [vmem:[#allocation24_spill] sm:$0xff] %v4477_v3 }
 0x5e7   :  { %2981 = vrcp.f32 %v1974_v61  ;;  %v1986_v27 = vand.u32 2147483648, %v1974_v61  ;;  %vm1980_vm1 = vweird.f32 %v1974_v61  ;;  %v1984_v38 = vand.u32 2147483647, %v1974_v61 }
 0x5e8   :  { %2261 = vmatpush.msrb.mxu2 %v4217_v11  ;;  %2983 = vpow2.f32 %v2868_v2  ;;  %v4505_v2 = vperm.slane %v1647_v32, 2 }
 0x5e9   :  { %vm1985_vm3 = vcmp.eq.f32.partialorder %v1984_v38, 8.507059e+37 }
 0x5ea   :  { %2262 = vmatpush.msrb.mxu2 %v4221_v9 }
 0x5ec   :  { %2263 = vmatpush.msrb.mxu2 %v4226_v20 }
 0x5ed   :  { %v4484_v58 = vpop.f32.mrf.mxu2  ;;  %v2982_v46 = vpop.eup %2981 }
 0x5ee   :  { %2264 = vmatpush.msrb.mxu2 %v4231_v33  ;;  %4998 = vst [vmem:[#allocation32_spill] sm:$0xff] %v4484_v58  ;;  %v2984_v21 = vpop.eup %2983  ;;  %v1976_v24 = vmul.f32 %v2982_v46, %v1974_v61  ;;  %vm1981_vm0 = vweird.f32 %v2982_v46 }
 0x5ef   :  { %v1994_v5 = vadd.f32 1.0, %v2984_v21  ;;  %vm1982_vm2 = vmor %vm1980_vm1, %vm1981_vm0 }
 0x5f0   :  { %2265 = vmatpush.msrb.mxu2 %v4238_v13 }
 0x5f1   :  { %2985 = vrcp.f32 %v1994_v5  ;;  %vm2000_vm5 = vweird.f32 %v1994_v5  ;;  %v2004_v32 = vand.u32 2147483647, %v1994_v5 }
 0x5f2   :  { %2266 = vmatpush.msrb.mxu2 %v4242_v25 }
 0x5f3   :  { %vm2005_vm7 = vcmp.eq.f32.partialorder %v2004_v32, 8.507059e+37 }
 0x5f4   :  { %2267 = vmatpush.msrb.mxu2 %v4247_v4 }
 0x5f5   :  { %v4487_v19 = vpop.f32.mrf.mxu2 }
 0x5f6   :  { %2268 = vmatpush.msrb.mxu2 %v4252_v17  ;;  %4999 = vst [vmem:[#allocation25_spill] sm:$0xff] %v4487_v19  ;;  %v1977_v19 = vsub.f32 1.0, %v1976_v24  ;;  %v1810_v24 = vpop.f32.mrf.mxu0 }
 0x5f7   :  { %v2986_v3 = vpop.eup %2985  ;;  %v1811_v30 = vadd.f32 %v1810_v24, %v4505_v2 }
 0x5f8   :  { %2269 = vmatpush.msrb.mxu2 %v4258_v43  ;;  %v1978_v58 = vmul.f32 %v2982_v46, %v1977_v19  ;;  %v1996_v41 = vmul.f32 %v2986_v3, %v1994_v5  ;;  %vm2001_vm4 = vweird.f32 %v2986_v3 }
 0x5f9   :  { %vm2002_vm6 = vmor %vm2000_vm5, %vm2001_vm4 }
 0x5fa   :  { %2270 = vmatpush.msrb.mxu2 %v4263_v12  ;;  %v1997_v19 = vsub.f32 1.0, %v1996_v41 }
 0x5fc   :  { %2271 = vmatpush.msrb.mxu2 %v4268_v1  ;;  %v1998_v50 = vmul.f32 %v2986_v3, %v1997_v19 }
 0x5fd   :  { %v4492_v18 = vpop.f32.mrf.mxu2 }
 0x5fe   :  { %2272 = vmatpush.msrb.mxu2 %v4273_v51  ;;  %5001 = vst [vmem:[#allocation34_spill] sm:$0xff] %v4492_v18  ;;  %v1979_v18 = vadd.f32 %v2982_v46, %v1978_v58  ;;  %v1999_v62 = vadd.f32 %v2986_v3, %v1998_v50 }
 0x600   :  { %2273 = vmatpush.msrb.mxu2 %v4279_v10  ;;  %v1983_v21 = vsel %vm1982_vm2, %v2982_v46, %v1979_v18  ;;  %v2003_v18 = vsel %vm2002_vm6, %v2986_v3, %v1999_v62 }
 0x602   :  { %2274 = vmatpush.msrb.mxu2 %v4286_v14  ;;  %v2006_v14 = vand.u32 2147483648, %v1994_v5 }
 0x604   :  { %2275 = vmatpush.msrb.mxu2 %v4291_v7  ;;  %v2007_v41 = vor.u32 1.1754944e-38, %v2006_v14 }
 0x605   :  { %v4494_v63 = vpop.f32.mrf.mxu2 }
 0x606   :  { %5002 = vst [vmem:[#allocation35_spill] sm:$0xff] %v4494_v63  ;;  %v2008_v38 = vsel %vm2005_vm7, %v2007_v41, %v2003_v18 }
 0x60d   :  { %v4496_v42 = vpop.f32.mrf.mxu2 }
 0x60e   :  { %5003 = vst [vmem:[#allocation36_spill] sm:$0xff] %v4496_v42 }
 0x660   :  { %v4498_v36 = vpop.f32.mrf.mxu2 }
 0x661   :  { %5004 = vst [vmem:[#allocation37_spill] sm:$0xff] %v4498_v36  ;;  %v1987_v36 = vor.u32 1.1754944e-38, %v1986_v27 }
 0x663   :  { %v1988_v63 = vsel %vm1985_vm3, %v1987_v36, %v1983_v21 }
 0x668   :  { %v1964_v42 = vpop.f32.mrf.mxu2 }
 0x669   :  { %v2013_v58 = vadd.f32 %v4503_v22, %v1964_v42 }
 0x66b   :  { %v2014_v61 = vmul.f32 %v2013_v58, %v1988_v63  ;;  %v5019_v63 = vld [vmem:[#allocation33_spill] sm:$0xff] }
 0x66c   :  { %v5020_v58 = vld [vmem:[#allocation29_spill] sm:$0xff] }
 0x66d   :  { %v2015_v7 = vadd.f32 %v2014_v61, %v1811_v30  ;;  %v5021_v61 = vld [vmem:[#allocation24_spill] sm:$0xff] }
 0x66e   :  { %v1732_v32 = vadd.f32 %v5021_v61, %v5020_v58 }
 0x66f   :  { %2987 = vtanh.f32 %v2015_v7 }
 0x675   :  { %v2988_v46 = vpop.eup %2987 }
 0x676   :  { %v2017_v27 = vsub.f32 0.0, %v2988_v46 }
 0x678   :  { %v2018_v42 = vmul.f32 %v2017_v27, %v2008_v38 }
 0x67a   :  { %v4509_v36 = vadd.f32 %v2988_v46, %v2018_v42 }
 0x67c   :  { %2036 = vmatmul.f32.vlgmr.msra.gmra.mxu3 %v4509_v36  ;;  %2056 = vmatmul.f32.vlgmr.msra.gmra.mxu0 %v4509_v36 }
 0x67d   :  { %2076 = vmatmul.f32.vlgmr.msrb.gmra.mxu1 %v4509_v36  ;;  %2280 = vmatpush.msra.mxu3 %v4281_v59 }
 0x67e   :  { %2350 = vmatpush.msra.mxu0 %v4147_v56  ;;  %2370 = vmatpush.msrb.mxu1 %v4211_v16  ;;  %v5005_v56 = vld [vmem:[#allocation30_spill] sm:$0xff] }
 0x67f   :  { %2281 = vmatpush.msra.mxu3 %v4332_v55 }
 0x680   :  { %2351 = vmatpush.msra.mxu0 %v4151_v29  ;;  %2371 = vmatpush.msrb.mxu1 %v4217_v11  ;;  %v5006_v29 = vld [vmem:[#allocation28_spill] sm:$0xff] }
 0x681   :  { %2282 = vmatpush.msra.mxu3 %v4339_v40 }
 0x682   :  { %2352 = vmatpush.msra.mxu0 %v4154_v39  ;;  %2372 = vmatpush.msrb.mxu1 %v4221_v9  ;;  %v5007_v39 = vld [vmem:[#allocation27_spill] sm:$0xff] }
 0x683   :  { %2283 = vmatpush.msra.mxu3 %v4341_v52 }
 0x684   :  { %2353 = vmatpush.msra.mxu0 %v4157_v44  ;;  %2373 = vmatpush.msrb.mxu1 %v4226_v20  ;;  %v5008_v44 = vld [vmem:[#allocation26_spill] sm:$0xff] }
 0x685   :  { %2284 = vmatpush.msra.mxu3 %v4345_v28 }
 0x686   :  { %2354 = vmatpush.msra.mxu0 %v4160_v35  ;;  %2374 = vmatpush.msrb.mxu1 %v4231_v33  ;;  %v5009_v35 = vld [vmem:[#allocation31_spill] sm:$0xff] }
 0x687   :  { %2285 = vmatpush.msra.mxu3 %v4350_v34 }
 0x688   :  { %2355 = vmatpush.msra.mxu0 %v4163_v54  ;;  %2375 = vmatpush.msrb.mxu1 %v4238_v13  ;;  %v5010_v54 = vld [vmem:[#allocation22_spill] sm:$0xff] }
 0x689   :  { %2286 = vmatpush.msra.mxu3 %v4356_v15 }
 0x68a   :  { %2356 = vmatpush.msra.mxu0 %v4166_v23  ;;  %2376 = vmatpush.msrb.mxu1 %v4242_v25  ;;  %v5011_v23 = vld [vmem:[#allocation23_spill] sm:$0xff] }
 0x68b   :  { %2287 = vmatpush.msra.mxu3 %v4361_v48 }
 0x68c   :  { %2357 = vmatpush.msra.mxu0 %v4171_v6  ;;  %2377 = vmatpush.msrb.mxu1 %v4247_v4  ;;  %v1813_v6 = vpop.f32.mrf.mxu0 }
 0x68d   :  { %2288 = vmatpush.msra.mxu3 %v4366_v60 }
 0x68e   :  { %2358 = vmatpush.msra.mxu0 %v4175_v26  ;;  %2378 = vmatpush.msrb.mxu1 %v4252_v17  ;;  %v1772_v26 = vpop.f32.mrf.mxu3 }
 0x68f   :  { %2289 = vmatpush.msra.mxu3 %v4377_v49  ;;  %v1773_v5 = vadd.f32 %v1772_v26, %v5019_v63 }
 0x690   :  { %2359 = vmatpush.msra.mxu0 %v4178_v31  ;;  %2379 = vmatpush.msrb.mxu1 %v4258_v43 }
 0x691   :  { %2290 = vmatpush.msra.mxu3 %v4381_v45 }
 0x692   :  { %2360 = vmatpush.msra.mxu0 %v4181_v53  ;;  %2380 = vmatpush.msrb.mxu1 %v4263_v12 }
 0x693   :  { %2291 = vmatpush.msra.mxu3 %v4387_v57 }
 0x694   :  { %2361 = vmatpush.msra.mxu0 %v4184_v47  ;;  %2381 = vmatpush.msrb.mxu1 %v4268_v1  ;;  %v4562_v31 = vpop.f32.mrf.mxu0 }
 0x695   :  { %2292 = vmatpush.msra.mxu3 %v5005_v56 }
 0x696   :  { %2362 = vmatpush.msra.mxu0 %v4187_v8  ;;  %2382 = vmatpush.msrb.mxu1 %v4273_v51  ;;  %v4564_v53 = vpop.f32.mrf.mxu3 }
 0x697   :  { %2293 = vmatpush.msra.mxu3 %v5006_v29 }
 0x698   :  { %2363 = vmatpush.msra.mxu0 %v4190_v0  ;;  %2383 = vmatpush.msrb.mxu1 %v4279_v10 }
 0x699   :  { %2294 = vmatpush.msra.mxu3 %v5007_v39 }
 0x69a   :  { %2364 = vmatpush.msra.mxu0 %v4195_v37  ;;  %2384 = vmatpush.msrb.mxu1 %v5008_v44 }
 0x69b   :  { %2295 = vmatpush.msra.mxu3 %v5009_v35 }
 0x69c   :  { %2365 = vmatpush.msra.mxu0 %v5010_v54  ;;  %2385 = vmatpush.msrb.mxu1 %v5011_v23  ;;  %v4566_v47 = vpop.f32.mrf.mxu0 }
 0x69e   :  { %v4568_v8 = vpop.f32.mrf.mxu3 }
 0x6a4   :  { %v4570_v0 = vpop.f32.mrf.mxu0 }
 0x6a5   :  { %5012 = vst [vmem:[#allocation30_spill] sm:$0xff] %v4570_v0 }
 0x6a6   :  { %v4572_v37 = vpop.f32.mrf.mxu3 }
 0x6ac   :  { %v4574_v62 = vpop.f32.mrf.mxu0 }
 0x6ad   :  { %5013 = vst [vmem:[#allocation28_spill] sm:$0xff] %v4574_v62 }
 0x6ae   :  { %v4576_v14 = vpop.f32.mrf.mxu3 }
 0x6af   :  { %5014 = vst [vmem:[#allocation27_spill] sm:$0xff] %v4576_v14 }
 0x6b4   :  { %v4578_v7 = vpop.f32.mrf.mxu0 }
 0x6b5   :  { %5015 = vst [vmem:[#allocation26_spill] sm:$0xff] %v4578_v7 }
 0x6b6   :  { %v4580_v3 = vpop.f32.mrf.mxu3 }
 0x6b7   :  { %5016 = vst [vmem:[#allocation31_spill] sm:$0xff] %v4580_v3 }
 0x6bc   :  { %v4582_v30 = vpop.f32.mrf.mxu0 }
 0x6bd   :  { %5017 = vst [vmem:[#allocation22_spill] sm:$0xff] %v4582_v30 }
 0x6be   :  { %v4584_v50 = vpop.f32.mrf.mxu3 }
 0x6bf   :  { %5018 = vst [vmem:[#allocation23_spill] sm:$0xff] %v4584_v50 }
 0x6f9   :  { %v2057_v21 = vpop.f32.mrf.mxu0 }
 0x6fa   :  { %v2103_v24 = vadd.f32 %v2057_v21, %v1773_v5  ;;  %v2077_v3 = vpop.f32.mrf.mxu1 }
 0x6fc   :  { %v2870_v19 = vmul.f32 -1.442695, %v2103_v24 }
 0x6fe   :  { %2989 = vpow2.f32 %v2870_v19 }
 0x6ff   :  { %v2037_v18 = vpop.f32.mrf.mxu3 }
 0x700   :  { %v2083_v46 = vadd.f32 %v2037_v18, %v1732_v32 }
 0x702   :  { %v2869_v41 = vmul.f32 -1.442695, %v2083_v46  ;;  %v2123_v46 = vadd.f32 %v4503_v22, %v2077_v3 }
 0x704   :  { %2991 = vpow2.f32 %v2869_v41  ;;  %v2990_v27 = vpop.eup %2989 }
 0x705   :  { %v2107_v42 = vadd.f32 1.0, %v2990_v27 }
 0x707   :  { %v2119_v0 = vand.u32 2147483648, %v2107_v42  ;;  %vm2113_vm13 = vweird.f32 %v2107_v42 }
 0x70a   :  { %v2992_v38 = vpop.eup %2991 }
 0x70b   :  { %v2087_v54 = vadd.f32 1.0, %v2992_v38  ;;  %v1814_v38 = vadd.f32 %v1813_v6, %v4505_v2  ;;  %v4598_v6 = vld [vmem:[#allocation13 + $0x168] sm:$0xff] }
 0x70d   :  { %2993 = vrcp.f32 %v2087_v54  ;;  %v2099_v21 = vand.u32 2147483648, %v2087_v54  ;;  %v2097_v61 = vand.u32 2147483647, %v2087_v54  ;;  %vm2093_vm9 = vweird.f32 %v2087_v54 }
 0x70e   :  { %2995 = vrcp.f32 %v2107_v42 }
 0x70f   :  { %v2100_v18 = vor.u32 1.1754944e-38, %v2099_v21  ;;  %vm2098_vm11 = vcmp.eq.f32.partialorder %v2097_v61, 8.507059e+37  ;;  %v2120_v21 = vor.u32 1.1754944e-38, %v2119_v0  ;;  %v4608_v0 = vld [vmem:[#allocation13 + $0x138] sm:$0xff] }
 0x713   :  { %v2994_v30 = vpop.eup %2993 }
 0x714   :  { %v2996_v50 = vpop.eup %2995  ;;  %v2089_v26 = vmul.f32 %v2994_v30, %v2087_v54  ;;  %vm2094_vm8 = vweird.f32 %v2994_v30 }
 0x715   :  { %v2109_v5 = vmul.f32 %v2996_v50, %v2107_v42  ;;  %vm2095_vm10 = vmor %vm2093_vm9, %vm2094_vm8  ;;  %vm2114_vm12 = vweird.f32 %v2996_v50 }
 0x716   :  { %v2090_v7 = vsub.f32 1.0, %v2089_v26  ;;  %vm2115_vm14 = vmor %vm2113_vm13, %vm2114_vm12 }
 0x717   :  { %v2110_v19 = vsub.f32 1.0, %v2109_v5 }
 0x718   :  { %v2091_v24 = vmul.f32 %v2994_v30, %v2090_v7 }
 0x719   :  { %v2111_v26 = vmul.f32 %v2996_v50, %v2110_v19 }
 0x71a   :  { %v2092_v32 = vadd.f32 %v2994_v30, %v2091_v24  ;;  %v2117_v24 = vand.u32 2147483647, %v2107_v42 }
 0x71b   :  { %v2112_v7 = vadd.f32 %v2996_v50, %v2111_v26 }
 0x71c   :  { %v2096_v41 = vsel %vm2095_vm10, %v2994_v30, %v2092_v32  ;;  %vm2118_vm15 = vcmp.eq.f32.partialorder %v2117_v24, 8.507059e+37 }
 0x71d   :  { %v2101_v27 = vsel %vm2098_vm11, %v2100_v18, %v2096_v41  ;;  %v2116_v54 = vsel %vm2115_vm14, %v2996_v50, %v2112_v7 }
 0x71e   :  { %v2124_v62 = vmul.f32 %v2123_v46, %v2101_v27  ;;  %v2121_v30 = vsel %vm2118_vm15, %v2120_v21, %v2116_v54 }
 0x720   :  { %v2125_v14 = vadd.f32 %v2124_v62, %v1814_v38  ;;  %v4613_v62 = vld [vmem:[#allocation13 + $0x120] sm:$0xff] }
 0x722   :  { %2997 = vtanh.f32 %v2125_v14 }
 0x728   :  { %v2998_v5 = vpop.eup %2997 }
 0x729   :  { %v2127_v3 = vsub.f32 %v4509_v36, %v2998_v5  ;;  %v4603_v36 = vld [vmem:[#allocation13 + $0x150] sm:$0xff] }
 0x72b   :  { %v2128_v61 = vmul.f32 %v2127_v3, %v2121_v30 }
 0x72d   :  { %v4592_v32 = vadd.f32 %v2998_v5, %v2128_v61 }
 0x72f   :  { %2146 = vmatmul.f32.vlgmr.msra.gmra.mxu2 %v4592_v32  ;;  %2166 = vmatmul.f32.vlgmr.msrb.gmra.mxu3 %v4592_v32 }
 0x730   :  { %2186 = vmatmul.f32.vlgmr.msrb.gmra.mxu0 %v4592_v32  ;;  %2390 = vmatpush.msra.mxu2 %v4281_v59 }
 0x731   :  { %2460 = vmatpush.msrb.mxu3 %v4598_v6  ;;  %2480 = vmatpush.msrb.mxu0 %v4211_v16  ;;  %v4618_v16 = vld [vmem:[#allocation13 + $0x108] sm:$0xff] }
 0x732   :  { %2391 = vmatpush.msra.mxu2 %v4332_v55 }
 0x733   :  { %2461 = vmatpush.msrb.mxu3 %v4603_v36  ;;  %2481 = vmatpush.msrb.mxu0 %v4217_v11  ;;  %v4623_v11 = vld [vmem:[#allocation13 + $0xf0] sm:$0xff] }
 0x734   :  { %2392 = vmatpush.msra.mxu2 %v4339_v40 }
 0x735   :  { %2462 = vmatpush.msrb.mxu3 %v4608_v0  ;;  %2482 = vmatpush.msrb.mxu0 %v4221_v9  ;;  %v4628_v9 = vld [vmem:[#allocation13 + $0xd8] sm:$0xff] }
 0x736   :  { %2393 = vmatpush.msra.mxu2 %v4341_v52 }
 0x737   :  { %2463 = vmatpush.msrb.mxu3 %v4613_v62  ;;  %2483 = vmatpush.msrb.mxu0 %v4226_v20  ;;  %v4633_v20 = vld [vmem:[#allocation13 + $0xc0] sm:$0xff] }
 0x738   :  { %2394 = vmatpush.msra.mxu2 %v4345_v28 }
 0x739   :  { %2464 = vmatpush.msrb.mxu3 %v4618_v16  ;;  %2484 = vmatpush.msrb.mxu0 %v4231_v33  ;;  %v4638_v33 = vld [vmem:[#allocation13 + $0xa8] sm:$0xff] }
 0x73a   :  { %2395 = vmatpush.msra.mxu2 %v4350_v34 }
 0x73b   :  { %2465 = vmatpush.msrb.mxu3 %v4623_v11  ;;  %2485 = vmatpush.msrb.mxu0 %v4238_v13  ;;  %v4643_v13 = vld [vmem:[#allocation13 + $0x90] sm:$0xff] }
 0x73c   :  { %2396 = vmatpush.msra.mxu2 %v4356_v15 }
 0x73d   :  { %2466 = vmatpush.msrb.mxu3 %v4628_v9  ;;  %2486 = vmatpush.msrb.mxu0 %v4242_v25  ;;  %v4648_v25 = vld [vmem:[#allocation13 + $0x78] sm:$0xff] }
 0x73e   :  { %2397 = vmatpush.msra.mxu2 %v4361_v48 }
 0x73f   :  { %2467 = vmatpush.msrb.mxu3 %v4633_v20  ;;  %2487 = vmatpush.msrb.mxu0 %v4247_v4  ;;  %v4653_v4 = vld [vmem:[#allocation13 + $0x60] sm:$0xff] }
 0x740   :  { %2398 = vmatpush.msra.mxu2 %v4366_v60 }
 0x741   :  { %2468 = vmatpush.msrb.mxu3 %v4638_v33  ;;  %2488 = vmatpush.msrb.mxu0 %v4252_v17  ;;  %v4658_v17 = vld [vmem:[#allocation13 + $0x48] sm:$0xff] }
 0x742   :  { %2399 = vmatpush.msra.mxu2 %v4377_v49 }
 0x743   :  { %2469 = vmatpush.msrb.mxu3 %v4643_v13  ;;  %2489 = vmatpush.msrb.mxu0 %v4258_v43  ;;  %v4663_v43 = vld [vmem:[#allocation13 + $0x30] sm:$0xff] }
 0x744   :  { %2400 = vmatpush.msra.mxu2 %v4381_v45 }
 0x745   :  { %2470 = vmatpush.msrb.mxu3 %v4648_v25  ;;  %2490 = vmatpush.msrb.mxu0 %v4263_v12  ;;  %v4668_v12 = vld [vmem:[#allocation13 + $0x18] sm:$0xff] }
 0x746   :  { %2401 = vmatpush.msra.mxu2 %v4387_v57 }
 0x747   :  { %2471 = vmatpush.msrb.mxu3 %v4653_v4  ;;  %2491 = vmatpush.msrb.mxu0 %v4268_v1  ;;  %v4673_v1 = vld [vmem:[#allocation13] sm:$0xff] }
 0x748   :  { %2402 = vmatpush.msra.mxu2 %v5005_v56 }
 0x749   :  { %2472 = vmatpush.msrb.mxu3 %v4658_v17  ;;  %2492 = vmatpush.msrb.mxu0 %v4273_v51  ;;  %v5022_v51 = vld [vmem:[#allocation32_spill] sm:$0xff] }
 0x74a   :  { %2403 = vmatpush.msra.mxu2 %v5006_v29  ;;  %v1735_v14 = vadd.f32 %v5022_v51, %v5020_v58 }
 0x74b   :  { %2473 = vmatpush.msrb.mxu3 %v4663_v43  ;;  %2493 = vmatpush.msrb.mxu0 %v4279_v10  ;;  %v1776_v10 = vadd.f32 %v4564_v53, %v5019_v63 }
 0x74c   :  { %2404 = vmatpush.msra.mxu2 %v5007_v39 }
 0x74d   :  { %2474 = vmatpush.msrb.mxu3 %v4668_v12  ;;  %2494 = vmatpush.msrb.mxu0 %v5008_v44 }
 0x74e   :  { %2405 = vmatpush.msra.mxu2 %v5009_v35 }
 0x74f   :  { %2475 = vmatpush.msrb.mxu3 %v4673_v1  ;;  %2495 = vmatpush.msrb.mxu0 %v5011_v23 }
 0x7ad   :  { %v2187_v30 = vpop.f32.mrf.mxu0 }
 0x7b2   :  { %v2147_v50 = vpop.f32.mrf.mxu2  ;;  %v2167_v42 = vpop.f32.mrf.mxu3 }
 0x7b3   :  { %v2193_v19 = vadd.f32 %v2147_v50, %v1735_v14  ;;  %v2213_v18 = vadd.f32 %v2167_v42, %v1776_v10  ;;  %v2233_v10 = vadd.f32 %v4503_v22, %v2187_v30 }
 0x7b5   :  { %v2871_v46 = vmul.f32 -1.442695, %v2193_v19  ;;  %v2872_v44 = vmul.f32 -1.442695, %v2213_v18  ;;  %v1817_v19 = vadd.f32 %v4562_v31, %v4505_v2  ;;  %v4692_v31 = vld [vmem:[#allocation13 + $0x170] sm:$0xff] }
 0x7b7   :  { %2999 = vpow2.f32 %v2871_v46 }
 0x7b8   :  { %3001 = vpow2.f32 %v2872_v44 }
 0x7bd   :  { %v3000_v41 = vpop.eup %2999 }
 0x7be   :  { %v3002_v27 = vpop.eup %3001  ;;  %v2197_v38 = vadd.f32 1.0, %v3000_v41 }
 0x7bf   :  { %v2217_v26 = vadd.f32 1.0, %v3002_v27 }
 0x7c0   :  { %3003 = vrcp.f32 %v2197_v38  ;;  %v2209_v5 = vand.u32 2147483648, %v2197_v38  ;;  %v2207_v3 = vand.u32 2147483647, %v2197_v38  ;;  %vm2203_vm1 = vweird.f32 %v2197_v38 }
 0x7c1   :  { %3005 = vrcp.f32 %v2217_v26  ;;  %v2229_v27 = vand.u32 2147483648, %v2217_v26  ;;  %vm2223_vm5 = vweird.f32 %v2217_v26 }
 0x7c2   :  { %v2210_v51 = vor.u32 1.1754944e-38, %v2209_v5  ;;  %vm2208_vm3 = vcmp.eq.f32.partialorder %v2207_v3, 8.507059e+37 }
 0x7c3   :  { %v2230_v5 = vor.u32 1.1754944e-38, %v2229_v27 }
 0x7c6   :  { %v3004_v23 = vpop.eup %3003 }
 0x7c7   :  { %v3006_v7 = vpop.eup %3005  ;;  %v2199_v24 = vmul.f32 %v3004_v23, %v2197_v38  ;;  %vm2204_vm0 = vweird.f32 %v3004_v23  ;;  %v2227_v38 = vand.u32 2147483647, %v2217_v26 }
 0x7c8   :  { %v2219_v53 = vmul.f32 %v3006_v7, %v2217_v26  ;;  %vm2205_vm2 = vmor %vm2203_vm1, %vm2204_vm0  ;;  %vm2224_vm4 = vweird.f32 %v3006_v7  ;;  %v4702_v26 = vld [vmem:[#allocation13 + $0x140] sm:$0xff] }
 0x7c9   :  { %v2200_v54 = vsub.f32 1.0, %v2199_v24  ;;  %vm2225_vm6 = vmor %vm2223_vm5, %vm2224_vm4  ;;  %vm2228_vm7 = vcmp.eq.f32.partialorder %v2227_v38, 8.507059e+37 }
 0x7ca   :  { %v2220_v14 = vsub.f32 1.0, %v2219_v53 }
 0x7cb   :  { %v2201_v21 = vmul.f32 %v3004_v23, %v2200_v54 }
 0x7cc   :  { %v2221_v46 = vmul.f32 %v3006_v7, %v2220_v14 }
 0x7cd   :  { %v2202_v61 = vadd.f32 %v3004_v23, %v2201_v21 }
 0x7ce   :  { %v2222_v41 = vadd.f32 %v3006_v7, %v2221_v46 }
 0x7cf   :  { %v2206_v50 = vsel %vm2205_vm2, %v3004_v23, %v2202_v61 }
 0x7d0   :  { %v2211_v42 = vsel %vm2208_vm3, %v2210_v51, %v2206_v50  ;;  %v2226_v24 = vsel %vm2225_vm6, %v3006_v7, %v2222_v41  ;;  %v1779_v51 = vadd.f32 %v4568_v8, %v5019_v63 }
 0x7d1   :  { %v2234_v18 = vmul.f32 %v2233_v10, %v2211_v42  ;;  %v2231_v53 = vsel %vm2228_vm7, %v2230_v5, %v2226_v24 }
 0x7d3   :  { %v2235_v44 = vadd.f32 %v2234_v18, %v1817_v19 }
 0x7d5   :  { %3007 = vtanh.f32 %v2235_v44 }
 0x7db   :  { %v3008_v54 = vpop.eup %3007 }
 0x7dc   :  { %v2237_v23 = vsub.f32 %v4592_v32, %v3008_v54  ;;  %v4697_v32 = vld [vmem:[#allocation13 + $0x158] sm:$0xff] }
 0x7de   :  { %v2238_v21 = vmul.f32 %v2237_v23, %v2231_v53 }
 0x7e0   :  { %v4685_v3 = vadd.f32 %v3008_v54, %v2238_v21 }
 0x7e2   :  { %2256 = vmatmul.f32.vlgmr.msra.gmra.mxu1 %v4685_v3  ;;  %2276 = vmatmul.f32.vlgmr.msrb.gmra.mxu2 %v4685_v3 }
 0x7e3   :  { %2296 = vmatmul.f32.vlgmr.msra.gmra.mxu3 %v4685_v3  ;;  %2500 = vmatpush.msra.mxu1 %v4281_v59  ;;  %v4707_v59 = vld [vmem:[#allocation13 + $0x128] sm:$0xff] }
 0x7e4   :  { %2570 = vmatpush.msrb.mxu2 %v4598_v6  ;;  %2590 = vmatpush.msra.mxu3 %v4692_v31 }
 0x7e5   :  { %2501 = vmatpush.msra.mxu1 %v4332_v55  ;;  %v4712_v55 = vld [vmem:[#allocation13 + $0x110] sm:$0xff] }
 0x7e6   :  { %2571 = vmatpush.msrb.mxu2 %v4603_v36  ;;  %2591 = vmatpush.msra.mxu3 %v4697_v32 }
 0x7e7   :  { %2502 = vmatpush.msra.mxu1 %v4339_v40  ;;  %v4717_v40 = vld [vmem:[#allocation13 + $0xf8] sm:$0xff] }
 0x7e8   :  { %2572 = vmatpush.msrb.mxu2 %v4608_v0  ;;  %2592 = vmatpush.msra.mxu3 %v4702_v26 }
 0x7e9   :  { %2503 = vmatpush.msra.mxu1 %v4341_v52  ;;  %v4722_v52 = vld [vmem:[#allocation13 + $0xe0] sm:$0xff] }
 0x7ea   :  { %2573 = vmatpush.msrb.mxu2 %v4613_v62  ;;  %2593 = vmatpush.msra.mxu3 %v4707_v59 }
 0x7eb   :  { %2504 = vmatpush.msra.mxu1 %v4345_v28  ;;  %v4727_v28 = vld [vmem:[#allocation13 + $0xc8] sm:$0xff] }
 0x7ec   :  { %2574 = vmatpush.msrb.mxu2 %v4618_v16  ;;  %2594 = vmatpush.msra.mxu3 %v4712_v55 }
 0x7ed   :  { %2505 = vmatpush.msra.mxu1 %v4350_v34  ;;  %v4732_v34 = vld [vmem:[#allocation13 + $0xb0] sm:$0xff] }
 0x7ee   :  { %2575 = vmatpush.msrb.mxu2 %v4623_v11  ;;  %2595 = vmatpush.msra.mxu3 %v4717_v40 }
 0x7ef   :  { %2506 = vmatpush.msra.mxu1 %v4356_v15  ;;  %v4737_v15 = vld [vmem:[#allocation13 + $0x98] sm:$0xff] }
 0x7f0   :  { %2576 = vmatpush.msrb.mxu2 %v4628_v9  ;;  %2596 = vmatpush.msra.mxu3 %v4722_v52 }
 0x7f1   :  { %2507 = vmatpush.msra.mxu1 %v4361_v48  ;;  %v4742_v48 = vld [vmem:[#allocation13 + $0x80] sm:$0xff] }
 0x7f2   :  { %2577 = vmatpush.msrb.mxu2 %v4633_v20  ;;  %2597 = vmatpush.msra.mxu3 %v4727_v28 }
 0x7f3   :  { %2508 = vmatpush.msra.mxu1 %v4366_v60  ;;  %v4747_v60 = vld [vmem:[#allocation13 + $0x68] sm:$0xff] }
 0x7f4   :  { %2578 = vmatpush.msrb.mxu2 %v4638_v33  ;;  %2598 = vmatpush.msra.mxu3 %v4732_v34 }
 0x7f5   :  { %2509 = vmatpush.msra.mxu1 %v4377_v49  ;;  %v4752_v49 = vld [vmem:[#allocation13 + $0x50] sm:$0xff] }
 0x7f6   :  { %2579 = vmatpush.msrb.mxu2 %v4643_v13  ;;  %2599 = vmatpush.msra.mxu3 %v4737_v15 }
 0x7f7   :  { %2510 = vmatpush.msra.mxu1 %v4381_v45  ;;  %v4757_v45 = vld [vmem:[#allocation13 + $0x38] sm:$0xff] }
 0x7f8   :  { %2580 = vmatpush.msrb.mxu2 %v4648_v25  ;;  %2600 = vmatpush.msra.mxu3 %v4742_v48 }
 0x7f9   :  { %2511 = vmatpush.msra.mxu1 %v4387_v57  ;;  %v4762_v57 = vld [vmem:[#allocation13 + $0x20] sm:$0xff] }
 0x7fa   :  { %2581 = vmatpush.msrb.mxu2 %v4653_v4  ;;  %2601 = vmatpush.msra.mxu3 %v4747_v60 }
 0x7fb   :  { %2512 = vmatpush.msra.mxu1 %v5005_v56  ;;  %v4767_v56 = vld [vmem:[#allocation13 + $0x8] sm:$0xff] }
 0x7fc   :  { %2582 = vmatpush.msrb.mxu2 %v4658_v17  ;;  %2602 = vmatpush.msra.mxu3 %v4752_v49 }
 0x7fd   :  { %2513 = vmatpush.msra.mxu1 %v5006_v29  ;;  %v5023_v29 = vld [vmem:[#allocation25_spill] sm:$0xff] }
 0x7fe   :  { %2583 = vmatpush.msrb.mxu2 %v4663_v43  ;;  %2603 = vmatpush.msra.mxu3 %v4757_v45  ;;  %v1738_v7 = vadd.f32 %v5023_v29, %v5020_v58 }
 0x7ff   :  { %2514 = vmatpush.msra.mxu1 %v5007_v39 }
 0x800   :  { %2584 = vmatpush.msrb.mxu2 %v4668_v12  ;;  %2604 = vmatpush.msra.mxu3 %v4762_v57 }
 0x801   :  { %2515 = vmatpush.msra.mxu1 %v5009_v35 }
 0x802   :  { %2585 = vmatpush.msrb.mxu2 %v4673_v1  ;;  %2605 = vmatpush.msra.mxu3 %v4767_v56 }
 0x85f   :  { %v2257_v30 = vpop.f32.mrf.mxu1 }
 0x860   :  { %v2303_v61 = vadd.f32 %v2257_v30, %v1738_v7 }
 0x862   :  { %v2873_v39 = vmul.f32 -1.442695, %v2303_v61  ;;  %v1820_v61 = vadd.f32 %v4566_v47, %v4505_v2  ;;  %v4783_v47 = vld [vmem:[#allocation13 + $0x178] sm:$0xff] }
 0x864   :  { %3009 = vpow2.f32 %v2873_v39 }
 0x865   :  { %v2277_v14 = vpop.f32.mrf.mxu2 }
 0x866   :  { %v2323_v10 = vadd.f32 %v2277_v14, %v1779_v51  ;;  %v2297_v8 = vpop.f32.mrf.mxu3 }
 0x867   :  { %v2343_v7 = vadd.f32 %v4503_v22, %v2297_v8 }
 0x868   :  { %v2874_v50 = vmul.f32 -1.442695, %v2323_v10 }
 0x86a   :  { %v3010_v35 = vpop.eup %3009  ;;  %3011 = vpow2.f32 %v2874_v50 }
 0x86b   :  { %v2307_v42 = vadd.f32 1.0, %v3010_v35 }
 0x86d   :  { %3013 = vrcp.f32 %v2307_v42  ;;  %v2319_v27 = vand.u32 2147483648, %v2307_v42  ;;  %v2317_v24 = vand.u32 2147483647, %v2307_v42  ;;  %vm2313_vm9 = vweird.f32 %v2307_v42 }
 0x86f   :  { %v2320_v53 = vor.u32 1.1754944e-38, %v2319_v27  ;;  %vm2318_vm11 = vcmp.eq.f32.partialorder %v2317_v24, 8.507059e+37  ;;  %v4798_v24 = vld [vmem:[#allocation13 + $0x130] sm:$0xff] }
 0x870   :  { %v3012_v19 = vpop.eup %3011 }
 0x871   :  { %v2327_v18 = vadd.f32 1.0, %v3012_v19 }
 0x873   :  { %v3014_v46 = vpop.eup %3013  ;;  %3015 = vrcp.f32 %v2327_v18  ;;  %v2339_v50 = vand.u32 2147483648, %v2327_v18  ;;  %vm2333_vm13 = vweird.f32 %v2327_v18  ;;  %v2337_v35 = vand.u32 2147483647, %v2327_v18 }
 0x874   :  { %v2309_v44 = vmul.f32 %v3014_v46, %v2307_v42  ;;  %vm2314_vm8 = vweird.f32 %v3014_v46 }
 0x875   :  { %vm2315_vm10 = vmor %vm2313_vm9, %vm2314_vm8  ;;  %vm2338_vm15 = vcmp.eq.f32.partialorder %v2337_v35, 8.507059e+37 }
 0x876   :  { %v2310_v41 = vsub.f32 1.0, %v2309_v44 }
 0x878   :  { %v2311_v38 = vmul.f32 %v3014_v46, %v2310_v41 }
 0x879   :  { %v3016_v54 = vpop.eup %3015 }
 0x87a   :  { %v2329_v5 = vmul.f32 %v3016_v54, %v2327_v18  ;;  %v2312_v23 = vadd.f32 %v3014_v46, %v2311_v38  ;;  %vm2334_vm12 = vweird.f32 %v3016_v54  ;;  %v4788_v18 = vld [vmem:[#allocation13 + $0x160] sm:$0xff] }
 0x87b   :  { %vm2335_vm14 = vmor %vm2333_vm13, %vm2334_vm12 }
 0x87c   :  { %v2330_v21 = vsub.f32 1.0, %v2329_v5  ;;  %v2316_v29 = vsel %vm2315_vm10, %v3014_v46, %v2312_v23  ;;  %v2340_v46 = vor.u32 1.1754944e-38, %v2339_v50 }
 0x87d   :  { %v2321_v30 = vsel %vm2318_vm11, %v2320_v53, %v2316_v29 }
 0x87e   :  { %v2344_v39 = vmul.f32 %v2343_v7, %v2321_v30  ;;  %v2331_v51 = vmul.f32 %v3016_v54, %v2330_v21  ;;  %v5025_v7 = vld [vmem:[#allocation30_spill] sm:$0xff] }
 0x87f   :  { %v1823_v30 = vadd.f32 %v5025_v7, %v4505_v2 }
 0x880   :  { %v2345_v14 = vadd.f32 %v2344_v39, %v1820_v61  ;;  %v2332_v10 = vadd.f32 %v3016_v54, %v2331_v51 }
 0x882   :  { %3017 = vtanh.f32 %v2345_v14  ;;  %v2336_v42 = vsel %vm2335_vm14, %v3016_v54, %v2332_v10 }
 0x883   :  { %v2341_v41 = vsel %vm2338_vm15, %v2340_v46, %v2336_v42 }
 0x888   :  { %v3018_v19 = vpop.eup %3017 }
 0x889   :  { %v2347_v44 = vsub.f32 %v4685_v3, %v3018_v19  ;;  %v4793_v3 = vld [vmem:[#allocation13 + $0x148] sm:$0xff] }
 0x88b   :  { %v2348_v27 = vmul.f32 %v2347_v44, %v2341_v41 }
 0x88d   :  { %v4778_v38 = vadd.f32 %v3018_v19, %v2348_v27  ;;  %v5026_v27 = vld [vmem:[#allocation27_spill] sm:$0xff] }
 0x88f   :  { %2366 = vmatmul.f32.vlgmr.msra.gmra.mxu0 %v4778_v38  ;;  %2386 = vmatmul.f32.vlgmr.msrb.gmra.mxu1 %v4778_v38 }
 0x890   :  { %2406 = vmatmul.f32.vlgmr.msra.gmra.mxu2 %v4778_v38  ;;  %2610 = vmatpush.msra.mxu0 %v4783_v47 }
 0x891   :  { %2680 = vmatpush.msrb.mxu1 %v4598_v6  ;;  %2700 = vmatpush.msra.mxu2 %v4692_v31  ;;  %v4803_v6 = vld [vmem:[#allocation13 + $0x118] sm:$0xff]  ;;  %v1782_v31 = vadd.f32 %v4572_v37, %v5019_v63 }
 0x892   :  { %2611 = vmatpush.msra.mxu0 %v4788_v18 }
 0x893   :  { %2681 = vmatpush.msrb.mxu1 %v4603_v36  ;;  %2701 = vmatpush.msra.mxu2 %v4697_v32  ;;  %v4808_v36 = vld [vmem:[#allocation13 + $0x100] sm:$0xff] }
 0x894   :  { %2612 = vmatpush.msra.mxu0 %v4793_v3 }
 0x895   :  { %2682 = vmatpush.msrb.mxu1 %v4608_v0  ;;  %2702 = vmatpush.msra.mxu2 %v4702_v26  ;;  %v4813_v0 = vld [vmem:[#allocation13 + $0xe8] sm:$0xff] }
 0x896   :  { %2613 = vmatpush.msra.mxu0 %v4798_v24 }
 0x897   :  { %2683 = vmatpush.msrb.mxu1 %v4613_v62  ;;  %2703 = vmatpush.msra.mxu2 %v4707_v59  ;;  %v4818_v62 = vld [vmem:[#allocation13 + $0xd0] sm:$0xff] }
 0x898   :  { %2614 = vmatpush.msra.mxu0 %v4803_v6 }
 0x899   :  { %2684 = vmatpush.msrb.mxu1 %v4618_v16  ;;  %2704 = vmatpush.msra.mxu2 %v4712_v55  ;;  %v4823_v16 = vld [vmem:[#allocation13 + $0xb8] sm:$0xff] }
 0x89a   :  { %2615 = vmatpush.msra.mxu0 %v4808_v36 }
 0x89b   :  { %2685 = vmatpush.msrb.mxu1 %v4623_v11  ;;  %2705 = vmatpush.msra.mxu2 %v4717_v40  ;;  %v4828_v11 = vld [vmem:[#allocation13 + $0xa0] sm:$0xff] }
 0x89c   :  { %2616 = vmatpush.msra.mxu0 %v4813_v0 }
 0x89d   :  { %2686 = vmatpush.msrb.mxu1 %v4628_v9  ;;  %2706 = vmatpush.msra.mxu2 %v4722_v52  ;;  %v4833_v9 = vld [vmem:[#allocation13 + $0x88] sm:$0xff] }
 0x89e   :  { %2617 = vmatpush.msra.mxu0 %v4818_v62 }
 0x89f   :  { %2687 = vmatpush.msrb.mxu1 %v4633_v20  ;;  %2707 = vmatpush.msra.mxu2 %v4727_v28  ;;  %v4838_v20 = vld [vmem:[#allocation13 + $0x70] sm:$0xff] }
 0x8a0   :  { %2618 = vmatpush.msra.mxu0 %v4823_v16 }
 0x8a1   :  { %2688 = vmatpush.msrb.mxu1 %v4638_v33  ;;  %2708 = vmatpush.msra.mxu2 %v4732_v34  ;;  %v4843_v33 = vld [vmem:[#allocation13 + $0x58] sm:$0xff] }
 0x8a2   :  { %2619 = vmatpush.msra.mxu0 %v4828_v11 }
 0x8a3   :  { %2689 = vmatpush.msrb.mxu1 %v4643_v13  ;;  %2709 = vmatpush.msra.mxu2 %v4737_v15  ;;  %v4848_v13 = vld [vmem:[#allocation13 + $0x40] sm:$0xff] }
 0x8a4   :  { %2620 = vmatpush.msra.mxu0 %v4833_v9 }
 0x8a5   :  { %2690 = vmatpush.msrb.mxu1 %v4648_v25  ;;  %2710 = vmatpush.msra.mxu2 %v4742_v48  ;;  %v4853_v25 = vld [vmem:[#allocation13 + $0x28] sm:$0xff] }
 0x8a6   :  { %2621 = vmatpush.msra.mxu0 %v4838_v20 }
 0x8a7   :  { %2691 = vmatpush.msrb.mxu1 %v4653_v4  ;;  %2711 = vmatpush.msra.mxu2 %v4747_v60  ;;  %v4858_v4 = vld [vmem:[#allocation13 + $0x10] sm:$0xff] }
 0x8a8   :  { %2622 = vmatpush.msra.mxu0 %v4843_v33 }
 0x8a9   :  { %2692 = vmatpush.msrb.mxu1 %v4658_v17  ;;  %2712 = vmatpush.msra.mxu2 %v4752_v49  ;;  %v5024_v17 = vld [vmem:[#allocation34_spill] sm:$0xff] }
 0x8aa   :  { %2623 = vmatpush.msra.mxu0 %v4848_v13 }
 0x8ab   :  { %2693 = vmatpush.msrb.mxu1 %v4663_v43  ;;  %2713 = vmatpush.msra.mxu2 %v4757_v45  ;;  %v1741_v43 = vadd.f32 %v5024_v17, %v5020_v58 }
 0x8ac   :  { %2624 = vmatpush.msra.mxu0 %v4853_v25 }
 0x8ad   :  { %2694 = vmatpush.msrb.mxu1 %v4668_v12  ;;  %2714 = vmatpush.msra.mxu2 %v4762_v57 }
 0x8ae   :  { %2625 = vmatpush.msra.mxu0 %v4858_v4 }
 0x8af   :  { %2695 = vmatpush.msrb.mxu1 %v4673_v1  ;;  %2715 = vmatpush.msra.mxu2 %v4767_v56 }
 0x90c   :  { %v2367_v32 = vpop.f32.mrf.mxu0  ;;  %v2387_v26 = vpop.f32.mrf.mxu1 }
 0x90d   :  { %v2413_v59 = vadd.f32 %v2367_v32, %v1741_v43  ;;  %v2433_v12 = vadd.f32 %v2387_v26, %v1782_v31 }
 0x90f   :  { %v2875_v55 = vmul.f32 -1.442695, %v2413_v59  ;;  %v2876_v40 = vmul.f32 -1.442695, %v2433_v12 }
 0x911   :  { %3019 = vpow2.f32 %v2875_v55 }
 0x912   :  { %3021 = vpow2.f32 %v2876_v40  ;;  %v4899_v40 = vld [vmem:[%s4939_s8] ss:$0 sm:$0xff] }
 0x913   :  { %v2407_v54 = vpop.f32.mrf.mxu2 }
 0x914   :  { %v2453_v21 = vadd.f32 %v4503_v22, %v2407_v54 }
 0x917   :  { %v3020_v52 = vpop.eup %3019 }
 0x918   :  { %v3022_v28 = vpop.eup %3021  ;;  %v2417_v34 = vadd.f32 1.0, %v3020_v52 }
 0x919   :  { %v2437_v1 = vadd.f32 1.0, %v3022_v28 }
 0x91a   :  { %3023 = vrcp.f32 %v2417_v34  ;;  %v2429_v37 = vand.u32 2147483648, %v2417_v34  ;;  %v2427_v56 = vand.u32 2147483647, %v2417_v34  ;;  %vm2423_vm1 = vweird.f32 %v2417_v34 }
 0x91b   :  { %3025 = vrcp.f32 %v2437_v1  ;;  %v2449_v10 = vand.u32 2147483648, %v2437_v1  ;;  %vm2443_vm5 = vweird.f32 %v2437_v1  ;;  %v2447_v50 = vand.u32 2147483647, %v2437_v1 }
 0x91c   :  { %v2430_v23 = vor.u32 1.1754944e-38, %v2429_v37  ;;  %vm2428_vm3 = vcmp.eq.f32.partialorder %v2427_v56, 8.507059e+37 }
 0x91d   :  { %v2450_v19 = vor.u32 1.1754944e-38, %v2449_v10  ;;  %vm2448_vm7 = vcmp.eq.f32.partialorder %v2447_v50, 8.507059e+37 }
 0x920   :  { %v3024_v15 = vpop.eup %3023 }
 0x921   :  { %v3026_v48 = vpop.eup %3025  ;;  %v2419_v60 = vmul.f32 %v3024_v15, %v2417_v34  ;;  %vm2424_vm0 = vweird.f32 %v3024_v15 }
 0x922   :  { %v2439_v45 = vmul.f32 %v3026_v48, %v2437_v1  ;;  %vm2425_vm2 = vmor %vm2423_vm1, %vm2424_vm0  ;;  %vm2444_vm4 = vweird.f32 %v3026_v48  ;;  %v5028_v1 = vld [vmem:[#allocation28_spill] sm:$0xff] }
 0x923   :  { %v2420_v49 = vsub.f32 1.0, %v2419_v60  ;;  %vm2445_vm6 = vmor %vm2443_vm5, %vm2444_vm4 }
 0x924   :  { %v2440_v5 = vsub.f32 1.0, %v2439_v45 }
 0x925   :  { %v2421_v57 = vmul.f32 %v3024_v15, %v2420_v49 }
 0x926   :  { %v2441_v39 = vmul.f32 %v3026_v48, %v2440_v5 }
 0x927   :  { %v2422_v8 = vadd.f32 %v3024_v15, %v2421_v57 }
 0x928   :  { %v2442_v14 = vadd.f32 %v3026_v48, %v2441_v39 }
 0x929   :  { %v2426_v53 = vsel %vm2425_vm2, %v3024_v15, %v2422_v8  ;;  %v1826_v15 = vadd.f32 %v5028_v1, %v4505_v2  ;;  %v2804_v1 = vld [vmem:[#allocation15 + $0x70] sm:$0xff] }
 0x92a   :  { %v2431_v29 = vsel %vm2428_vm3, %v2430_v23, %v2426_v53  ;;  %v2446_v35 = vsel %vm2445_vm6, %v3026_v48, %v2442_v14 }
 0x92b   :  { %v2454_v61 = vmul.f32 %v2453_v21, %v2431_v29  ;;  %v2451_v46 = vsel %vm2448_vm7, %v2450_v19, %v2446_v35  ;;  %v5029_v29 = vld [vmem:[#allocation36_spill] sm:$0xff] }
 0x92c   :  { %v1747_v7 = vadd.f32 %v5029_v29, %v5020_v58  ;;  %v2796_v29 = vld [vmem:[#allocation15 + $0x30] sm:$0xff] }
 0x92d   :  { %v2455_v51 = vadd.f32 %v2454_v61, %v1823_v30  ;;  %v5030_v30 = vld [vmem:[#allocation31_spill] sm:$0xff] }
 0x92e   :  { %v1788_v61 = vadd.f32 %v5030_v30, %v5019_v63 }
 0x92f   :  { %3027 = vtanh.f32 %v2455_v51 }
 0x935   :  { %v3028_v42 = vpop.eup %3027 }
 0x936   :  { %v2457_v22 = vsub.f32 %v4778_v38, %v3028_v42  ;;  %v1785_v38 = vadd.f32 %v5026_v27, %v5019_v63 }
 0x938   :  { %v2458_v44 = vmul.f32 %v2457_v22, %v2451_v46 }
 0x93a   :  { %v4871_v41 = vadd.f32 %v3028_v42, %v2458_v44 }
 0x93c   :  { %2476 = vmatmul.f32.vlgmr.msrb.gmra.mxu3 %v4871_v41  ;;  %2496 = vmatmul.f32.vlgmr.msrb.gmra.mxu0 %v4871_v41 }
 0x93d   :  { %2516 = vmatmul.f32.vlgmr.msra.gmra.mxu1 %v4871_v41  ;;  %2720 = vmatpush.msrb.mxu3 %v4783_v47 }
 0x93f   :  { %2721 = vmatpush.msrb.mxu3 %v4788_v18 }
 0x941   :  { %2722 = vmatpush.msrb.mxu3 %v4793_v3 }
 0x943   :  { %2723 = vmatpush.msrb.mxu3 %v4798_v24  ;;  %v5027_v24 = vld [vmem:[#allocation35_spill] sm:$0xff] }
 0x945   :  { %2724 = vmatpush.msrb.mxu3 %v4803_v6  ;;  %v1744_v6 = vadd.f32 %v5027_v24, %v5020_v58 }
 0x947   :  { %2725 = vmatpush.msrb.mxu3 %v4808_v36 }
 0x949   :  { %2726 = vmatpush.msrb.mxu3 %v4813_v0 }
 0x94b   :  { %2727 = vmatpush.msrb.mxu3 %v4818_v62 }
 0x94d   :  { %2728 = vmatpush.msrb.mxu3 %v4823_v16 }
 0x94f   :  { %2729 = vmatpush.msrb.mxu3 %v4828_v11 }
 0x951   :  { %2730 = vmatpush.msrb.mxu3 %v4833_v9 }
 0x953   :  { %2731 = vmatpush.msrb.mxu3 %v4838_v20 }
 0x955   :  { %2732 = vmatpush.msrb.mxu3 %v4843_v33 }
 0x957   :  { %2733 = vmatpush.msrb.mxu3 %v4848_v13 }
 0x959   :  { %2734 = vmatpush.msrb.mxu3 %v4853_v25 }
 0x95b   :  { %2735 = vmatpush.msrb.mxu3 %v4858_v4 }
 0x9b9   :  { %v2497_v47 = vpop.f32.mrf.mxu0 }
 0x9ba   :  { %v2543_v18 = vadd.f32 %v2497_v47, %v1785_v38  ;;  %v2517_v26 = vpop.f32.mrf.mxu1 }
 0x9bb   :  { %v2563_v52 = vadd.f32 %v4899_v40, %v2517_v26 }
 0x9bc   :  { %v2878_v3 = vmul.f32 -1.442695, %v2543_v18 }
 0x9be   :  { %3029 = vpow2.f32 %v2878_v3 }
 0x9bf   :  { %v2477_v36 = vpop.f32.mrf.mxu3 }
 0x9c0   :  { %v2523_v0 = vadd.f32 %v2477_v36, %v1744_v6 }
 0x9c2   :  { %v2877_v62 = vmul.f32 -1.442695, %v2523_v0 }
 0x9c4   :  { %3031 = vpow2.f32 %v2877_v62  ;;  %v3030_v16 = vpop.eup %3029 }
 0x9c5   :  { %v2547_v9 = vadd.f32 1.0, %v3030_v16 }
 0x9c7   :  { %v2559_v37 = vand.u32 2147483648, %v2547_v9  ;;  %vm2553_vm13 = vweird.f32 %v2547_v9  ;;  %v2557_v57 = vand.u32 2147483647, %v2547_v9 }
 0x9c9   :  { %v2560_v8 = vor.u32 1.1754944e-38, %v2559_v37  ;;  %vm2558_vm15 = vcmp.eq.f32.partialorder %v2557_v57, 8.507059e+37  ;;  %v2799_v57 = vld [vmem:[#allocation15 + $0x48] sm:$0xff] }
 0x9ca   :  { %v3032_v11 = vpop.eup %3031 }
 0x9cb   :  { %v2527_v20 = vadd.f32 1.0, %v3032_v11 }
 0x9cd   :  { %3033 = vrcp.f32 %v2527_v20  ;;  %v2539_v43 = vand.u32 2147483648, %v2527_v20  ;;  %v2537_v32 = vand.u32 2147483647, %v2527_v20  ;;  %vm2533_vm9 = vweird.f32 %v2527_v20 }
 0x9ce   :  { %3035 = vrcp.f32 %v2547_v9 }
 0x9cf   :  { %v2540_v55 = vor.u32 1.1754944e-38, %v2539_v43  ;;  %vm2538_vm11 = vcmp.eq.f32.partialorder %v2537_v32, 8.507059e+37 }
 0x9d3   :  { %v3034_v33 = vpop.eup %3033 }
 0x9d4   :  { %v3036_v13 = vpop.eup %3035  ;;  %v2529_v25 = vmul.f32 %v3034_v33, %v2527_v20  ;;  %vm2534_vm8 = vweird.f32 %v3034_v33  ;;  %v5031_v20 = vld [vmem:[#allocation26_spill] sm:$0xff] }
 0x9d5   :  { %v2549_v17 = vmul.f32 %v3036_v13, %v2547_v9  ;;  %vm2535_vm10 = vmor %vm2533_vm9, %vm2534_vm8  ;;  %vm2554_vm12 = vweird.f32 %v3036_v13 }
 0x9d6   :  { %v2530_v4 = vsub.f32 1.0, %v2529_v25  ;;  %vm2555_vm14 = vmor %vm2553_vm13, %vm2554_vm12 }
 0x9d7   :  { %v2550_v12 = vsub.f32 1.0, %v2549_v17 }
 0x9d8   :  { %v2531_v31 = vmul.f32 %v3034_v33, %v2530_v4 }
 0x9d9   :  { %v2551_v60 = vmul.f32 %v3036_v13, %v2550_v12 }
 0x9da   :  { %v2532_v59 = vadd.f32 %v3034_v33, %v2531_v31 }
 0x9db   :  { %v2552_v45 = vadd.f32 %v3036_v13, %v2551_v60  ;;  %v2801_v60 = vld [vmem:[#allocation15 + $0x58] sm:$0xff] }
 0x9dc   :  { %v2536_v28 = vsel %vm2535_vm10, %v3034_v33, %v2532_v59  ;;  %v1829_v33 = vadd.f32 %v5031_v20, %v4505_v2 }
 0x9dd   :  { %v2541_v34 = vsel %vm2538_vm11, %v2540_v55, %v2536_v28  ;;  %v2556_v56 = vsel %vm2555_vm14, %v3036_v13, %v2552_v45  ;;  %v5032_v45 = vld [vmem:[#allocation37_spill] sm:$0xff] }
 0x9de   :  { %v2564_v48 = vmul.f32 %v2563_v52, %v2541_v34  ;;  %v2561_v23 = vsel %vm2558_vm15, %v2560_v8, %v2556_v56  ;;  %v2805_v34 = vld [vmem:[#allocation15 + $0x78] sm:$0xff]  ;;  %v1750_v37 = vadd.f32 %v5032_v45, %v5020_v58  ;;  %v2798_v8 = vld [vmem:[#allocation15 + $0x40] sm:$0xff] }
 0x9df   :  { %2810 = vmatpush.msrb.mxu0 %v2805_v34 }
 0x9e0   :  { %v2565_v49 = vadd.f32 %v2564_v48, %v1826_v15  ;;  %v2803_v15 = vld [vmem:[#allocation15 + $0x68] sm:$0xff]  ;;  %v2802_v48 = vld [vmem:[#allocation15 + $0x60] sm:$0xff] }
 0x9e1   :  { %2811 = vmatpush.msrb.mxu0 %v2804_v1 }
 0x9e2   :  { %3037 = vtanh.f32 %v2565_v49  ;;  %v2800_v49 = vld [vmem:[#allocation15 + $0x50] sm:$0xff] }
 0x9e3   :  { %2812 = vmatpush.msrb.mxu0 %v2803_v15 }
 0x9e5   :  { %2813 = vmatpush.msrb.mxu0 %v2802_v48 }
 0x9e7   :  { %2814 = vmatpush.msrb.mxu0 %v2801_v60 }
 0x9e8   :  { %v3038_v54 = vpop.eup %3037 }
 0x9e9   :  { %v2567_v5 = vsub.f32 %v4871_v41, %v3038_v54  ;;  %2815 = vmatpush.msrb.mxu0 %v2800_v49 }
 0x9eb   :  { %v2568_v53 = vmul.f32 %v2567_v5, %v2561_v23  ;;  %2816 = vmatpush.msrb.mxu0 %v2799_v57  ;;  %v2797_v23 = vld [vmem:[#allocation15 + $0x38] sm:$0xff] }
 0x9ed   :  { %v2569_v21 = vadd.f32 %v3038_v54, %v2568_v53  ;;  %2817 = vmatpush.msrb.mxu0 %v2798_v8  ;;  %v5033_v53 = vld [vmem:[#allocation23_spill] sm:$0xff] }
 0x9ef   :  { %2586 = vmatmul.f32.vlgmr.msrb.gmra.mxu2 %v2569_v21  ;;  %2606 = vmatmul.f32.vlgmr.msra.gmra.mxu3 %v2569_v21 }
 0x9f0   :  { %2626 = vmatmul.f32.vlgmr.msra.gmra.mxu0 %v2569_v21 }
 0x9f1   :  { %2818 = vmatpush.msrb.mxu0 %v2797_v23 }
 0x9f3   :  { %2819 = vmatpush.msrb.mxu0 %v2796_v29 }
 0xa6d   :  { %v2627_v6 = vpop.f32.mrf.mxu0 }
 0xa6e   :  { %v2673_v16 = vadd.f32 %v4899_v40, %v2627_v6 }
 0xa72   :  { %v2587_v39 = vpop.f32.mrf.mxu2  ;;  %v2607_v51 = vpop.f32.mrf.mxu3 }
 0xa73   :  { %v2633_v14 = vadd.f32 %v2587_v39, %v1747_v7  ;;  %v2653_v10 = vadd.f32 %v2607_v51, %v1788_v61  ;;  %v2795_v61 = vld [vmem:[#allocation15 + $0x28] sm:$0xff]  ;;  %v2794_v39 = vld [vmem:[#allocation15 + $0x20] sm:$0xff]  ;;  %v2793_v51 = vld [vmem:[#allocation15 + $0x18] sm:$0xff] }
 0xa74   :  { %2820 = vmatpush.msrb.mxu0 %v2795_v61 }
 0xa75   :  { %v2879_v50 = vmul.f32 -1.442695, %v2633_v14  ;;  %v2880_v35 = vmul.f32 -1.442695, %v2653_v10  ;;  %v2792_v10 = vld [vmem:[#allocation15 + $0x10] sm:$0xff] }
 0xa76   :  { %2821 = vmatpush.msrb.mxu0 %v2794_v39 }
 0xa77   :  { %3039 = vpow2.f32 %v2879_v50 }
 0xa78   :  { %3041 = vpow2.f32 %v2880_v35  ;;  %2822 = vmatpush.msrb.mxu0 %v2793_v51  ;;  %v2791_v35 = vld [vmem:[#allocation15 + $0x8] sm:$0xff] }
 0xa7a   :  { %2823 = vmatpush.msrb.mxu0 %v2792_v10 }
 0xa7c   :  { %2824 = vmatpush.msrb.mxu0 %v2791_v35 }
 0xa7d   :  { %v3040_v42 = vpop.eup %3039 }
 0xa7e   :  { %v3042_v19 = vpop.eup %3041  ;;  %v2637_v22 = vadd.f32 1.0, %v3040_v42 }
 0xa7f   :  { %v2657_v46 = vadd.f32 1.0, %v3042_v19 }
 0xa80   :  { %3043 = vrcp.f32 %v2637_v22  ;;  %v2649_v47 = vand.u32 2147483648, %v2637_v22  ;;  %v2647_v24 = vand.u32 2147483647, %v2637_v22  ;;  %vm2643_vm1 = vweird.f32 %v2637_v22 }
 0xa81   :  { %3045 = vrcp.f32 %v2657_v46  ;;  %v2669_v43 = vand.u32 2147483648, %v2657_v46  ;;  %vm2663_vm5 = vweird.f32 %v2657_v46  ;;  %v2667_v31 = vand.u32 2147483647, %v2657_v46 }
 0xa82   :  { %v2650_v0 = vor.u32 1.1754944e-38, %v2649_v47  ;;  %vm2648_vm3 = vcmp.eq.f32.partialorder %v2647_v24, 8.507059e+37 }
 0xa83   :  { %v2670_v59 = vor.u32 1.1754944e-38, %v2669_v43  ;;  %vm2668_vm7 = vcmp.eq.f32.partialorder %v2667_v31, 8.507059e+37 }
 0xa86   :  { %v3044_v44 = vpop.eup %3043 }
 0xa87   :  { %v3046_v41 = vpop.eup %3045  ;;  %v2639_v27 = vmul.f32 %v3044_v44, %v2637_v22  ;;  %vm2644_vm0 = vweird.f32 %v3044_v44 }
 0xa88   :  { %v2659_v18 = vmul.f32 %v3046_v41, %v2657_v46  ;;  %vm2645_vm2 = vmor %vm2643_vm1, %vm2644_vm0  ;;  %vm2664_vm4 = vweird.f32 %v3046_v41 }
 0xa89   :  { %v2640_v38 = vsub.f32 1.0, %v2639_v27  ;;  %vm2665_vm6 = vmor %vm2663_vm5, %vm2664_vm4 }
 0xa8a   :  { %v2660_v62 = vsub.f32 1.0, %v2659_v18 }
 0xa8b   :  { %v2641_v3 = vmul.f32 %v3044_v44, %v2640_v38 }
 0xa8c   :  { %v2661_v25 = vmul.f32 %v3046_v41, %v2660_v62 }
 0xa8d   :  { %v2642_v36 = vadd.f32 %v3044_v44, %v2641_v3 }
 0xa8e   :  { %v2662_v17 = vadd.f32 %v3046_v41, %v2661_v25 }
 0xa8f   :  { %v2646_v11 = vsel %vm2645_vm2, %v3044_v44, %v2642_v36 }
 0xa90   :  { %v2651_v9 = vsel %vm2648_vm3, %v2650_v0, %v2646_v11  ;;  %v2666_v32 = vsel %vm2665_vm6, %v3046_v41, %v2662_v17  ;;  %v5034_v11 = vld [vmem:[#allocation22_spill] sm:$0xff] }
 0xa91   :  { %v2674_v13 = vmul.f32 %v2673_v16, %v2651_v9  ;;  %v2671_v55 = vsel %vm2668_vm7, %v2670_v59, %v2666_v32  ;;  %v1832_v9 = vadd.f32 %v5034_v11, %v4505_v2  ;;  %v2898_v2 = vld [vmem:[%s4941_s10] ss:$0 sm:$0xff] }
 0xa93   :  { %v2675_v4 = vadd.f32 %v2674_v13, %v1829_v33 }
 0xa95   :  { %3047 = vtanh.f32 %v2675_v4 }
 0xa9b   :  { %v3048_v26 = vpop.eup %3047 }
 0xa9c   :  { %v2677_v12 = vsub.f32 %v2569_v21, %v3048_v26  ;;  %v1791_v21 = vadd.f32 %v5033_v53, %v5019_v63  ;;  %v2790_v63 = vld [vmem:[#allocation15] sm:$0xff] }
 0xa9d   :  { %2825 = vmatpush.msrb.mxu0 %v2790_v63 }
 0xa9e   :  { %v2678_v52 = vmul.f32 %v2677_v12, %v2671_v55 }
 0xaa0   :  { %v4912_v28 = vadd.f32 %v3048_v26, %v2678_v52 }
 0xaa2   :  { %2696 = vmatmul.f32.vlgmr.msrb.gmra.mxu1 %v4912_v28  ;;  %2716 = vmatmul.f32.vlgmr.msra.gmra.mxu2 %v4912_v28 }
 0xaa3   :  { %2736 = vmatmul.f32.vlgmr.msrb.gmra.mxu3 %v4912_v28 }
 0xb1f   :  { %v2697_v56 = vpop.f32.mrf.mxu1 }
 0xb20   :  { %v2743_v54 = vadd.f32 %v2697_v56, %v1750_v37 }
 0xb22   :  { %v2881_v5 = vmul.f32 -1.442695, %v2743_v54 }
 0xb24   :  { %3049 = vpow2.f32 %v2881_v5 }
 0xb25   :  { %v2717_v7 = vpop.f32.mrf.mxu2 }
 0xb26   :  { %v2763_v30 = vadd.f32 %v2717_v7, %v1791_v21  ;;  %v2737_v18 = vpop.f32.mrf.mxu3 }
 0xb27   :  { %v2783_v62 = vadd.f32 %v4899_v40, %v2737_v18 }
 0xb28   :  { %v2882_v58 = vmul.f32 -1.442695, %v2763_v30 }
 0xb2a   :  { %v3050_v14 = vpop.eup %3049  ;;  %3051 = vpow2.f32 %v2882_v58 }
 0xb2b   :  { %v2747_v50 = vadd.f32 1.0, %v3050_v14 }
 0xb2d   :  { %3053 = vrcp.f32 %v2747_v50  ;;  %v2759_v41 = vand.u32 2147483648, %v2747_v50  ;;  %v2757_v38 = vand.u32 2147483647, %v2747_v50  ;;  %vm2753_vm9 = vweird.f32 %v2747_v50 }
 0xb2f   :  { %v2760_v6 = vor.u32 1.1754944e-38, %v2759_v41  ;;  %vm2758_vm11 = vcmp.eq.f32.partialorder %v2757_v38, 8.507059e+37 }
 0xb30   :  { %v3052_v42 = vpop.eup %3051 }
 0xb31   :  { %v2767_v19 = vadd.f32 1.0, %v3052_v42 }
 0xb33   :  { %v3054_v22 = vpop.eup %3053  ;;  %3055 = vrcp.f32 %v2767_v19  ;;  %v2779_v4 = vand.u32 2147483648, %v2767_v19  ;;  %vm2773_vm13 = vweird.f32 %v2767_v19  ;;  %v2777_v17 = vand.u32 2147483647, %v2767_v19 }
 0xb34   :  { %v2749_v46 = vmul.f32 %v3054_v22, %v2747_v50  ;;  %vm2754_vm8 = vweird.f32 %v3054_v22 }
 0xb35   :  { %vm2755_vm10 = vmor %vm2753_vm9, %vm2754_vm8  ;;  %v2780_v32 = vor.u32 1.1754944e-38, %v2779_v4  ;;  %vm2778_vm15 = vcmp.eq.f32.partialorder %v2777_v17, 8.507059e+37 }
 0xb36   :  { %v2750_v44 = vsub.f32 1.0, %v2749_v46 }
 0xb38   :  { %v2751_v27 = vmul.f32 %v3054_v22, %v2750_v44 }
 0xb39   :  { %v3056_v47 = vpop.eup %3055 }
 0xb3a   :  { %v2769_v3 = vmul.f32 %v3056_v47, %v2767_v19  ;;  %v2752_v24 = vadd.f32 %v3054_v22, %v2751_v27  ;;  %vm2774_vm12 = vweird.f32 %v3056_v47 }
 0xb3b   :  { %vm2775_vm14 = vmor %vm2773_vm13, %vm2774_vm12 }
 0xb3c   :  { %v2770_v36 = vsub.f32 1.0, %v2769_v3  ;;  %v2756_v0 = vsel %vm2755_vm10, %v3054_v22, %v2752_v24 }
 0xb3d   :  { %v2761_v16 = vsel %vm2758_vm11, %v2760_v6, %v2756_v0 }
 0xb3e   :  { %v2784_v20 = vmul.f32 %v2783_v62, %v2761_v16  ;;  %v2771_v33 = vmul.f32 %v3056_v47, %v2770_v36 }
 0xb40   :  { %v2785_v13 = vadd.f32 %v2784_v20, %v1832_v9  ;;  %v2772_v25 = vadd.f32 %v3056_v47, %v2771_v33 }
 0xb42   :  { %3057 = vtanh.f32 %v2785_v13  ;;  %v2776_v43 = vsel %vm2775_vm14, %v3056_v47, %v2772_v25 }
 0xb43   :  { %v2781_v26 = vsel %vm2778_vm15, %v2780_v32, %v2776_v43 }
 0xb48   :  { %v3058_v31 = vpop.eup %3057 }
 0xb49   :  { %v2787_v40 = vsub.f32 %v4912_v28, %v3058_v31 }
 0xb4b   :  { %v2788_v59 = vmul.f32 %v2787_v40, %v2781_v26 }
 0xb4d   :  { %v2789_v12 = vadd.f32 %v3058_v31, %v2788_v59 }
 0xb4f   :  { %2826 = vmatmul.f32.vlgmr.msrb.gmra.mxu0 %v2789_v12 }
 0xbcc   :  { %v2827_v55 = vpop.f32.mrf.mxu0 }
 0xbcd   :  { %v2828_v52 = vadd.f32 %v2898_v2, %v2827_v55 }
 0xbcf   :  { %2830 = vst [vmem:[#allocation16] sm:$0xff] %v2828_v52 }
 0xbd0   :  { %2841 = dma.vmem_to_hbm [thread:$0]  %s2837_s6, 128, %s2839_s21, [#allocation6]  }
 0xbd1   :  { %3309 = dma.done.wait [#allocation6], 128  }
 0xbd2   :  { %3310 = vsyncadd [#allocation6], 4294967168 }
 0xbd3   :  { %2846 = vsyncpa [#allocation5], 1 }
 0xbd4   :  { %2847 = vsyncpa [#allocation8], 1 }
 0xbd5   :  { %2848 = vsyncpa [#allocation11], 1 }
 0xbd6   :  { %2849 = vsyncpa [#allocation14], 1 }
 0xbd7   :  { %2850 = vsyncpa [#allocation6], 1 }

</bundles_post_ra>
